<compile_context>
chip_gen: v7x
topology: tpu7x:2x2x1
jax: 0.10.0
libtpu: 0.0.40
codegen_flags: <defaults>
</compile_context>

<pallas_src>
import functools
import math

import numpy as np
import jax
import jax.numpy as jnp
from jax.experimental import pallas as pl
from jax.experimental.pallas import tpu as pltpu

_CONV_CHANNELS = (32, 32, 64, 64)
_NUM_LAYERS = 4


def _spatial_plan(height, width):
    """Spatial extents after each stride-2 3x3 VALID conv."""
    hs, ws = [height], [width]
    for _ in range(_NUM_LAYERS):
        hs.append((hs[-1] - 3) // 2 + 1)
        ws.append((ws[-1] - 3) // 2 + 1)
    if hs[-1] < 1 or ws[-1] < 1:
        raise ValueError("image_size too small for four stride-2 3x3 VALID convs")
    return tuple(hs), tuple(ws)


def _const_spec(shape):
    """Full-array block that stays resident across the batch grid."""
    nd = len(shape)
    return pl.BlockSpec(tuple(int(s) for s in shape), lambda b, _nd=nd: (0,) * _nd)


# ------------------------- host-side parameter repack ------------------------ #

def prepare_encoder_params(params, input_dim, image_size):
    """One-time host-side repack of the conv/MLP weights into the row-matmul form.

    For layer l and kernel row ky, big[ky] has shape (Win*Cin, Wout*Cout) with
    big[ky][(2j+kx)*Cin + ci, j*Cout + co] = w[ky, kx, ci, co] and zeros elsewhere,
    so one matmul over a full input row produces a full output row.
    """
    hs, ws = _spatial_plan(*image_size)
    chans = (input_dim,) + _CONV_CHANNELS

    conv_pack = []
    for l, (w, b) in enumerate(params["convs"]):
        w = np.asarray(w, np.float32)                      # (3, 3, Cin, Cout) HWIO
        b = np.asarray(b, np.float32)
        cin, cout = chans[l], chans[l + 1]
        win, wout = ws[l], ws[l + 1]
        big = np.zeros((3, win * cin, wout * cout), np.float32)
        for ky in range(3):
            for kx in range(3):
                for j in range(wout):
                    big[ky,
                        (2 * j + kx) * cin:(2 * j + kx + 1) * cin,
                        j * cout:(j + 1) * cout] = w[ky, kx]
        conv_pack.append((jnp.asarray(big, dtype=jnp.bfloat16),
                          jnp.asarray(np.tile(b, wout)[None, :], dtype=jnp.float32)))

    w1, b1, w2, b2 = params["mlp"]
    h4, w4, c4 = hs[-1], ws[-1], chans[-1]
    hidden = int(np.asarray(w1).shape[1])
    # Kernel feature order per row i is (j, c); PyTorch flatten order is (c, i, j).
    w1p = (np.asarray(w1, np.float32)
           .reshape(c4, h4, w4, hidden)
           .transpose(1, 2, 0, 3)
           .reshape(h4, w4 * c4, hidden))
    mlp_pack = (jnp.asarray(w1p, jnp.float32),
                jnp.asarray(np.asarray(b1, np.float32)[None, :]),
                jnp.asarray(np.asarray(w2, np.float32)),
                jnp.asarray(np.asarray(b2, np.float32)[None, :]))
    return {"convs": conv_pack, "mlp": mlp_pack}


# ----------------------------------- kernel ---------------------------------- #

def _encoder_kernel(x_ref, cw1, cb1, cw2, cb2, cw3, cb3, cw4, cb4,
                    wl1, bl1, wl2, bl2, o_ref, act1, act2, act3, *, hs):
    # (row-parity buffer, row offset) holding input row 2*i + ky, for ky = 0, 1, 2.
    taps = ((0, 0), (1, 0), (0, 1))

    def conv(load, w_ref, b_ref, ho):
        acc = None
        for ky, (p, dy) in enumerate(taps):
            lhs = load(p, dy, ho)                               # (ho, Win*Cin), contiguous
            part = jnp.dot(lhs, w_ref[ky], preferred_element_type=jnp.float32)
            acc = part if acc is None else acc + part
        return jnp.maximum(acc + b_ref[...], 0.0)               # (ho, Wout*Cout) f32

    def store_rows(act_ref, out_f32):
        # Row-parity write-back; bf16 scratch, cast once.  Static unroll (<= 17 rows).
        outb = out_f32.astype(jnp.bfloat16)
        for r in range(out_f32.shape[0]):
            act_ref[r % 2, r // 2:r // 2 + 1, :] = outb[r:r + 1, :]

    a1 = conv(lambda p, dy, ho: x_ref[0, p, dy:dy + ho, :], cw1, cb1, hs[1])
    store_rows(act1, a1)
    a2 = conv(lambda p, dy, ho: act1[p, dy:dy + ho, :], cw2, cb2, hs[2])
    store_rows(act2, a2)
    a3 = conv(lambda p, dy, ho: act2[p, dy:dy + ho, :], cw3, cb3, hs[3])
    store_rows(act3, a3)
    a4 = conv(lambda p, dy, ho: act3[p, dy:dy + ho, :], cw4, cb4, hs[4])  # (H4, W4*64) f32

    # Fused MLP (f32 for parity): Linear(D, 256) + ReLU + Linear(256, out).
    h = bl1[...]
    for i in range(a4.shape[0]):                                # H4 is tiny (1 here)
        h = h + jnp.dot(a4[i:i + 1, :], wl1[i], preferred_element_type=jnp.float32)
    h = jnp.maximum(h, 0.0)
    out = jnp.dot(h, wl2[...], preferred_element_type=jnp.float32) + bl2[...]
    o_ref[...] = out[None].astype(o_ref.dtype)


# ---------------------------------- wrapper ----------------------------------- #

def encoder_forward(x_nchw, prep):
    n, cin, height, width = x_nchw.shape
    hs, ws = _spatial_plan(height, width)
    chans = (cin,) + _CONV_CHANNELS
    ho1 = hs[1]
    hp0 = ho1 + 1
    rl0 = width * cin

    # Pack the image into row-parity buffers: xrows[b, p, r, w*cin + c] = x[b, c, 2r+p, w].
    x = jnp.transpose(x_nchw, (0, 2, 3, 1)).reshape(n, height, rl0)
    rows0 = x[:, 0:2 * ho1 + 1:2, :]                            # rows 0, 2, ..., 2*ho1
    rows1 = x[:, 1:2 * ho1:2, :]                                # rows 1, 3, ..., 2*ho1-1
    rows1 = jnp.pad(rows1, ((0, 0), (0, hp0 - ho1), (0, 0)))
    xrows = jnp.stack([rows0, rows1], axis=1).astype(jnp.bfloat16)   # (n, 2, hp0, rl0)

    w1p, b1, w2, b2 = prep["mlp"]
    out_dim = int(w2.shape[1])

    inputs = [xrows]
    in_specs = [pl.BlockSpec((1, 2, hp0, rl0), lambda b: (b, 0, 0, 0))]
    for cw, cb in prep["convs"]:
        inputs += [cw, cb]
        in_specs += [_const_spec(cw.shape), _const_spec(cb.shape)]
    inputs += [w1p, b1, w2, b2]
    in_specs += [_const_spec(a.shape) for a in (w1p, b1, w2, b2)]

    # Row-parity activation scratch for layers 1..3 (bf16).
    scratch = []
    for l in range(1, _NUM_LAYERS):
        hp = max((hs[l] + 1) // 2, hs[l + 1] + 1)
        scratch.append(pltpu.VMEM((2, hp, ws[l] * chans[l]), jnp.bfloat16))

    kernel = functools.partial(_encoder_kernel, hs=hs)
    out = pl.pallas_call(
        kernel,
        out_shape=jax.ShapeDtypeStruct((n, 1, out_dim), jnp.float32),
        grid=(n,),
        in_specs=in_specs,
        out_specs=pl.BlockSpec((1, 1, out_dim), lambda b: (b, 0, 0)),
        scratch_shapes=scratch,
        compiler_params=pltpu.CompilerParams(
            dimension_semantics=("parallel",),
        ),
    )(*inputs)
    return out.reshape(n, out_dim)


# ------------------------------ params / reference ---------------------------- #

def init_params(key, input_dim, output_dim, image_size):
    h, w = image_size
    for _ in range(4):
        h = (h - 1) // 2
        w = (w - 1) // 2
    chans = [(input_dim, 32), (32, 32), (32, 64), (64, 64)]
    keys = jax.random.split(key, 12)
    convs = []
    for i, (cin, cout) in enumerate(chans):
        wk = jax.random.normal(keys[2 * i], (3, 3, cin, cout), jnp.float32) / math.sqrt(9.0 * cin)
        bk = jax.random.normal(keys[2 * i + 1], (cout,), jnp.float32) * 0.01
        convs.append((wk, bk))
    d = 64 * h * w
    w1 = jax.random.normal(keys[8], (d, 256), jnp.float32) / math.sqrt(float(d))
    b1 = jax.random.normal(keys[9], (256,), jnp.float32) * 0.01
    w2 = jax.random.normal(keys[10], (256, output_dim), jnp.float32) / math.sqrt(256.0)
    b2 = jax.random.normal(keys[11], (output_dim,), jnp.float32) * 0.01
    return {"convs": convs, "mlp": (w1, b1, w2, b2)}


def encoder_reference(x_nchw, params):
    x = jnp.transpose(x_nchw, (0, 2, 3, 1))
    for (w, b) in params["convs"]:
        x = jax.lax.conv_general_dilated(
            x, w, window_strides=(2, 2), padding="VALID",
            dimension_numbers=("NHWC", "HWIO", "NHWC"),
            precision=jax.lax.Precision.HIGHEST)
        x = jnp.maximum(x + b, 0.0)
    x = jnp.transpose(x, (0, 3, 1, 2)).reshape(x.shape[0], -1)
    w1, b1, w2, b2 = params["mlp"]
    h = jnp.maximum(x @ w1 + b1, 0.0)
    return h @ w2 + b2


if __name__ == "__main__":
    key = jax.random.PRNGKey(0)
    kx, kp = jax.random.split(key)

    input_dim, output_dim = 3, 16
    image_size = (35, 35)                 # 35 -> 17 -> 8 -> 3 -> 1 after 4 stride-2 convs
    batch = 2

    x = jax.random.normal(kx, (batch, input_dim, *image_size), jnp.float32)
    params = init_params(kp, input_dim, output_dim, image_size)
    prep = prepare_encoder_params(params, input_dim, image_size)

    fwd = jax.jit(encoder_forward)
    out = jax.block_until_ready(fwd(x, prep))
    assert out.shape == (batch, output_dim)

    ref = encoder_reference(x, params)
    # Tolerance loosened for bf16 MXU operands in the conv layers (f32 accumulation, f32 MLP).
    if not jnp.allclose(out, ref, rtol=5e-2, atol=5e-2):
        err = float(jnp.max(jnp.abs(out - ref)))
        raise AssertionError(f"Pallas encoder output mismatch vs JAX reference (max abs err {err})")

    print("KERNEL_OK")
</pallas_src>

<mosaic_0001>
module attributes {stable_mosaic.version = 11 : i64} {
  func.func @_encoder_kernel(%arg0: i32, %arg1: memref<1x2x18x105xbf16, #tpu.memory_space<vmem>>, %arg2: memref<3x105x544xbf16, #tpu.memory_space<vmem>>, %arg3: memref<1x544xf32, #tpu.memory_space<vmem>>, %arg4: memref<3x544x256xbf16, #tpu.memory_space<vmem>>, %arg5: memref<1x256xf32, #tpu.memory_space<vmem>>, %arg6: memref<3x256x192xbf16, #tpu.memory_space<vmem>>, %arg7: memref<1x192xf32, #tpu.memory_space<vmem>>, %arg8: memref<3x192x64xbf16, #tpu.memory_space<vmem>>, %arg9: memref<1x64xf32, #tpu.memory_space<vmem>>, %arg10: memref<1x64x256xf32, #tpu.memory_space<vmem>>, %arg11: memref<1x256xf32, #tpu.memory_space<vmem>>, %arg12: memref<256x16xf32, #tpu.memory_space<vmem>>, %arg13: memref<1x16xf32, #tpu.memory_space<vmem>>, %arg14: memref<1x1x16xf32, #tpu.memory_space<vmem>>, %arg15: memref<2x9x544xbf16, #tpu.memory_space<vmem>>, %arg16: memref<2x4x256xbf16, #tpu.memory_space<vmem>>, %arg17: memref<2x2x192xbf16, #tpu.memory_space<vmem>>) attributes {dimension_semantics = [#tpu.dimension_semantics<parallel>], iteration_bounds = array<i64: 2>, scalar_prefetch = 0 : i64, scratch_operands = 3 : i64, tpu.core_type = #tpu.core_type<tc>, window_params = [{transform_indices = @transform_0, window_bounds = array<i64: 1, 2, 18, 105>}, {pipeline_mode = #tpu.pipeline_mode<synchronous>, transform_indices = @transform_1, window_bounds = array<i64: 3, 105, 544>}, {pipeline_mode = #tpu.pipeline_mode<synchronous>, transform_indices = @transform_2, window_bounds = array<i64: 1, 544>}, {pipeline_mode = #tpu.pipeline_mode<synchronous>, transform_indices = @transform_3, window_bounds = array<i64: 3, 544, 256>}, {pipeline_mode = #tpu.pipeline_mode<synchronous>, transform_indices = @transform_4, window_bounds = array<i64: 1, 256>}, {pipeline_mode = #tpu.pipeline_mode<synchronous>, transform_indices = @transform_5, window_bounds = array<i64: 3, 256, 192>}, {pipeline_mode = #tpu.pipeline_mode<synchronous>, transform_indices = @transform_6, window_bounds = array<i64: 1, 192>}, {pipeline_mode = #tpu.pipeline_mode<synchronous>, transform_indices = @transform_7, window_bounds = array<i64: 3, 192, 64>}, {pipeline_mode = #tpu.pipeline_mode<synchronous>, transform_indices = @transform_8, window_bounds = array<i64: 1, 64>}, {pipeline_mode = #tpu.pipeline_mode<synchronous>, transform_indices = @transform_9, window_bounds = array<i64: 1, 64, 256>}, {pipeline_mode = #tpu.pipeline_mode<synchronous>, transform_indices = @transform_10, window_bounds = array<i64: 1, 256>}, {pipeline_mode = #tpu.pipeline_mode<synchronous>, transform_indices = @transform_11, window_bounds = array<i64: 256, 16>}, {pipeline_mode = #tpu.pipeline_mode<synchronous>, transform_indices = @transform_12, window_bounds = array<i64: 1, 16>}, {transform_indices = @transform_13, window_bounds = array<i64: 1, 1, 16>}]} {
    %c0 = arith.constant 0 : index
    %c0_0 = arith.constant 0 : index
    %c0_1 = arith.constant 0 : index
    %c0_2 = arith.constant 0 : index
    %0 = vector.load %arg1[%c0, %c0_0, %c0_1, %c0_2] : memref<1x2x18x105xbf16, #tpu.memory_space<vmem>>, vector<1x1x17x105xbf16>
    %1 = vector.shape_cast %0 : vector<1x1x17x105xbf16> to vector<17x105xbf16>
    %c0_3 = arith.constant 0 : index
    %c0_4 = arith.constant 0 : index
    %c0_5 = arith.constant 0 : index
    %2 = vector.load %arg2[%c0_3, %c0_4, %c0_5] : memref<3x105x544xbf16, #tpu.memory_space<vmem>>, vector<1x105x544xbf16>
    %3 = vector.shape_cast %2 : vector<1x105x544xbf16> to vector<105x544xbf16>
    %cst = arith.constant dense<0.000000e+00> : vector<17x544xf32>
    %4 = tpu.matmul %1, %3, %cst {dimension_numbers = #tpu.dot_dimension_numbers<[1], [0], [0], [1], [0, 0, 1, 1], [], []>} : vector<17x105xbf16>, vector<105x544xbf16>, vector<17x544xf32> -> vector<17x544xf32>
    %c0_6 = arith.constant 0 : index
    %c1 = arith.constant 1 : index
    %c0_7 = arith.constant 0 : index
    %c0_8 = arith.constant 0 : index
    %5 = vector.load %arg1[%c0_6, %c1, %c0_7, %c0_8] : memref<1x2x18x105xbf16, #tpu.memory_space<vmem>>, vector<1x1x17x105xbf16>
    %6 = vector.shape_cast %5 : vector<1x1x17x105xbf16> to vector<17x105xbf16>
    %c1_9 = arith.constant 1 : index
    %c0_10 = arith.constant 0 : index
    %c0_11 = arith.constant 0 : index
    %7 = vector.load %arg2[%c1_9, %c0_10, %c0_11] : memref<3x105x544xbf16, #tpu.memory_space<vmem>>, vector<1x105x544xbf16>
    %8 = vector.shape_cast %7 : vector<1x105x544xbf16> to vector<105x544xbf16>
    %cst_12 = arith.constant dense<0.000000e+00> : vector<17x544xf32>
    %9 = tpu.matmul %6, %8, %cst_12 {dimension_numbers = #tpu.dot_dimension_numbers<[1], [0], [0], [1], [0, 0, 1, 1], [], []>} : vector<17x105xbf16>, vector<105x544xbf16>, vector<17x544xf32> -> vector<17x544xf32>
    %10 = arith.addf %4, %9 : vector<17x544xf32>
    %c0_13 = arith.constant 0 : index
    %c0_14 = arith.constant 0 : index
    %c1_15 = arith.constant 1 : index
    %c0_16 = arith.constant 0 : index
    %11 = vector.load %arg1[%c0_13, %c0_14, %c1_15, %c0_16] : memref<1x2x18x105xbf16, #tpu.memory_space<vmem>>, vector<1x1x17x105xbf16>
    %12 = vector.shape_cast %11 : vector<1x1x17x105xbf16> to vector<17x105xbf16>
    %c2 = arith.constant 2 : index
    %c0_17 = arith.constant 0 : index
    %c0_18 = arith.constant 0 : index
    %13 = vector.load %arg2[%c2, %c0_17, %c0_18] : memref<3x105x544xbf16, #tpu.memory_space<vmem>>, vector<1x105x544xbf16>
    %14 = vector.shape_cast %13 : vector<1x105x544xbf16> to vector<105x544xbf16>
    %cst_19 = arith.constant dense<0.000000e+00> : vector<17x544xf32>
    %15 = tpu.matmul %12, %14, %cst_19 {dimension_numbers = #tpu.dot_dimension_numbers<[1], [0], [0], [1], [0, 0, 1, 1], [], []>} : vector<17x105xbf16>, vector<105x544xbf16>, vector<17x544xf32> -> vector<17x544xf32>
    %16 = arith.addf %10, %15 : vector<17x544xf32>
    %c0_20 = arith.constant 0 : index
    %c0_21 = arith.constant 0 : index
    %17 = vector.load %arg3[%c0_20, %c0_21] : memref<1x544xf32, #tpu.memory_space<vmem>>, vector<1x544xf32>
    %18 = vector.broadcast %17 : vector<1x544xf32> to vector<17x544xf32>
    %19 = arith.addf %16, %18 : vector<17x544xf32>
    %cst_22 = arith.constant 0.000000e+00 : f32
    %20 = vector.broadcast %cst_22 : f32 to vector<17x544xf32>
    %21 = arith.maximumf %19, %20 : vector<17x544xf32>
    %22 = arith.truncf %21 : vector<17x544xf32> to vector<17x544xbf16>
    %23 = vector.extract_strided_slice %22 {offsets = [0, 0], sizes = [1, 544], strides = [1, 1]} : vector<17x544xbf16> to vector<1x544xbf16>
    %c0_23 = arith.constant 0 : index
    %c0_24 = arith.constant 0 : index
    %c0_25 = arith.constant 0 : index
    %24 = vector.load %arg15[%c0_23, %c0_24, %c0_25] : memref<2x9x544xbf16, #tpu.memory_space<vmem>>, vector<1x1x544xbf16>
    %25 = vector.shape_cast %24 : vector<1x1x544xbf16> to vector<1x544xbf16>
    %26 = vector.shape_cast %23 : vector<1x544xbf16> to vector<1x1x544xbf16>
    tpu.vector_store %arg15[%c0_23, %c0_24, %c0_25], %26 {strides = array<i32>} : memref<2x9x544xbf16, #tpu.memory_space<vmem>>, vector<1x1x544xbf16>,
    %27 = vector.extract_strided_slice %22 {offsets = [1, 0], sizes = [1, 544], strides = [1, 1]} : vector<17x544xbf16> to vector<1x544xbf16>
    %c1_26 = arith.constant 1 : index
    %c0_27 = arith.constant 0 : index
    %c0_28 = arith.constant 0 : index
    %28 = vector.load %arg15[%c1_26, %c0_27, %c0_28] : memref<2x9x544xbf16, #tpu.memory_space<vmem>>, vector<1x1x544xbf16>
    %29 = vector.shape_cast %28 : vector<1x1x544xbf16> to vector<1x544xbf16>
    %30 = vector.shape_cast %27 : vector<1x544xbf16> to vector<1x1x544xbf16>
    tpu.vector_store %arg15[%c1_26, %c0_27, %c0_28], %30 {strides = array<i32>} : memref<2x9x544xbf16, #tpu.memory_space<vmem>>, vector<1x1x544xbf16>,
    %31 = vector.extract_strided_slice %22 {offsets = [2, 0], sizes = [1, 544], strides = [1, 1]} : vector<17x544xbf16> to vector<1x544xbf16>
    %c0_29 = arith.constant 0 : index
    %c1_30 = arith.constant 1 : index
    %c0_31 = arith.constant 0 : index
    %32 = vector.load %arg15[%c0_29, %c1_30, %c0_31] : memref<2x9x544xbf16, #tpu.memory_space<vmem>>, vector<1x1x544xbf16>
    %33 = vector.shape_cast %32 : vector<1x1x544xbf16> to vector<1x544xbf16>
    %34 = vector.shape_cast %31 : vector<1x544xbf16> to vector<1x1x544xbf16>
    tpu.vector_store %arg15[%c0_29, %c1_30, %c0_31], %34 {strides = array<i32>} : memref<2x9x544xbf16, #tpu.memory_space<vmem>>, vector<1x1x544xbf16>,
    %35 = vector.extract_strided_slice %22 {offsets = [3, 0], sizes = [1, 544], strides = [1, 1]} : vector<17x544xbf16> to vector<1x544xbf16>
    %c1_32 = arith.constant 1 : index
    %c1_33 = arith.constant 1 : index
    %c0_34 = arith.constant 0 : index
    %36 = vector.load %arg15[%c1_32, %c1_33, %c0_34] : memref<2x9x544xbf16, #tpu.memory_space<vmem>>, vector<1x1x544xbf16>
    %37 = vector.shape_cast %36 : vector<1x1x544xbf16> to vector<1x544xbf16>
    %38 = vector.shape_cast %35 : vector<1x544xbf16> to vector<1x1x544xbf16>
    tpu.vector_store %arg15[%c1_32, %c1_33, %c0_34], %38 {strides = array<i32>} : memref<2x9x544xbf16, #tpu.memory_space<vmem>>, vector<1x1x544xbf16>,
    %39 = vector.extract_strided_slice %22 {offsets = [4, 0], sizes = [1, 544], strides = [1, 1]} : vector<17x544xbf16> to vector<1x544xbf16>
    %c0_35 = arith.constant 0 : index
    %c2_36 = arith.constant 2 : index
    %c0_37 = arith.constant 0 : index
    %40 = vector.load %arg15[%c0_35, %c2_36, %c0_37] : memref<2x9x544xbf16, #tpu.memory_space<vmem>>, vector<1x1x544xbf16>
    %41 = vector.shape_cast %40 : vector<1x1x544xbf16> to vector<1x544xbf16>
    %42 = vector.shape_cast %39 : vector<1x544xbf16> to vector<1x1x544xbf16>
    tpu.vector_store %arg15[%c0_35, %c2_36, %c0_37], %42 {strides = array<i32>} : memref<2x9x544xbf16, #tpu.memory_space<vmem>>, vector<1x1x544xbf16>,
    %43 = vector.extract_strided_slice %22 {offsets = [5, 0], sizes = [1, 544], strides = [1, 1]} : vector<17x544xbf16> to vector<1x544xbf16>
    %c1_38 = arith.constant 1 : index
    %c2_39 = arith.constant 2 : index
    %c0_40 = arith.constant 0 : index
    %44 = vector.load %arg15[%c1_38, %c2_39, %c0_40] : memref<2x9x544xbf16, #tpu.memory_space<vmem>>, vector<1x1x544xbf16>
    %45 = vector.shape_cast %44 : vector<1x1x544xbf16> to vector<1x544xbf16>
    %46 = vector.shape_cast %43 : vector<1x544xbf16> to vector<1x1x544xbf16>
    tpu.vector_store %arg15[%c1_38, %c2_39, %c0_40], %46 {strides = array<i32>} : memref<2x9x544xbf16, #tpu.memory_space<vmem>>, vector<1x1x544xbf16>,
    %47 = vector.extract_strided_slice %22 {offsets = [6, 0], sizes = [1, 544], strides = [1, 1]} : vector<17x544xbf16> to vector<1x544xbf16>
    %c0_41 = arith.constant 0 : index
    %c3 = arith.constant 3 : index
    %c0_42 = arith.constant 0 : index
    %48 = vector.load %arg15[%c0_41, %c3, %c0_42] : memref<2x9x544xbf16, #tpu.memory_space<vmem>>, vector<1x1x544xbf16>
    %49 = vector.shape_cast %48 : vector<1x1x544xbf16> to vector<1x544xbf16>
    %50 = vector.shape_cast %47 : vector<1x544xbf16> to vector<1x1x544xbf16>
    tpu.vector_store %arg15[%c0_41, %c3, %c0_42], %50 {strides = array<i32>} : memref<2x9x544xbf16, #tpu.memory_space<vmem>>, vector<1x1x544xbf16>,
    %51 = vector.extract_strided_slice %22 {offsets = [7, 0], sizes = [1, 544], strides = [1, 1]} : vector<17x544xbf16> to vector<1x544xbf16>
    %c1_43 = arith.constant 1 : index
    %c3_44 = arith.constant 3 : index
    %c0_45 = arith.constant 0 : index
    %52 = vector.load %arg15[%c1_43, %c3_44, %c0_45] : memref<2x9x544xbf16, #tpu.memory_space<vmem>>, vector<1x1x544xbf16>
    %53 = vector.shape_cast %52 : vector<1x1x544xbf16> to vector<1x544xbf16>
    %54 = vector.shape_cast %51 : vector<1x544xbf16> to vector<1x1x544xbf16>
    tpu.vector_store %arg15[%c1_43, %c3_44, %c0_45], %54 {strides = array<i32>} : memref<2x9x544xbf16, #tpu.memory_space<vmem>>, vector<1x1x544xbf16>,
    %55 = vector.extract_strided_slice %22 {offsets = [8, 0], sizes = [1, 544], strides = [1, 1]} : vector<17x544xbf16> to vector<1x544xbf16>
    %c0_46 = arith.constant 0 : index
    %c4 = arith.constant 4 : index
    %c0_47 = arith.constant 0 : index
    %56 = vector.load %arg15[%c0_46, %c4, %c0_47] : memref<2x9x544xbf16, #tpu.memory_space<vmem>>, vector<1x1x544xbf16>
    %57 = vector.shape_cast %56 : vector<1x1x544xbf16> to vector<1x544xbf16>
    %58 = vector.shape_cast %55 : vector<1x544xbf16> to vector<1x1x544xbf16>
    tpu.vector_store %arg15[%c0_46, %c4, %c0_47], %58 {strides = array<i32>} : memref<2x9x544xbf16, #tpu.memory_space<vmem>>, vector<1x1x544xbf16>,
    %59 = vector.extract_strided_slice %22 {offsets = [9, 0], sizes = [1, 544], strides = [1, 1]} : vector<17x544xbf16> to vector<1x544xbf16>
    %c1_48 = arith.constant 1 : index
    %c4_49 = arith.constant 4 : index
    %c0_50 = arith.constant 0 : index
    %60 = vector.load %arg15[%c1_48, %c4_49, %c0_50] : memref<2x9x544xbf16, #tpu.memory_space<vmem>>, vector<1x1x544xbf16>
    %61 = vector.shape_cast %60 : vector<1x1x544xbf16> to vector<1x544xbf16>
    %62 = vector.shape_cast %59 : vector<1x544xbf16> to vector<1x1x544xbf16>
    tpu.vector_store %arg15[%c1_48, %c4_49, %c0_50], %62 {strides = array<i32>} : memref<2x9x544xbf16, #tpu.memory_space<vmem>>, vector<1x1x544xbf16>,
    %63 = vector.extract_strided_slice %22 {offsets = [10, 0], sizes = [1, 544], strides = [1, 1]} : vector<17x544xbf16> to vector<1x544xbf16>
    %c0_51 = arith.constant 0 : index
    %c5 = arith.constant 5 : index
    %c0_52 = arith.constant 0 : index
    %64 = vector.load %arg15[%c0_51, %c5, %c0_52] : memref<2x9x544xbf16, #tpu.memory_space<vmem>>, vector<1x1x544xbf16>
    %65 = vector.shape_cast %64 : vector<1x1x544xbf16> to vector<1x544xbf16>
    %66 = vector.shape_cast %63 : vector<1x544xbf16> to vector<1x1x544xbf16>
    tpu.vector_store %arg15[%c0_51, %c5, %c0_52], %66 {strides = array<i32>} : memref<2x9x544xbf16, #tpu.memory_space<vmem>>, vector<1x1x544xbf16>,
    %67 = vector.extract_strided_slice %22 {offsets = [11, 0], sizes = [1, 544], strides = [1, 1]} : vector<17x544xbf16> to vector<1x544xbf16>
    %c1_53 = arith.constant 1 : index
    %c5_54 = arith.constant 5 : index
    %c0_55 = arith.constant 0 : index
    %68 = vector.load %arg15[%c1_53, %c5_54, %c0_55] : memref<2x9x544xbf16, #tpu.memory_space<vmem>>, vector<1x1x544xbf16>
    %69 = vector.shape_cast %68 : vector<1x1x544xbf16> to vector<1x544xbf16>
    %70 = vector.shape_cast %67 : vector<1x544xbf16> to vector<1x1x544xbf16>
    tpu.vector_store %arg15[%c1_53, %c5_54, %c0_55], %70 {strides = array<i32>} : memref<2x9x544xbf16, #tpu.memory_space<vmem>>, vector<1x1x544xbf16>,
    %71 = vector.extract_strided_slice %22 {offsets = [12, 0], sizes = [1, 544], strides = [1, 1]} : vector<17x544xbf16> to vector<1x544xbf16>
    %c0_56 = arith.constant 0 : index
    %c6 = arith.constant 6 : index
    %c0_57 = arith.constant 0 : index
    %72 = vector.load %arg15[%c0_56, %c6, %c0_57] : memref<2x9x544xbf16, #tpu.memory_space<vmem>>, vector<1x1x544xbf16>
    %73 = vector.shape_cast %72 : vector<1x1x544xbf16> to vector<1x544xbf16>
    %74 = vector.shape_cast %71 : vector<1x544xbf16> to vector<1x1x544xbf16>
    tpu.vector_store %arg15[%c0_56, %c6, %c0_57], %74 {strides = array<i32>} : memref<2x9x544xbf16, #tpu.memory_space<vmem>>, vector<1x1x544xbf16>,
    %75 = vector.extract_strided_slice %22 {offsets = [13, 0], sizes = [1, 544], strides = [1, 1]} : vector<17x544xbf16> to vector<1x544xbf16>
    %c1_58 = arith.constant 1 : index
    %c6_59 = arith.constant 6 : index
    %c0_60 = arith.constant 0 : index
    %76 = vector.load %arg15[%c1_58, %c6_59, %c0_60] : memref<2x9x544xbf16, #tpu.memory_space<vmem>>, vector<1x1x544xbf16>
    %77 = vector.shape_cast %76 : vector<1x1x544xbf16> to vector<1x544xbf16>
    %78 = vector.shape_cast %75 : vector<1x544xbf16> to vector<1x1x544xbf16>
    tpu.vector_store %arg15[%c1_58, %c6_59, %c0_60], %78 {strides = array<i32>} : memref<2x9x544xbf16, #tpu.memory_space<vmem>>, vector<1x1x544xbf16>,
    %79 = vector.extract_strided_slice %22 {offsets = [14, 0], sizes = [1, 544], strides = [1, 1]} : vector<17x544xbf16> to vector<1x544xbf16>
    %c0_61 = arith.constant 0 : index
    %c7 = arith.constant 7 : index
    %c0_62 = arith.constant 0 : index
    %80 = vector.load %arg15[%c0_61, %c7, %c0_62] : memref<2x9x544xbf16, #tpu.memory_space<vmem>>, vector<1x1x544xbf16>
    %81 = vector.shape_cast %80 : vector<1x1x544xbf16> to vector<1x544xbf16>
    %82 = vector.shape_cast %79 : vector<1x544xbf16> to vector<1x1x544xbf16>
    tpu.vector_store %arg15[%c0_61, %c7, %c0_62], %82 {strides = array<i32>} : memref<2x9x544xbf16, #tpu.memory_space<vmem>>, vector<1x1x544xbf16>,
    %83 = vector.extract_strided_slice %22 {offsets = [15, 0], sizes = [1, 544], strides = [1, 1]} : vector<17x544xbf16> to vector<1x544xbf16>
    %c1_63 = arith.constant 1 : index
    %c7_64 = arith.constant 7 : index
    %c0_65 = arith.constant 0 : index
    %84 = vector.load %arg15[%c1_63, %c7_64, %c0_65] : memref<2x9x544xbf16, #tpu.memory_space<vmem>>, vector<1x1x544xbf16>
    %85 = vector.shape_cast %84 : vector<1x1x544xbf16> to vector<1x544xbf16>
    %86 = vector.shape_cast %83 : vector<1x544xbf16> to vector<1x1x544xbf16>
    tpu.vector_store %arg15[%c1_63, %c7_64, %c0_65], %86 {strides = array<i32>} : memref<2x9x544xbf16, #tpu.memory_space<vmem>>, vector<1x1x544xbf16>,
    %87 = vector.extract_strided_slice %22 {offsets = [16, 0], sizes = [1, 544], strides = [1, 1]} : vector<17x544xbf16> to vector<1x544xbf16>
    %c0_66 = arith.constant 0 : index
    %c8 = arith.constant 8 : index
    %c0_67 = arith.constant 0 : index
    %88 = vector.load %arg15[%c0_66, %c8, %c0_67] : memref<2x9x544xbf16, #tpu.memory_space<vmem>>, vector<1x1x544xbf16>
    %89 = vector.shape_cast %88 : vector<1x1x544xbf16> to vector<1x544xbf16>
    %90 = vector.shape_cast %87 : vector<1x544xbf16> to vector<1x1x544xbf16>
    tpu.vector_store %arg15[%c0_66, %c8, %c0_67], %90 {strides = array<i32>} : memref<2x9x544xbf16, #tpu.memory_space<vmem>>, vector<1x1x544xbf16>,
    %c0_68 = arith.constant 0 : index
    %c0_69 = arith.constant 0 : index
    %c0_70 = arith.constant 0 : index
    %91 = vector.load %arg15[%c0_68, %c0_69, %c0_70] : memref<2x9x544xbf16, #tpu.memory_space<vmem>>, vector<1x8x544xbf16>
    %92 = vector.shape_cast %91 : vector<1x8x544xbf16> to vector<8x544xbf16>
    %c0_71 = arith.constant 0 : index
    %c0_72 = arith.constant 0 : index
    %c0_73 = arith.constant 0 : index
    %93 = vector.load %arg4[%c0_71, %c0_72, %c0_73] : memref<3x544x256xbf16, #tpu.memory_space<vmem>>, vector<1x544x256xbf16>
    %94 = vector.shape_cast %93 : vector<1x544x256xbf16> to vector<544x256xbf16>
    %cst_74 = arith.constant dense<0.000000e+00> : vector<8x256xf32>
    %95 = tpu.matmul %92, %94, %cst_74 {dimension_numbers = #tpu.dot_dimension_numbers<[1], [0], [0], [1], [0, 0, 1, 1], [], []>} : vector<8x544xbf16>, vector<544x256xbf16>, vector<8x256xf32> -> vector<8x256xf32>
    %c1_75 = arith.constant 1 : index
    %c0_76 = arith.constant 0 : index
    %c0_77 = arith.constant 0 : index
    %96 = vector.load %arg15[%c1_75, %c0_76, %c0_77] : memref<2x9x544xbf16, #tpu.memory_space<vmem>>, vector<1x8x544xbf16>
    %97 = vector.shape_cast %96 : vector<1x8x544xbf16> to vector<8x544xbf16>
    %c1_78 = arith.constant 1 : index
    %c0_79 = arith.constant 0 : index
    %c0_80 = arith.constant 0 : index
    %98 = vector.load %arg4[%c1_78, %c0_79, %c0_80] : memref<3x544x256xbf16, #tpu.memory_space<vmem>>, vector<1x544x256xbf16>
    %99 = vector.shape_cast %98 : vector<1x544x256xbf16> to vector<544x256xbf16>
    %cst_81 = arith.constant dense<0.000000e+00> : vector<8x256xf32>
    %100 = tpu.matmul %97, %99, %cst_81 {dimension_numbers = #tpu.dot_dimension_numbers<[1], [0], [0], [1], [0, 0, 1, 1], [], []>} : vector<8x544xbf16>, vector<544x256xbf16>, vector<8x256xf32> -> vector<8x256xf32>
    %101 = arith.addf %95, %100 : vector<8x256xf32>
    %c0_82 = arith.constant 0 : index
    %c1_83 = arith.constant 1 : index
    %c0_84 = arith.constant 0 : index
    %102 = vector.load %arg15[%c0_82, %c1_83, %c0_84] : memref<2x9x544xbf16, #tpu.memory_space<vmem>>, vector<1x8x544xbf16>
    %103 = vector.shape_cast %102 : vector<1x8x544xbf16> to vector<8x544xbf16>
    %c2_85 = arith.constant 2 : index
    %c0_86 = arith.constant 0 : index
    %c0_87 = arith.constant 0 : index
    %104 = vector.load %arg4[%c2_85, %c0_86, %c0_87] : memref<3x544x256xbf16, #tpu.memory_space<vmem>>, vector<1x544x256xbf16>
    %105 = vector.shape_cast %104 : vector<1x544x256xbf16> to vector<544x256xbf16>
    %cst_88 = arith.constant dense<0.000000e+00> : vector<8x256xf32>
    %106 = tpu.matmul %103, %105, %cst_88 {dimension_numbers = #tpu.dot_dimension_numbers<[1], [0], [0], [1], [0, 0, 1, 1], [], []>} : vector<8x544xbf16>, vector<544x256xbf16>, vector<8x256xf32> -> vector<8x256xf32>
    %107 = arith.addf %101, %106 : vector<8x256xf32>
    %c0_89 = arith.constant 0 : index
    %c0_90 = arith.constant 0 : index
    %108 = vector.load %arg5[%c0_89, %c0_90] : memref<1x256xf32, #tpu.memory_space<vmem>>, vector<1x256xf32>
    %109 = vector.broadcast %108 : vector<1x256xf32> to vector<8x256xf32>
    %110 = arith.addf %107, %109 : vector<8x256xf32>
    %cst_91 = arith.constant 0.000000e+00 : f32
    %111 = vector.broadcast %cst_91 : f32 to vector<8x256xf32>
    %112 = arith.maximumf %110, %111 : vector<8x256xf32>
    %113 = arith.truncf %112 : vector<8x256xf32> to vector<8x256xbf16>
    %114 = vector.extract_strided_slice %113 {offsets = [0, 0], sizes = [1, 256], strides = [1, 1]} : vector<8x256xbf16> to vector<1x256xbf16>
    %c0_92 = arith.constant 0 : index
    %c0_93 = arith.constant 0 : index
    %c0_94 = arith.constant 0 : index
    %115 = vector.load %arg16[%c0_92, %c0_93, %c0_94] : memref<2x4x256xbf16, #tpu.memory_space<vmem>>, vector<1x1x256xbf16>
    %116 = vector.shape_cast %115 : vector<1x1x256xbf16> to vector<1x256xbf16>
    %117 = vector.shape_cast %114 : vector<1x256xbf16> to vector<1x1x256xbf16>
    tpu.vector_store %arg16[%c0_92, %c0_93, %c0_94], %117 {strides = array<i32>} : memref<2x4x256xbf16, #tpu.memory_space<vmem>>, vector<1x1x256xbf16>,
    %118 = vector.extract_strided_slice %113 {offsets = [1, 0], sizes = [1, 256], strides = [1, 1]} : vector<8x256xbf16> to vector<1x256xbf16>
    %c1_95 = arith.constant 1 : index
    %c0_96 = arith.constant 0 : index
    %c0_97 = arith.constant 0 : index
    %119 = vector.load %arg16[%c1_95, %c0_96, %c0_97] : memref<2x4x256xbf16, #tpu.memory_space<vmem>>, vector<1x1x256xbf16>
    %120 = vector.shape_cast %119 : vector<1x1x256xbf16> to vector<1x256xbf16>
    %121 = vector.shape_cast %118 : vector<1x256xbf16> to vector<1x1x256xbf16>
    tpu.vector_store %arg16[%c1_95, %c0_96, %c0_97], %121 {strides = array<i32>} : memref<2x4x256xbf16, #tpu.memory_space<vmem>>, vector<1x1x256xbf16>,
    %122 = vector.extract_strided_slice %113 {offsets = [2, 0], sizes = [1, 256], strides = [1, 1]} : vector<8x256xbf16> to vector<1x256xbf16>
    %c0_98 = arith.constant 0 : index
    %c1_99 = arith.constant 1 : index
    %c0_100 = arith.constant 0 : index
    %123 = vector.load %arg16[%c0_98, %c1_99, %c0_100] : memref<2x4x256xbf16, #tpu.memory_space<vmem>>, vector<1x1x256xbf16>
    %124 = vector.shape_cast %123 : vector<1x1x256xbf16> to vector<1x256xbf16>
    %125 = vector.shape_cast %122 : vector<1x256xbf16> to vector<1x1x256xbf16>
    tpu.vector_store %arg16[%c0_98, %c1_99, %c0_100], %125 {strides = array<i32>} : memref<2x4x256xbf16, #tpu.memory_space<vmem>>, vector<1x1x256xbf16>,
    %126 = vector.extract_strided_slice %113 {offsets = [3, 0], sizes = [1, 256], strides = [1, 1]} : vector<8x256xbf16> to vector<1x256xbf16>
    %c1_101 = arith.constant 1 : index
    %c1_102 = arith.constant 1 : index
    %c0_103 = arith.constant 0 : index
    %127 = vector.load %arg16[%c1_101, %c1_102, %c0_103] : memref<2x4x256xbf16, #tpu.memory_space<vmem>>, vector<1x1x256xbf16>
    %128 = vector.shape_cast %127 : vector<1x1x256xbf16> to vector<1x256xbf16>
    %129 = vector.shape_cast %126 : vector<1x256xbf16> to vector<1x1x256xbf16>
    tpu.vector_store %arg16[%c1_101, %c1_102, %c0_103], %129 {strides = array<i32>} : memref<2x4x256xbf16, #tpu.memory_space<vmem>>, vector<1x1x256xbf16>,
    %130 = vector.extract_strided_slice %113 {offsets = [4, 0], sizes = [1, 256], strides = [1, 1]} : vector<8x256xbf16> to vector<1x256xbf16>
    %c0_104 = arith.constant 0 : index
    %c2_105 = arith.constant 2 : index
    %c0_106 = arith.constant 0 : index
    %131 = vector.load %arg16[%c0_104, %c2_105, %c0_106] : memref<2x4x256xbf16, #tpu.memory_space<vmem>>, vector<1x1x256xbf16>
    %132 = vector.shape_cast %131 : vector<1x1x256xbf16> to vector<1x256xbf16>
    %133 = vector.shape_cast %130 : vector<1x256xbf16> to vector<1x1x256xbf16>
    tpu.vector_store %arg16[%c0_104, %c2_105, %c0_106], %133 {strides = array<i32>} : memref<2x4x256xbf16, #tpu.memory_space<vmem>>, vector<1x1x256xbf16>,
    %134 = vector.extract_strided_slice %113 {offsets = [5, 0], sizes = [1, 256], strides = [1, 1]} : vector<8x256xbf16> to vector<1x256xbf16>
    %c1_107 = arith.constant 1 : index
    %c2_108 = arith.constant 2 : index
    %c0_109 = arith.constant 0 : index
    %135 = vector.load %arg16[%c1_107, %c2_108, %c0_109] : memref<2x4x256xbf16, #tpu.memory_space<vmem>>, vector<1x1x256xbf16>
    %136 = vector.shape_cast %135 : vector<1x1x256xbf16> to vector<1x256xbf16>
    %137 = vector.shape_cast %134 : vector<1x256xbf16> to vector<1x1x256xbf16>
    tpu.vector_store %arg16[%c1_107, %c2_108, %c0_109], %137 {strides = array<i32>} : memref<2x4x256xbf16, #tpu.memory_space<vmem>>, vector<1x1x256xbf16>,
    %138 = vector.extract_strided_slice %113 {offsets = [6, 0], sizes = [1, 256], strides = [1, 1]} : vector<8x256xbf16> to vector<1x256xbf16>
    %c0_110 = arith.constant 0 : index
    %c3_111 = arith.constant 3 : index
    %c0_112 = arith.constant 0 : index
    %139 = vector.load %arg16[%c0_110, %c3_111, %c0_112] : memref<2x4x256xbf16, #tpu.memory_space<vmem>>, vector<1x1x256xbf16>
    %140 = vector.shape_cast %139 : vector<1x1x256xbf16> to vector<1x256xbf16>
    %141 = vector.shape_cast %138 : vector<1x256xbf16> to vector<1x1x256xbf16>
    tpu.vector_store %arg16[%c0_110, %c3_111, %c0_112], %141 {strides = array<i32>} : memref<2x4x256xbf16, #tpu.memory_space<vmem>>, vector<1x1x256xbf16>,
    %142 = vector.extract_strided_slice %113 {offsets = [7, 0], sizes = [1, 256], strides = [1, 1]} : vector<8x256xbf16> to vector<1x256xbf16>
    %c1_113 = arith.constant 1 : index
    %c3_114 = arith.constant 3 : index
    %c0_115 = arith.constant 0 : index
    %143 = vector.load %arg16[%c1_113, %c3_114, %c0_115] : memref<2x4x256xbf16, #tpu.memory_space<vmem>>, vector<1x1x256xbf16>
    %144 = vector.shape_cast %143 : vector<1x1x256xbf16> to vector<1x256xbf16>
    %145 = vector.shape_cast %142 : vector<1x256xbf16> to vector<1x1x256xbf16>
    tpu.vector_store %arg16[%c1_113, %c3_114, %c0_115], %145 {strides = array<i32>} : memref<2x4x256xbf16, #tpu.memory_space<vmem>>, vector<1x1x256xbf16>,
    %c0_116 = arith.constant 0 : index
    %c0_117 = arith.constant 0 : index
    %c0_118 = arith.constant 0 : index
    %146 = vector.load %arg16[%c0_116, %c0_117, %c0_118] : memref<2x4x256xbf16, #tpu.memory_space<vmem>>, vector<1x3x256xbf16>
    %147 = vector.shape_cast %146 : vector<1x3x256xbf16> to vector<3x256xbf16>
    %c0_119 = arith.constant 0 : index
    %c0_120 = arith.constant 0 : index
    %c0_121 = arith.constant 0 : index
    %148 = vector.load %arg6[%c0_119, %c0_120, %c0_121] : memref<3x256x192xbf16, #tpu.memory_space<vmem>>, vector<1x256x192xbf16>
    %149 = vector.shape_cast %148 : vector<1x256x192xbf16> to vector<256x192xbf16>
    %cst_122 = arith.constant dense<0.000000e+00> : vector<3x192xf32>
    %150 = tpu.matmul %147, %149, %cst_122 {dimension_numbers = #tpu.dot_dimension_numbers<[1], [0], [0], [1], [0, 0, 1, 1], [], []>} : vector<3x256xbf16>, vector<256x192xbf16>, vector<3x192xf32> -> vector<3x192xf32>
    %c1_123 = arith.constant 1 : index
    %c0_124 = arith.constant 0 : index
    %c0_125 = arith.constant 0 : index
    %151 = vector.load %arg16[%c1_123, %c0_124, %c0_125] : memref<2x4x256xbf16, #tpu.memory_space<vmem>>, vector<1x3x256xbf16>
    %152 = vector.shape_cast %151 : vector<1x3x256xbf16> to vector<3x256xbf16>
    %c1_126 = arith.constant 1 : index
    %c0_127 = arith.constant 0 : index
    %c0_128 = arith.constant 0 : index
    %153 = vector.load %arg6[%c1_126, %c0_127, %c0_128] : memref<3x256x192xbf16, #tpu.memory_space<vmem>>, vector<1x256x192xbf16>
    %154 = vector.shape_cast %153 : vector<1x256x192xbf16> to vector<256x192xbf16>
    %cst_129 = arith.constant dense<0.000000e+00> : vector<3x192xf32>
    %155 = tpu.matmul %152, %154, %cst_129 {dimension_numbers = #tpu.dot_dimension_numbers<[1], [0], [0], [1], [0, 0, 1, 1], [], []>} : vector<3x256xbf16>, vector<256x192xbf16>, vector<3x192xf32> -> vector<3x192xf32>
    %156 = arith.addf %150, %155 : vector<3x192xf32>
    %c0_130 = arith.constant 0 : index
    %c1_131 = arith.constant 1 : index
    %c0_132 = arith.constant 0 : index
    %157 = vector.load %arg16[%c0_130, %c1_131, %c0_132] : memref<2x4x256xbf16, #tpu.memory_space<vmem>>, vector<1x3x256xbf16>
    %158 = vector.shape_cast %157 : vector<1x3x256xbf16> to vector<3x256xbf16>
    %c2_133 = arith.constant 2 : index
    %c0_134 = arith.constant 0 : index
    %c0_135 = arith.constant 0 : index
    %159 = vector.load %arg6[%c2_133, %c0_134, %c0_135] : memref<3x256x192xbf16, #tpu.memory_space<vmem>>, vector<1x256x192xbf16>
    %160 = vector.shape_cast %159 : vector<1x256x192xbf16> to vector<256x192xbf16>
    %cst_136 = arith.constant dense<0.000000e+00> : vector<3x192xf32>
    %161 = tpu.matmul %158, %160, %cst_136 {dimension_numbers = #tpu.dot_dimension_numbers<[1], [0], [0], [1], [0, 0, 1, 1], [], []>} : vector<3x256xbf16>, vector<256x192xbf16>, vector<3x192xf32> -> vector<3x192xf32>
    %162 = arith.addf %156, %161 : vector<3x192xf32>
    %c0_137 = arith.constant 0 : index
    %c0_138 = arith.constant 0 : index
    %163 = vector.load %arg7[%c0_137, %c0_138] : memref<1x192xf32, #tpu.memory_space<vmem>>, vector<1x192xf32>
    %164 = vector.broadcast %163 : vector<1x192xf32> to vector<3x192xf32>
    %165 = arith.addf %162, %164 : vector<3x192xf32>
    %cst_139 = arith.constant 0.000000e+00 : f32
    %166 = vector.broadcast %cst_139 : f32 to vector<3x192xf32>
    %167 = arith.maximumf %165, %166 : vector<3x192xf32>
    %168 = arith.truncf %167 : vector<3x192xf32> to vector<3x192xbf16>
    %169 = vector.extract_strided_slice %168 {offsets = [0, 0], sizes = [1, 192], strides = [1, 1]} : vector<3x192xbf16> to vector<1x192xbf16>
    %c0_140 = arith.constant 0 : index
    %c0_141 = arith.constant 0 : index
    %c0_142 = arith.constant 0 : index
    %170 = vector.load %arg17[%c0_140, %c0_141, %c0_142] : memref<2x2x192xbf16, #tpu.memory_space<vmem>>, vector<1x1x192xbf16>
    %171 = vector.shape_cast %170 : vector<1x1x192xbf16> to vector<1x192xbf16>
    %172 = vector.shape_cast %169 : vector<1x192xbf16> to vector<1x1x192xbf16>
    tpu.vector_store %arg17[%c0_140, %c0_141, %c0_142], %172 {strides = array<i32>} : memref<2x2x192xbf16, #tpu.memory_space<vmem>>, vector<1x1x192xbf16>,
    %173 = vector.extract_strided_slice %168 {offsets = [1, 0], sizes = [1, 192], strides = [1, 1]} : vector<3x192xbf16> to vector<1x192xbf16>
    %c1_143 = arith.constant 1 : index
    %c0_144 = arith.constant 0 : index
    %c0_145 = arith.constant 0 : index
    %174 = vector.load %arg17[%c1_143, %c0_144, %c0_145] : memref<2x2x192xbf16, #tpu.memory_space<vmem>>, vector<1x1x192xbf16>
    %175 = vector.shape_cast %174 : vector<1x1x192xbf16> to vector<1x192xbf16>
    %176 = vector.shape_cast %173 : vector<1x192xbf16> to vector<1x1x192xbf16>
    tpu.vector_store %arg17[%c1_143, %c0_144, %c0_145], %176 {strides = array<i32>} : memref<2x2x192xbf16, #tpu.memory_space<vmem>>, vector<1x1x192xbf16>,
    %177 = vector.extract_strided_slice %168 {offsets = [2, 0], sizes = [1, 192], strides = [1, 1]} : vector<3x192xbf16> to vector<1x192xbf16>
    %c0_146 = arith.constant 0 : index
    %c1_147 = arith.constant 1 : index
    %c0_148 = arith.constant 0 : index
    %178 = vector.load %arg17[%c0_146, %c1_147, %c0_148] : memref<2x2x192xbf16, #tpu.memory_space<vmem>>, vector<1x1x192xbf16>
    %179 = vector.shape_cast %178 : vector<1x1x192xbf16> to vector<1x192xbf16>
    %180 = vector.shape_cast %177 : vector<1x192xbf16> to vector<1x1x192xbf16>
    tpu.vector_store %arg17[%c0_146, %c1_147, %c0_148], %180 {strides = array<i32>} : memref<2x2x192xbf16, #tpu.memory_space<vmem>>, vector<1x1x192xbf16>,
    %c0_149 = arith.constant 0 : index
    %c0_150 = arith.constant 0 : index
    %c0_151 = arith.constant 0 : index
    %181 = vector.load %arg17[%c0_149, %c0_150, %c0_151] : memref<2x2x192xbf16, #tpu.memory_space<vmem>>, vector<1x1x192xbf16>
    %182 = vector.shape_cast %181 : vector<1x1x192xbf16> to vector<1x192xbf16>
    %c0_152 = arith.constant 0 : index
    %c0_153 = arith.constant 0 : index
    %c0_154 = arith.constant 0 : index
    %183 = vector.load %arg8[%c0_152, %c0_153, %c0_154] : memref<3x192x64xbf16, #tpu.memory_space<vmem>>, vector<1x192x64xbf16>
    %184 = vector.shape_cast %183 : vector<1x192x64xbf16> to vector<192x64xbf16>
    %cst_155 = arith.constant dense<0.000000e+00> : vector<1x64xf32>
    %185 = tpu.matmul %182, %184, %cst_155 {dimension_numbers = #tpu.dot_dimension_numbers<[1], [0], [0], [1], [0, 0, 1, 1], [], []>} : vector<1x192xbf16>, vector<192x64xbf16>, vector<1x64xf32> -> vector<1x64xf32>
    %c1_156 = arith.constant 1 : index
    %c0_157 = arith.constant 0 : index
    %c0_158 = arith.constant 0 : index
    %186 = vector.load %arg17[%c1_156, %c0_157, %c0_158] : memref<2x2x192xbf16, #tpu.memory_space<vmem>>, vector<1x1x192xbf16>
    %187 = vector.shape_cast %186 : vector<1x1x192xbf16> to vector<1x192xbf16>
    %c1_159 = arith.constant 1 : index
    %c0_160 = arith.constant 0 : index
    %c0_161 = arith.constant 0 : index
    %188 = vector.load %arg8[%c1_159, %c0_160, %c0_161] : memref<3x192x64xbf16, #tpu.memory_space<vmem>>, vector<1x192x64xbf16>
    %189 = vector.shape_cast %188 : vector<1x192x64xbf16> to vector<192x64xbf16>
    %cst_162 = arith.constant dense<0.000000e+00> : vector<1x64xf32>
    %190 = tpu.matmul %187, %189, %cst_162 {dimension_numbers = #tpu.dot_dimension_numbers<[1], [0], [0], [1], [0, 0, 1, 1], [], []>} : vector<1x192xbf16>, vector<192x64xbf16>, vector<1x64xf32> -> vector<1x64xf32>
    %191 = arith.addf %185, %190 : vector<1x64xf32>
    %c0_163 = arith.constant 0 : index
    %c1_164 = arith.constant 1 : index
    %c0_165 = arith.constant 0 : index
    %192 = vector.load %arg17[%c0_163, %c1_164, %c0_165] : memref<2x2x192xbf16, #tpu.memory_space<vmem>>, vector<1x1x192xbf16>
    %193 = vector.shape_cast %192 : vector<1x1x192xbf16> to vector<1x192xbf16>
    %c2_166 = arith.constant 2 : index
    %c0_167 = arith.constant 0 : index
    %c0_168 = arith.constant 0 : index
    %194 = vector.load %arg8[%c2_166, %c0_167, %c0_168] : memref<3x192x64xbf16, #tpu.memory_space<vmem>>, vector<1x192x64xbf16>
    %195 = vector.shape_cast %194 : vector<1x192x64xbf16> to vector<192x64xbf16>
    %cst_169 = arith.constant dense<0.000000e+00> : vector<1x64xf32>
    %196 = tpu.matmul %193, %195, %cst_169 {dimension_numbers = #tpu.dot_dimension_numbers<[1], [0], [0], [1], [0, 0, 1, 1], [], []>} : vector<1x192xbf16>, vector<192x64xbf16>, vector<1x64xf32> -> vector<1x64xf32>
    %197 = arith.addf %191, %196 : vector<1x64xf32>
    %c0_170 = arith.constant 0 : index
    %c0_171 = arith.constant 0 : index
    %198 = vector.load %arg9[%c0_170, %c0_171] : memref<1x64xf32, #tpu.memory_space<vmem>>, vector<1x64xf32>
    %199 = arith.addf %197, %198 : vector<1x64xf32>
    %cst_172 = arith.constant 0.000000e+00 : f32
    %200 = vector.broadcast %cst_172 : f32 to vector<1x64xf32>
    %201 = arith.maximumf %199, %200 : vector<1x64xf32>
    %c0_173 = arith.constant 0 : index
    %c0_174 = arith.constant 0 : index
    %202 = vector.load %arg11[%c0_173, %c0_174] : memref<1x256xf32, #tpu.memory_space<vmem>>, vector<1x256xf32>
    %c0_175 = arith.constant 0 : index
    %c0_176 = arith.constant 0 : index
    %c0_177 = arith.constant 0 : index
    %203 = vector.load %arg10[%c0_175, %c0_176, %c0_177] : memref<1x64x256xf32, #tpu.memory_space<vmem>>, vector<1x64x256xf32>
    %204 = vector.shape_cast %203 : vector<1x64x256xf32> to vector<64x256xf32>
    %cst_178 = arith.constant dense<0.000000e+00> : vector<1x256xf32>
    %205 = tpu.matmul %201, %204, %cst_178 {dimension_numbers = #tpu.dot_dimension_numbers<[1], [0], [0], [1], [0, 0, 1, 1], [], []>} : vector<1x64xf32>, vector<64x256xf32>, vector<1x256xf32> -> vector<1x256xf32>
    %206 = arith.addf %202, %205 : vector<1x256xf32>
    %cst_179 = arith.constant 0.000000e+00 : f32
    %207 = vector.broadcast %cst_179 : f32 to vector<1x256xf32>
    %208 = arith.maximumf %206, %207 : vector<1x256xf32>
    %c0_180 = arith.constant 0 : index
    %c0_181 = arith.constant 0 : index
    %209 = vector.load %arg12[%c0_180, %c0_181] : memref<256x16xf32, #tpu.memory_space<vmem>>, vector<256x16xf32>
    %cst_182 = arith.constant dense<0.000000e+00> : vector<1x16xf32>
    %210 = tpu.matmul %208, %209, %cst_182 {dimension_numbers = #tpu.dot_dimension_numbers<[1], [0], [0], [1], [0, 0, 1, 1], [], []>} : vector<1x256xf32>, vector<256x16xf32>, vector<1x16xf32> -> vector<1x16xf32>
    %c0_183 = arith.constant 0 : index
    %c0_184 = arith.constant 0 : index
    %211 = vector.load %arg13[%c0_183, %c0_184] : memref<1x16xf32, #tpu.memory_space<vmem>>, vector<1x16xf32>
    %212 = arith.addf %210, %211 : vector<1x16xf32>
    %213 = vector.shape_cast %212 : vector<1x16xf32> to vector<1x1x16xf32>
    %c0_185 = arith.constant 0 : index
    %c0_186 = arith.constant 0 : index
    %c0_187 = arith.constant 0 : index
    %214 = vector.load %arg14[%c0_185, %c0_186, %c0_187] : memref<1x1x16xf32, #tpu.memory_space<vmem>>, vector<1x1x16xf32>
    tpu.vector_store %arg14[%c0_185, %c0_186, %c0_187], %213 {strides = array<i32>} : memref<1x1x16xf32, #tpu.memory_space<vmem>>, vector<1x1x16xf32>,
    return
  }
  func.func @transform_0(%arg0: i32) -> (i32, i32, i32, i32) {
    %c0_i32 = arith.constant 0 : i32
    %c0_i32_0 = arith.constant 0 : i32
    %c0_i32_1 = arith.constant 0 : i32
    %c0_i32_2 = arith.constant 0 : i32
    return %arg0, %c0_i32, %c0_i32_0, %c0_i32_1 : i32, i32, i32, i32
  }
  func.func @transform_1(%arg0: i32) -> (i32, i32, i32) {
    %c0_i32 = arith.constant 0 : i32
    %c0_i32_0 = arith.constant 0 : i32
    %c0_i32_1 = arith.constant 0 : i32
    %c0_i32_2 = arith.constant 0 : i32
    return %c0_i32, %c0_i32_0, %c0_i32_1 : i32, i32, i32
  }
  func.func @transform_2(%arg0: i32) -> (i32, i32) {
    %c0_i32 = arith.constant 0 : i32
    %c0_i32_0 = arith.constant 0 : i32
    %c0_i32_1 = arith.constant 0 : i32
    return %c0_i32, %c0_i32_0 : i32, i32
  }
  func.func @transform_3(%arg0: i32) -> (i32, i32, i32) {
    %c0_i32 = arith.constant 0 : i32
    %c0_i32_0 = arith.constant 0 : i32
    %c0_i32_1 = arith.constant 0 : i32
    %c0_i32_2 = arith.constant 0 : i32
    return %c0_i32, %c0_i32_0, %c0_i32_1 : i32, i32, i32
  }
  func.func @transform_4(%arg0: i32) -> (i32, i32) {
    %c0_i32 = arith.constant 0 : i32
    %c0_i32_0 = arith.constant 0 : i32
    %c0_i32_1 = arith.constant 0 : i32
    return %c0_i32, %c0_i32_0 : i32, i32
  }
  func.func @transform_5(%arg0: i32) -> (i32, i32, i32) {
    %c0_i32 = arith.constant 0 : i32
    %c0_i32_0 = arith.constant 0 : i32
    %c0_i32_1 = arith.constant 0 : i32
    %c0_i32_2 = arith.constant 0 : i32
    return %c0_i32, %c0_i32_0, %c0_i32_1 : i32, i32, i32
  }
  func.func @transform_6(%arg0: i32) -> (i32, i32) {
    %c0_i32 = arith.constant 0 : i32
    %c0_i32_0 = arith.constant 0 : i32
    %c0_i32_1 = arith.constant 0 : i32
    return %c0_i32, %c0_i32_0 : i32, i32
  }
  func.func @transform_7(%arg0: i32) -> (i32, i32, i32) {
    %c0_i32 = arith.constant 0 : i32
    %c0_i32_0 = arith.constant 0 : i32
    %c0_i32_1 = arith.constant 0 : i32
    %c0_i32_2 = arith.constant 0 : i32
    return %c0_i32, %c0_i32_0, %c0_i32_1 : i32, i32, i32
  }
  func.func @transform_8(%arg0: i32) -> (i32, i32) {
    %c0_i32 = arith.constant 0 : i32
    %c0_i32_0 = arith.constant 0 : i32
    %c0_i32_1 = arith.constant 0 : i32
    return %c0_i32, %c0_i32_0 : i32, i32
  }
  func.func @transform_9(%arg0: i32) -> (i32, i32, i32) {
    %c0_i32 = arith.constant 0 : i32
    %c0_i32_0 = arith.constant 0 : i32
    %c0_i32_1 = arith.constant 0 : i32
    %c0_i32_2 = arith.constant 0 : i32
    return %c0_i32, %c0_i32_0, %c0_i32_1 : i32, i32, i32
  }
  func.func @transform_10(%arg0: i32) -> (i32, i32) {
    %c0_i32 = arith.constant 0 : i32
    %c0_i32_0 = arith.constant 0 : i32
    %c0_i32_1 = arith.constant 0 : i32
    return %c0_i32, %c0_i32_0 : i32, i32
  }
  func.func @transform_11(%arg0: i32) -> (i32, i32) {
    %c0_i32 = arith.constant 0 : i32
    %c0_i32_0 = arith.constant 0 : i32
    %c0_i32_1 = arith.constant 0 : i32
    return %c0_i32, %c0_i32_0 : i32, i32
  }
  func.func @transform_12(%arg0: i32) -> (i32, i32) {
    %c0_i32 = arith.constant 0 : i32
    %c0_i32_0 = arith.constant 0 : i32
    %c0_i32_1 = arith.constant 0 : i32
    return %c0_i32, %c0_i32_0 : i32, i32
  }
  func.func @transform_13(%arg0: i32) -> (i32, i32, i32) {
    %c0_i32 = arith.constant 0 : i32
    %c0_i32_0 = arith.constant 0 : i32
    %c0_i32_1 = arith.constant 0 : i32
    return %arg0, %c0_i32, %c0_i32_0 : i32, i32, i32
  }
}

</mosaic_0001>

<bundles_post_ra>
// kernel: encoder_forward.1
= control target key start
LH: loop header
LB: loop body
LE: loop exit
PB: predicated region body
PF: predicated region fallthrough
CT: control target
= control target key end

     0   :  { %18 = vsyncpa [#allocation6], 0  ;;  %s9692_s0 = inlined_call_operand.vmem [shape: bf16[2,2,18,105], index: 0, kind: input, shape index: {}]   ;;  %s9693_s1 = inlined_call_operand.vmem [shape: bf16[3,105,544], index: 1, kind: input, shape index: {}]   ;;  %s9694_s2 = inlined_call_operand.vmem [shape: f32[1,544], index: 2, kind: input, shape index: {}]   ;;  %s9695_s3 = inlined_call_operand.vmem [shape: bf16[3,544,256], index: 3, kind: input, shape index: {}]   ;;  %s9696_s4 = inlined_call_operand.vmem [shape: f32[1,256], index: 4, kind: input, shape index: {}]   ;;  %s9697_s5 = inlined_call_operand.vmem [shape: bf16[3,256,192], index: 5, kind: input, shape index: {}]   ;;  %s9698_s6 = inlined_call_operand.vmem [shape: f32[1,192], index: 6, kind: input, shape index: {}]   ;;  %s9699_s7 = inlined_call_operand.vmem [shape: bf16[3,192,64], index: 7, kind: input, shape index: {}]   ;;  %s9700_s8 = inlined_call_operand.vmem [shape: f32[1,64], index: 8, kind: input, shape index: {}]   ;;  %s9701_s9 = inlined_call_operand.vmem [shape: f32[1,64,256], index: 9, kind: input, shape index: {}]   ;;  %s9702_s10 = inlined_call_operand.vmem [shape: f32[1,256], index: 10, kind: input, shape index: {}]   ;;  %s9703_s11 = inlined_call_operand.vmem [shape: f32[256,16], index: 11, kind: input, shape index: {}]   ;;  %s9704_s12 = inlined_call_operand.vmem [shape: f32[1,16], index: 12, kind: input, shape index: {}]   ;;  %s9705_s13 = inlined_call_operand.hbm [shape: f32[2,1,16], index: 13, kind: output, shape index: {}]  }
   0x1   :  { %20 = vsyncpa [#allocation6 + $0x1], 0  ;;  %s7416_s25 = smov 0   ;;  %s7418_s26 = smov 0  }
   0x2   :  { %s7420_s27 = smov 0   ;;  %s7422_s28 = smov 0  }
   0x3 LB: > { %9728 = sst [smem:[#allocation8_spill]] %s7334_s27  ;;  %s7437_s29 = sadd.s32 4294967295, %s7338_s28   ;;  %s7338_s28 = sphi %s7422_s28, %s9831_s28   ;;  %s7334_s27 = sphi %s7420_s27, %s9833_s27   ;;  %s7330_s26 = sphi %s7418_s26, %s9835_s26   ;;  %s7326_s25 = sphi %s7416_s25, %s9834_s25  }
   0x4   : > { %s5526_s30 = sadd.s32 4294967294, %s7338_s28   ;;  %s7441_s14 = sadd.s32 1, %s7338_s28  }
   0x5   : > { %9729 = sst [smem:[#allocation9_spill]] %s7441_s14  ;;  %s311_s15 = sadd.s32 1, %s7334_s27 }
   0x6   : > { %s308_s16 = ssub.s32 %s7338_s28, %s7441_s14  ;;  %p321_p0 = scmp.ne.s32.totalorder %s7334_s27, %s7330_s26 }
   0x7   : > { %p309_p1 = scmp.eq.s32.totalorder %s308_s16, 0  ;;  %p322_p2 = scmp.eq.s32.totalorder %s7437_s29, 1 }
   0x8   : > { %p327_p3 = scmp.ne.s32.totalorder %s7330_s26, %s7326_s25  ;;  %p328_p4 = scmp.eq.s32.totalorder %s5526_s30, 1 }
   0x9   : > { %s7452_s17 = scalar_select %p309_p1, %s7334_s27, %s311_s15  }
   0xa   : > { %p7454_p5 = por %p322_p2, %p321_p0  ;;  %p7458_p6 = por %p328_p4, %p327_p3 }
   0xb   : > { %9730 = sst [smem:[#allocation10_spill]] %s7452_s17  ;;  %p5529_p7 = scmp.ge.s32.totalorder %s7338_s28, 1 }
   0xc   : > { %s9732_s19 = scalar_select %p7458_p6, 1, 0 }
   0xd   : > { %p390_p8 = scmp.lt.s32.totalorder %s7338_s28, 3 }
   0xe   : > { %9733 = sst [smem:[#allocation11_spill]] %s9732_s19 }
   0xf   : > { %p391_p9 = pnand %p5529_p7, %p390_p8 }
  0x10   : > { %v6624_v0 = vld [vmem:[%s9693_s1 + $0x11c] ss:$20 sps:$4 sm:$0xff] (!%p391_p9)   ;;  %v6626_v1 = vld [vmem:[%s9693_s1 + $0x124] ss:$20 sps:$4 sm:$0xff] (!%p391_p9)   ;;  %v6629_v3 = vld [vmem:[%s9693_s1 + $0x120] ss:$20 sps:$4 sm:$0xff] (!%p391_p9)  }
  0x11   : > { %394 = sbr.rel (%p391_p9) target bundleno = 1825 (0x721), region = 72  ;;  %742 = vmatprep.subr.bf16.mxu0 (!%p391_p9), %v6624_v0  ;;  %v6628_v2 = vld [vmem:[%s9693_s1 + $0x118] ss:$20 sps:$4 sm:$0xff] (!%p391_p9)   ;;  %v9722_v4 = vmov (!%p391_p9), 0   ;;  %793 = vmatprep.subr.bf16.mxu1 (!%p391_p9), %v6626_v1  ;;  %v6634_v7 = vld [vmem:[%s9693_s1 + $0x140] ss:$20 sps:$4 sm:$0xff] (!%p391_p9)  }
  0x12   : > { %774 = vmatprep.mubr.bf16.mxu0 (!%p391_p9), %v9722_v4  ;;  %v6630_v5 = vld [vmem:[%s9693_s1 + $0x144] ss:$20 sps:$4 sm:$0xff] (!%p391_p9)   ;;  %825 = vmatprep.mubr.bf16.mxu1 (!%p391_p9), %v9722_v4  ;;  %v6632_v6 = vld [vmem:[%s9693_s1 + $0x14c] ss:$20 sps:$4 sm:$0xff] (!%p391_p9)   ;;  %v6635_v8 = vld [vmem:[%s9693_s1 + $0x148] ss:$20 sps:$4 sm:$0xff] (!%p391_p9)  }
  0x13   : > { %743 = vmatpush1.bf16.msra.mxu0 (!%p391_p9), %v6628_v2  ;;  %794 = vmatpush1.bf16.msra.mxu1 (!%p391_p9), %v6629_v3  ;;  %v6636_v9 = vld [vmem:[%s9693_s1 + $0x16c] ss:$20 sps:$4 sm:$0xff] (!%p391_p9)   ;;  %p433_p10 = scmp.lt.s32.totalorder (!%p391_p9), %s7437_s29, 1  ;;  %v6638_v10 = vld [vmem:[%s9693_s1 + $0x174] ss:$20 sps:$4 sm:$0xff] (!%p391_p9)   ;;  %vm723_vm0 = vcmask (!%p391_p9), 1043456  }
  0x14   : > { %744 = vmatprep.subr.bf16.mxu0 (!%p391_p9), %v6630_v5  ;;  %795 = vmatprep.subr.bf16.mxu1 (!%p391_p9), %v6632_v6  ;;  %v6640_v11 = vld [vmem:[%s9693_s1 + $0x168] ss:$20 sps:$4 sm:$0xff] (!%p391_p9)   ;;  %v6641_v12 = vld [vmem:[%s9693_s1 + $0x170] ss:$20 sps:$4 sm:$0xff] (!%p391_p9)   ;;  %v6647_v16 = vld [vmem:[%s9693_s1 + $0x198] ss:$20 sps:$4 sm:$0xff] (!%p391_p9)  }
  0x15   : > { %v6642_v13 = vld [vmem:[%s9693_s1 + $0x194] ss:$20 sps:$4 sm:$0xff] (!%p391_p9)   ;;  %v6644_v14 = vld [vmem:[%s9693_s1 + $0x19c] ss:$20 sps:$4 sm:$0xff] (!%p391_p9)   ;;  %v6650_v18 = vld [vmem:[%s9693_s1 + $0x1c4] ss:$20 sps:$4 sm:$0xff] (!%p391_p9)  }
  0x16   : > { %v6646_v15 = vld [vmem:[%s9693_s1 + $0x190] ss:$20 sps:$4 sm:$0xff] (!%p391_p9)   ;;  %vm724_vm1 = vcmask (!%p391_p9), 1044480   ;;  %v6652_v19 = vld [vmem:[%s9693_s1 + $0x1b8] ss:$20 sps:$4 sm:$0xff] (!%p391_p9)   ;;  %v7341_v20 = vmov (!%p391_p9), 65535  }
  0x17   : > { %745 = vmatpush1.bf16.msra.mxu0 (!%p391_p9), %v6634_v7  ;;  %796 = vmatpush1.bf16.msra.mxu1 (!%p391_p9), %v6635_v8  ;;  %v6648_v17 = vld [vmem:[%s9693_s1 + $0x1bc] ss:$20 sps:$4 sm:$0xff] (!%p391_p9)   ;;  %v725_v21 = vsel (!%p391_p9), %vm723_vm0, 4294967295, %v7341_v20  ;;  %v6653_v22 = vld [vmem:[%s9693_s1 + $0x1c0] ss:$20 sps:$4 sm:$0xff] (!%p391_p9)   ;;  %vm716_vm2 = vcmask (!%p391_p9), 859136  }
  0x18   : > { %746 = vmatprep.subr.bf16.mxu0 %v6636_v9  ;;  %797 = vmatprep.subr.bf16.mxu1 %v6638_v10  ;;  %s7510_s27 = scalar_select %p433_p10, %s7437_s29, 1  ;;  %v6654_v23 = vld [vmem:[%s9693_s1 + $0x1e4] ss:$20 sps:$4 sm:$0xff]   ;;  %v6656_v24 = vld [vmem:[%s9693_s1 + $0x1ec] ss:$20 sps:$4 sm:$0xff]   ;;  %v7546_v28 = vsel %vm724_vm1, %v725_v21, 0 }
  0x19   : > { %v6660_v25 = vld [vmem:[%s9693_s1 + $0x20c] ss:$20 sps:$4 sm:$0x1f]   ;;  %v6662_v26 = vld [vmem:[%s9693_s1 + $0x214] ss:$20 sps:$4 sm:$0x1f]  }
  0x1a   : > { %s6579_s22 = smul.u32 24, %s7510_s27  ;;  %v6658_v27 = vld [vmem:[%s9693_s1 + $0x1e0] ss:$20 sps:$4 sm:$0xff]   ;;  %v6664_v29 = vld [vmem:[%s9693_s1 + $0x208] ss:$20 sps:$4 sm:$0x1f]   ;;  %v731_v32 = vand.u32 %v6660_v25, %v7546_v28  ;;  %v737_v33 = vand.u32 %v6662_v26, %v7546_v28 }
  0x1b   : > { %747 = vmatpush1.bf16.msra.mxu0 %v6640_v11  ;;  %798 = vmatpush1.bf16.msra.mxu1 %v6641_v12  ;;  %v6659_v30 = vld [vmem:[%s9693_s1 + $0x1e8] ss:$20 sps:$4 sm:$0xff]   ;;  %v6665_v31 = vld [vmem:[%s9693_s1 + $0x210] ss:$20 sps:$4 sm:$0x1f]   ;;  %v728_v34 = vand.u32 %v6664_v29, %v7546_v28  ;;  %vm1844_vm4 = vcmask 1041409  }
  0x1c   : > { %748 = vmatprep.subr.bf16.mxu0 %v6642_v13  ;;  %799 = vmatprep.subr.bf16.mxu1 %v6644_v14  ;;  %s7560_s21 = scalar_lea.vmem %s9692_s0, %s6579_s22  ;;  %v734_v35 = vand.u32 %v6665_v31, %v7546_v28  ;;  %v6666_v36 = vld [vmem:[%s9693_s1 + $0x128] ss:$20 sps:$4 sm:$0xff]   ;;  %v6669_v37 = vld [vmem:[%s9693_s1 + $0xc] ss:$20 sps:$4 sm:$0xff]   ;;  %v6671_v40 = vld [vmem:[%s9693_s1 + $0x150] ss:$20 sps:$4 sm:$0xff]  }
  0x1d   : > { %v6667_v38 = vld [vmem:[%s9693_s1 + $0x8] ss:$20 sps:$4 sm:$0xff]   ;;  %v6670_v39 = vld [vmem:[%s7560_s21 + $0xc] sm:$0xff]   ;;  %v6687_v45 = vld [vmem:[%s7560_s21 + $0x14] ss:$0 sps:$4 sm:$0x11]  }
  0x1e   : > { %v6674_v41 = vld [vmem:[%s9693_s1 + $0x34] ss:$20 sps:$4 sm:$0xff]   ;;  %v6672_v42 = vld [vmem:[%s9693_s1 + $0x30] ss:$20 sps:$4 sm:$0xff]   ;;  %v6675_v43 = vld [vmem:[%s9693_s1 + $0x178] ss:$20 sps:$4 sm:$0xff]  }
  0x1f   : > { %749 = vmatpush1.bf16.msra.mxu0 %v6646_v15  ;;  %800 = vmatpush1.bf16.msra.mxu1 %v6647_v16  ;;  %v6678_v44 = vld [vmem:[%s9693_s1 + $0x5c] ss:$20 sps:$4 sm:$0xff]   ;;  %v6676_v46 = vld [vmem:[%s9693_s1 + $0x58] ss:$20 sps:$4 sm:$0xff]   ;;  %v6679_v47 = vld [vmem:[%s9693_s1 + $0x1a0] ss:$20 sps:$4 sm:$0xff]  }
  0x20   : > { %750 = vmatprep.subr.bf16.mxu0 %v6648_v17  ;;  %801 = vmatprep.subr.bf16.mxu1 %v6650_v18  ;;  %v6682_v48 = vld [vmem:[%s9693_s1 + $0x84] ss:$20 sps:$4 sm:$0xff]   ;;  %v6680_v49 = vld [vmem:[%s9693_s1 + $0x80] ss:$20 sps:$4 sm:$0xff]   ;;  %v6683_v50 = vld [vmem:[%s9693_s1 + $0x1c8] ss:$20 sps:$4 sm:$0xff]  }
  0x21   : > { %v6686_v51 = vld [vmem:[%s9693_s1 + $0xac] ss:$20 sps:$4 sm:$0xff]   ;;  %v6684_v52 = vld [vmem:[%s9693_s1 + $0xa8] ss:$20 sps:$4 sm:$0xff]   ;;  %v6688_v53 = vld [vmem:[%s9693_s1 + $0x1f0] ss:$20 sps:$4 sm:$0xff]  }
  0x22   : > { %v6692_v54 = vld [vmem:[%s9693_s1 + $0x218] ss:$20 sps:$4 sm:$0x1f]   ;;  %v6691_v55 = vld [vmem:[%s9693_s1 + $0xd4] ss:$20 sps:$4 sm:$0xff]   ;;  %v7649_v0 = vld [vmem:[%s7560_s21] sm:$0xff]  }
  0x23   : > { %751 = vmatpush1.bf16.msra.mxu0 %v6652_v19  ;;  %802 = vmatpush1.bf16.msra.mxu1 %v6653_v22  ;;  %v6695_v56 = vld [vmem:[%s9693_s1 + $0xfc] ss:$20 sps:$4 sm:$0x1f]   ;;  %v6693_v58 = vld [vmem:[%s9693_s1 + $0xf8] ss:$20 sps:$4 sm:$0x1f]   ;;  %v740_v59 = vand.u32 %v6692_v54, %v7546_v28 }
  0x24   : > { %752 = vmatprep.subr.bf16.mxu0 %v6654_v23  ;;  %803 = vmatprep.subr.bf16.mxu1 %v6656_v24  ;;  %v6689_v57 = vld [vmem:[%s9693_s1 + $0xd0] ss:$20 sps:$4 sm:$0xff]   ;;  %v1093_v60 = vand.u32 %v6695_v56, %v7546_v28  ;;  %v1090_v61 = vand.u32 %v6693_v58, %v7546_v28  ;;  %v6696_v1 = vld [vmem:[%s9693_s1] ss:$20 sps:$4 sm:$0xff]   ;;  %v6704_v3 = vld [vmem:[%s9693_s1 + $0x38] ss:$20 sps:$4 sm:$0xff]  }
  0x25   : > { %v6698_v62 = vld [vmem:[%s9693_s1 + $0x4] ss:$20 sps:$4 sm:$0xff]   ;;  %v6703_v2 = vld [vmem:[%s9693_s1 + $0x2c] ss:$20 sps:$4 sm:$0xff]   ;;  %v6701_v5 = vld [vmem:[%s9693_s1 + $0x28] ss:$20 sps:$4 sm:$0xff]  }
  0x26   : > { %v6699_v63 = vld [vmem:[%s9693_s1 + $0x10] ss:$20 sps:$4 sm:$0xff]   ;;  %v6707_v6 = vld [vmem:[%s9693_s1 + $0x54] ss:$20 sps:$4 sm:$0xff]   ;;  %v6709_v12 = vld [vmem:[%s9693_s1 + $0x78] ss:$20 sps:$4 sm:$0xff]  }
  0x27   : > { %753 = vmatpush1.bf16.msra.mxu0 %v6658_v27  ;;  %804 = vmatpush1.bf16.msra.mxu1 %v6659_v30  ;;  %v6708_v7 = vld [vmem:[%s9693_s1 + $0x60] ss:$20 sps:$4 sm:$0xff]   ;;  %v7675_v8 = vld [vmem:[%s7560_s21 + $0x8] ss:$0 sps:$4 sm:$0x11]   ;;  %vm2020_vm6 = vcmask 1043459  }
  0x28   : > { %754 = vmatprep.subr.bf16.mxu0 %v731_v32  ;;  %805 = vmatprep.subr.bf16.mxu1 %v737_v33  ;;  %v6705_v9 = vld [vmem:[%s9693_s1 + $0x50] ss:$20 sps:$4 sm:$0xff]   ;;  %v6712_v11 = vld [vmem:[%s9693_s1 + $0x88] ss:$20 sps:$4 sm:$0xff]   ;;  %v6714_v15 = vld [vmem:[%s9693_s1 + $0xa0] ss:$20 sps:$4 sm:$0xff]  }
  0x29   : > { %v6711_v10 = vld [vmem:[%s9693_s1 + $0x7c] ss:$20 sps:$4 sm:$0xff]   ;;  %v6716_v13 = vld [vmem:[%s9693_s1 + $0xa4] ss:$20 sps:$4 sm:$0xff]   ;;  %v6720_v16 = vld [vmem:[%s9693_s1 + $0xcc] ss:$20 sps:$4 sm:$0xff]  }
  0x2a   : > { %v6717_v14 = vld [vmem:[%s9693_s1 + $0xb0] ss:$20 sps:$4 sm:$0xff]   ;;  %v6721_v17 = vld [vmem:[%s9693_s1 + $0xd8] ss:$20 sps:$4 sm:$0xff]   ;;  %v6718_v20 = vld [vmem:[%s9693_s1 + $0xc8] ss:$20 sps:$4 sm:$0xff]  }
  0x2b   : > { %755 = vmatpush1.bf16.msra.mxu0 %v728_v34  ;;  %806 = vmatpush1.bf16.msra.mxu1 %v734_v35  ;;  %v6724_v18 = vld [vmem:[%s9693_s1 + $0xf4] ss:$20 sps:$4 sm:$0x1f]   ;;  %v6722_v21 = vld [vmem:[%s9693_s1 + $0xf0] ss:$20 sps:$4 sm:$0x1f]  }
  0x2c   : > { %6461 = vmatprep.subr.bf16.mxu0 %v6666_v36  ;;  %1149 = vmatprep.subr.bf16.mxu1 %v6669_v37  ;;  %v6725_v19 = vld [vmem:[%s9693_s1 + $0x100] ss:$20 sps:$4 sm:$0x1f]   ;;  %v1087_v22 = vand.u32 %v6724_v18, %v7546_v28  ;;  %vm9715_vm3 = vsmask.f32 1280  ;;  %v1084_v24 = vand.u32 %v6722_v21, %v7546_v28  ;;  %v1294_v54 = vshll.u32 %v7649_v0, 16 }
  0x2d   : > { %v1096_v23 = vand.u32 %v6725_v19, %v7546_v28  ;;  %vm9712_vm5 = vsmask.f32 7942  ;;  %vm9714_vm7 = vsmask.f32 3328  ;;  %v6728_v25 = vld [vmem:[%s9693_s1 + $0x234] ss:$20 sps:$4 sm:$0xff]   ;;  %vm7734_vm8 = vmand %vm1844_vm4, %vm9715_vm3 }
  0x2e   : > { %5613 = vmatmul.mubr.msk.bf16.vlgmr.msra.gmra.mrb[0].mxu0 %vm716_vm2, %v6670_v39  ;;  %5615 = vmatmul.mubr.msk.bf16.vlgmr.msra.gmra.mrb[0].mxu1 %vm716_vm2, %v6670_v39  ;;  %v6731_v26 = vld [vmem:[%s9693_s1 + $0x23c] ss:$20 sps:$4 sm:$0xff]   ;;  %vm9710_vm9 = vsmask.f32 7950  ;;  %v6729_v30 = vld [vmem:[%s9693_s1 + $0x238] ss:$20 sps:$4 sm:$0xff]   ;;  %vm7749_vm10 = vmand %vm1844_vm4, %vm9712_vm5 }
  0x2f   : > { %6462 = vmatpush3.bf16.msra.mxu0 %v6666_v36  ;;  %1150 = vmatpush1.bf16.msra.mxu1 %v6667_v38  ;;  %v6726_v27 = vld [vmem:[%s9693_s1 + $0x230] ss:$20 sps:$4 sm:$0xff]   ;;  %v6732_v34 = vld [vmem:[%s9693_s1 + $0x258] ss:$20 sps:$4 sm:$0xff]   ;;  %v6735_v35 = vld [vmem:[%s9693_s1 + $0x260] ss:$20 sps:$4 sm:$0xff]  }
  0x30   : > { %6463 = vmatprep.subr.bf16.mxu0 %v6671_v40  ;;  %1151 = vmatprep.subr.bf16.mxu1 %v6674_v41  ;;  %v6734_v31 = vld [vmem:[%s9693_s1 + $0x25c] ss:$20 sps:$4 sm:$0xff]   ;;  %v6737_v32 = vld [vmem:[%s9693_s1 + $0x264] ss:$20 sps:$4 sm:$0xff]   ;;  %vm7761_vm11 = vmand %vm2020_vm6, %vm9714_vm7  ;;  %vm1291_vm15 = vsmask.f32 7424 }
  0x31   : > { %784 = vmatprep.mubr.bf16.mxu0 %v9722_v4  ;;  %835 = vmatprep.mubr.bf16.mxu1 %v9722_v4  ;;  %v6740_v37 = vld [vmem:[%s9693_s1 + $0x284] ss:$20 sps:$4 sm:$0xff]   ;;  %v6743_v38 = vld [vmem:[%s9693_s1 + $0x28c] ss:$20 sps:$4 sm:$0xff]   ;;  %vm7777_vm12 = vmand %vm2020_vm6, %vm9710_vm9  ;;  %vm9713_vm0 = vsmask.f32 7938 }
  0x32   : > { %v6741_v41 = vld [vmem:[%s9693_s1 + $0x288] ss:$20 sps:$4 sm:$0xff]   ;;  %v6759_v56 = vld [vmem:[%s9693_s1 + $0x300] ss:$20 sps:$4 sm:$0xff]   ;;  %v6781_v19 = vld [vmem:[%s9695_s3 + $0x230] ss:$8 sps:$4 sm:$0xff]  }
  0x33   : > { %6464 = vmatpush3.bf16.msra.mxu0 %v6671_v40  ;;  %1152 = vmatpush1.bf16.msra.mxu1 %v6672_v42  ;;  %v6738_v40 = vld [vmem:[%s9693_s1 + $0x280] ss:$20 sps:$4 sm:$0xff]   ;;  %v6765_v58 = vld [vmem:[%s9693_s1 + $0x328] ss:$20 sps:$4 sm:$0x1f]   ;;  %vm9716_vm6 = vcmask 1042434  }
  0x34   : > { %6465 = vmatprep.subr.bf16.mxu0 %v6675_v43  ;;  %1153 = vmatprep.subr.bf16.mxu1 %v6678_v44  ;;  %v6746_v42 = vld [vmem:[%s9693_s1 + $0x2ac] ss:$20 sps:$4 sm:$0xff]   ;;  %v6744_v44 = vld [vmem:[%s9693_s1 + $0x2a8] ss:$20 sps:$4 sm:$0xff]   ;;  %v6784_v21 = vld [vmem:[%s9695_s3 + $0x330] ss:$8 sps:$4 sm:$0xff]  }
  0x35   : > { %v6783_v18 = vld [vmem:[%s9695_s3 + $0x234] ss:$8 sps:$4 sm:$0xff]   ;;  %vm9711_vm1 = vsmask.f32 7946  ;;  %vm1847_vm13 = vcmask 1045509   ;;  %vm9750_vm7 = vcmask 1047559  }
  0x36   : > { %5614 = vmatmul.mubr.msk.bf16.gmra.mrb[4].mxu0 %vm716_vm2, %v6687_v45  ;;  %5616 = vmatmul.mubr.msk.bf16.gmra.mrb[4].mxu1 %vm716_vm2, %v6687_v45  ;;  %vm8078_vm14 = vmand %vm9716_vm6, %vm9711_vm1  ;;  %vm1848_vm9 = vsmask.f32 5376  ;;  %vm1891_vm1 = vsmask.f32 7958  ;;  %vm9720_vm3 = vsmask.f32 256 }
  0x37   : > { %6466 = vmatpush3.bf16.msra.mxu0 %v6675_v43  ;;  %1154 = vmatpush1.bf16.msra.mxu1 %v6676_v46  ;;  %v6749_v43 = vld [vmem:[%s9693_s1 + $0x2b4] ss:$20 sps:$4 sm:$0xff]   ;;  %vm1753_vm6 = vcmask 1044484   ;;  %vm9721_vm5 = vsmask.f32 2304  ;;  %s431_s23 = sand.u32 1, %s7330_s26  }
  0x38   : > { %6467 = vmatprep.subr.bf16.mxu0 %v6679_v47  ;;  %1155 = vmatprep.subr.bf16.mxu1 %v6682_v48  ;;  %v6752_v46 = vld [vmem:[%s9693_s1 + $0x2d4] ss:$20 sps:$4 sm:$0xff]   ;;  %v6750_v48 = vld [vmem:[%s9693_s1 + $0x2d0] ss:$20 sps:$4 sm:$0xff]   ;;  %s6387_s19 = sshll.u32 %s7437_s29, 4  ;;  %s432_s24 = scalar_lea.vmem [#allocation5], %s431_s23 }
  0x39   : > { %6475 = vmatprep.mubr.msk.bf16.mxu0 %vm716_vm2, %v6670_v39  ;;  %1181 = vmatprep.mubr.bf16.mxu1 %v9722_v4  ;;  %v7197_v33 = vld [vmem:[%s9697_s5 + $0x214] ss:$8 sps:$4 sm:$0xff]   ;;  %s5471_s30 = sshll.u32 %s432_s24, 4  ;;  %s9650_s21 = scalar_lea.hbm %s9705_s13, %s6387_s19  ;;  %s9652_s30 = int_to_ptr.vmem [resolvable:$true] %s5471_s30 }
  0x3a   : > { %s5459_s20 = scalar_lea.sflag [#allocation6], %s431_s23  ;;  %s7276_s27 = scalar_lea.vmem %s9652_s30, 16 }
  0x3b   : > { %6468 = vmatpush3.bf16.msra.mxu0 %v6679_v47  ;;  %1156 = vmatpush1.bf16.msra.mxu1 %v6680_v49  ;;  %v6755_v47 = vld [vmem:[%s9693_s1 + $0x2dc] ss:$20 sps:$4 sm:$0xff]   ;;  %v6753_v49 = vld [vmem:[%s9693_s1 + $0x2d8] ss:$20 sps:$4 sm:$0xff]   ;;  %p7277_p11 = scmp.ne.s32.totalorder %s9652_s30, %s7276_s27  ;;  %s7345_s29 = smov [#allocation5]  }
  0x3c   : > { %6469 = vmatprep.subr.bf16.mxu0 %v6683_v50  ;;  %1157 = vmatprep.subr.bf16.mxu1 %v6686_v51  ;;  %v6761_v51 = vld [vmem:[%s9693_s1 + $0x304] ss:$20 sps:$4 sm:$0xff]   ;;  %s7280_s17 = sshll.u32 %s7345_s29, 4  ;;  %s7281_s17 = int_to_ptr.vmem [resolvable:$false] %s7280_s17 }
  0x3d   : > { %p7278_p12 = pnand %p7277_p11, %p7454_p5  ;;  %s7282_s22 = scalar_lea.vmem %s7281_s17, 32 }
  0x3e   : > { %p7283_p0 = scmp.lt.s32.totalorder %s9652_s30, %s7281_s17  ;;  %p7284_p1 = scmp.lt.s32.totalorder %s7282_s22, %s7276_s27 }
  0x3f   : > { %6470 = vmatpush3.bf16.msra.mxu0 %v6683_v50  ;;  %1158 = vmatpush1.bf16.msra.mxu1 %v6684_v52  ;;  %v6758_v50 = vld [vmem:[%s9693_s1 + $0x2fc] ss:$20 sps:$4 sm:$0xff]   ;;  %v6764_v52 = vld [vmem:[%s9693_s1 + $0x324] ss:$20 sps:$4 sm:$0x1f]   ;;  %p7279_p13 = pneg %p7278_p12 }
  0x40   : > { %6471 = vmatprep.subr.bf16.mxu0 %v6688_v53  ;;  %1159 = vmatprep.subr.bf16.mxu1 %v6691_v55  ;;  %v6756_v55 = vld [vmem:[%s9693_s1 + $0x2f8] ss:$20 sps:$4 sm:$0xff]   ;;  %p7285_p2 = por %p7284_p1, %p7283_p0 }
  0x42   : > { %p7286_p3 = pnand %p7285_p2, %p7279_p13 }
  0x43   : > { %6472 = vmatpush3.bf16.msra.mxu0 %v6688_v53  ;;  %1160 = vmatpush1.bf16.msra.mxu1 %v6689_v57  ;;  %v6767_v53 = vld [vmem:[%s9693_s1 + $0x32c] ss:$20 sps:$4 sm:$0x1f]  }
  0x44   : > { %6473 = vmatprep.subr.bf16.mxu0 %v740_v59  ;;  %1161 = vmatprep.subr.bf16.mxu1 %v1093_v60  ;;  %v6762_v57 = vld [vmem:[%s9693_s1 + $0x320] ss:$20 sps:$4 sm:$0x1f]   ;;  %v1296_v60 = vrot.slane %v1294_v54, 1 }
  0x45   : > { %v6826_v54 = vld [vmem:[%s9695_s3 + $0x3a0] ss:$8 sps:$4 sm:$0xff]  }
  0x47   : > { %6474 = vmatpush3.bf16.msra.mxu0 %v740_v59  ;;  %1162 = vmatpush1.bf16.msra.mxu1 %v1090_v61  ;;  %v1292_v59 = vshrl.u32 %v7649_v0, 16  ;;  %v1298_v61 = vshll.u32 %v7675_v8, 16 }
  0x48   : > { %1098 = vmatprep.subr.bf16.mxu0 %v6698_v62  ;;  %6479 = vmatprep.subr.bf16.mxu1 %v6699_v63  ;;  %v1491_v62 = vand.u32 %v6764_v52, %v7546_v28  ;;  %v6823_v52 = vld [vmem:[%s9695_s3 + $0x2a0] ss:$8 sps:$4 sm:$0xff]  }
  0x4a   : > { %6476 = vmatmul.mubr.msk.bf16.vlgmr.msra.gmra.mrb[8].mxu0 %vm716_vm2, %v6687_v45  ;;  %5658 = vmatmul.mubr.msk.bf16.vlgmr.msra.gmra.mrb[0].mxu1 %vm716_vm2, %v7649_v0  ;;  %v6747_v45 = vld [vmem:[%s9693_s1 + $0x2b0] ss:$20 sps:$4 sm:$0xff]  }
  0x4b   : > { %1099 = vmatpush1.bf16.msra.mxu0 %v6696_v1  ;;  %6480 = vmatpush3.bf16.msra.mxu1 %v6699_v63  ;;  %v1497_v63 = vand.u32 %v6767_v53, %v7546_v28  ;;  %v6768_v1 = vld [vmem:[%s9693_s1 + $0x240] ss:$20 sps:$4 sm:$0xff]   ;;  %v6828_v53 = vld [vmem:[%s9695_s3 + $0x3a4] ss:$8 sps:$4 sm:$0xff]  }
  0x4c   : > { %1100 = vmatprep.subr.bf16.mxu0 %v6703_v2  ;;  %6481 = vmatprep.subr.bf16.mxu1 %v6704_v3  ;;  %v1488_v2 = vand.u32 %v6762_v57, %v7546_v28  ;;  %v6834_v57 = vld [vmem:[%s9695_s3 + $0x3b4] ss:$8 sps:$4 sm:$0xff]  }
  0x4d   : > { %1191 = vmatprep.mubr.bf16.mxu1 %v9722_v4  ;;  %1130 = vmatprep.mubr.bf16.mxu0 %v9722_v4 }
  0x4f   : > { %1101 = vmatpush1.bf16.msra.mxu0 %v6701_v5  ;;  %6482 = vmatpush3.bf16.msra.mxu1 %v6704_v3  ;;  %v1494_v3 = vand.u32 %v6765_v58, %v7546_v28  ;;  %v1300_v5 = vrot.slane %v1298_v61, 1  ;;  %v6832_v58 = vld [vmem:[%s9695_s3 + $0x3b0] ss:$8 sps:$4 sm:$0xff]   ;;  %v6838_v61 = vld [vmem:[%s9695_s3 + $0x3c0] ss:$8 sps:$4 sm:$0xff]  }
  0x50   : > { %1102 = vmatprep.subr.bf16.mxu0 %v6707_v6  ;;  %6483 = vmatprep.subr.bf16.mxu1 %v6708_v7  ;;  %v6769_v6 = vld [vmem:[%s9693_s1 + $0x268] ss:$20 sps:$4 sm:$0xff]  }
  0x52   : > { %5659 = vmatmul.mubr.msk.bf16.gmra.mrb[8].mxu1 %vm716_vm2, %v7675_v8 }
  0x53   : > { %1103 = vmatpush1.bf16.msra.mxu0 %v6705_v9  ;;  %6484 = vmatpush3.bf16.msra.mxu1 %v6708_v7  ;;  %v6770_v9 = vld [vmem:[%s9693_s1 + $0x290] ss:$20 sps:$4 sm:$0xff]  }
  0x54   : > { %1104 = vmatprep.subr.bf16.mxu0 %v6711_v10  ;;  %6485 = vmatprep.subr.bf16.mxu1 %v6712_v11  ;;  %v1302_v10 = vshrl.u32 %v7675_v8, 16 }
  0x55   : > { %6493 = vmatprep.mubr.msk.bf16.mxu1 %vm716_vm2, %v7649_v0 }
  0x57   : > { %1105 = vmatpush1.bf16.msra.mxu0 %v6709_v12  ;;  %6486 = vmatpush3.bf16.msra.mxu1 %v6712_v11  ;;  %v6771_v11 = vld [vmem:[%s9693_s1 + $0x2b8] ss:$20 sps:$4 sm:$0xff]   ;;  %v6772_v12 = vld [vmem:[%s9693_s1 + $0x2e0] ss:$20 sps:$4 sm:$0xff]  }
  0x58   : > { %1106 = vmatprep.subr.bf16.mxu0 %v6716_v13  ;;  %6487 = vmatprep.subr.bf16.mxu1 %v6717_v14  ;;  %v6774_v13 = vld [vmem:[%s9693_s1 + $0x330] ss:$20 sps:$4 sm:$0x1f]  }
  0x5b   : > { %1107 = vmatpush1.bf16.msra.mxu0 %v6714_v15  ;;  %6488 = vmatpush3.bf16.msra.mxu1 %v6717_v14  ;;  %v1500_v14 = vand.u32 %v6774_v13, %v7546_v28  ;;  %v6775_v15 = vld [vmem:[%s9695_s3 + $0x220] ss:$8 sps:$4 sm:$0xff]   ;;  %v6780_v28 = vld [vmem:[%s9695_s3 + $0x324] ss:$8 sps:$4 sm:$0xff]  }
  0x5c   : > { %1108 = vmatprep.subr.bf16.mxu0 %v6720_v16  ;;  %6489 = vmatprep.subr.bf16.mxu1 %v6721_v17  ;;  %v6777_v16 = vld [vmem:[%s9695_s3 + $0x224] ss:$8 sps:$4 sm:$0xff]  }
  0x5d   : > { %v6864_v13 = vld [vmem:[%s9695_s3 + $0x404] ss:$8 sps:$4 sm:$0xff]  }
  0x5f   : > { %1109 = vmatpush1.bf16.msra.mxu0 %v6718_v20  ;;  %6490 = vmatpush3.bf16.msra.mxu1 %v6721_v17  ;;  %v6778_v17 = vld [vmem:[%s9695_s3 + $0x320] ss:$8 sps:$4 sm:$0xff]   ;;  %v6786_v20 = vld [vmem:[%s9695_s3 + $0x334] ss:$8 sps:$4 sm:$0xff]  }
  0x60   : > { %1110 = vmatprep.subr.bf16.mxu0 %v1087_v22  ;;  %6491 = vmatprep.subr.bf16.mxu1 %v1096_v23  ;;  %v6787_v22 = vld [vmem:[%s9695_s3 + $0x240] ss:$8 sps:$4 sm:$0xff]  }
  0x63   : > { %1111 = vmatpush1.bf16.msra.mxu0 %v1084_v24  ;;  %6492 = vmatpush3.bf16.msra.mxu1 %v1096_v23  ;;  %v6789_v23 = vld [vmem:[%s9695_s3 + $0x244] ss:$8 sps:$4 sm:$0xff]   ;;  %v6790_v24 = vld [vmem:[%s9695_s3 + $0x340] ss:$8 sps:$4 sm:$0xff]  }
  0x64   : > { %1502 = vmatprep.subr.bf16.mxu0 %v6728_v25  ;;  %1553 = vmatprep.subr.bf16.mxu1 %v6731_v26  ;;  %v6792_v25 = vld [vmem:[%s9695_s3 + $0x344] ss:$8 sps:$4 sm:$0xff]   ;;  %v6795_v26 = vld [vmem:[%s9695_s3 + $0x254] ss:$8 sps:$4 sm:$0xff]  }
  0x66   : > { %5656 = vmatmul.mubr.msk.bf16.vlgmr.msra.gmra.mrb[0].mxu0 %vm716_vm2, %v7649_v0  ;;  %6494 = vmatmul.mubr.msk.bf16.vlgmr.msra.gmra.mrb[12].mxu1 %vm716_vm2, %v7675_v8  ;;  %v1297_v0 = vor.u32 %v1296_v60, %v1292_v59  ;;  %v6837_v59 = vld [vmem:[%s9695_s3 + $0x2c4] ss:$8 sps:$4 sm:$0xff]   ;;  %v6835_v60 = vld [vmem:[%s9695_s3 + $0x2c0] ss:$8 sps:$4 sm:$0xff]  }
  0x67   : > { %1503 = vmatpush1.bf16.msra.mxu0 %v6726_v27  ;;  %1554 = vmatpush1.bf16.msra.mxu1 %v6729_v30  ;;  %v6793_v27 = vld [vmem:[%s9695_s3 + $0x250] ss:$8 sps:$4 sm:$0xff]   ;;  %v6798_v30 = vld [vmem:[%s9695_s3 + $0x354] ss:$8 sps:$4 sm:$0xff]  }
  0x68   : > { %1504 = vmatprep.subr.bf16.mxu0 %v6734_v31  ;;  %1555 = vmatprep.subr.bf16.mxu1 %v6737_v32  ;;  %v1301_v7 = vsel %vm1291_vm15, %v1297_v0, %v1300_v5  ;;  %v6796_v31 = vld [vmem:[%s9695_s3 + $0x350] ss:$8 sps:$4 sm:$0xff]   ;;  %v6801_v32 = vld [vmem:[%s9695_s3 + $0x264] ss:$8 sps:$4 sm:$0xff]   ;;  %v6847_v5 = vld [vmem:[%s9695_s3 + $0x2e0] ss:$8 sps:$4 sm:$0xff]  }
  0x69   : > { %1140 = vmatprep.mubr.bf16.mxu0 %v9722_v4  ;;  %1585 = vmatprep.mubr.bf16.mxu1 %v9722_v4  ;;  %v6849_v0 = vld [vmem:[%s9695_s3 + $0x2e4] ss:$8 sps:$4 sm:$0xff]  }
  0x6b   : > { %1505 = vmatpush1.bf16.msra.mxu0 %v6732_v34  ;;  %1556 = vmatpush1.bf16.msra.mxu1 %v6735_v35  ;;  %v6799_v34 = vld [vmem:[%s9695_s3 + $0x260] ss:$8 sps:$4 sm:$0xff]   ;;  %v6804_v35 = vld [vmem:[%s9695_s3 + $0x364] ss:$8 sps:$4 sm:$0xff]  }
  0x6c   : > { %1506 = vmatprep.subr.bf16.mxu0 %v6740_v37  ;;  %1557 = vmatprep.subr.bf16.mxu1 %v6743_v38  ;;  %v6802_v37 = vld [vmem:[%s9695_s3 + $0x360] ss:$8 sps:$4 sm:$0xff]   ;;  %v6807_v38 = vld [vmem:[%s9695_s3 + $0x274] ss:$8 sps:$4 sm:$0xff]  }
  0x6e   : > { %5657 = vmatmul.mubr.msk.bf16.gmra.mrb[12].mxu0 %vm716_vm2, %v7675_v8  ;;  %v6773_v8 = vld [vmem:[%s9693_s1 + $0x308] ss:$20 sps:$4 sm:$0xff]  }
  0x6f   : > { %1507 = vmatpush1.bf16.msra.mxu0 %v6738_v40  ;;  %1558 = vmatpush1.bf16.msra.mxu1 %v6741_v41  ;;  %v6810_v40 = vld [vmem:[%s9695_s3 + $0x374] ss:$8 sps:$4 sm:$0xff]   ;;  %v6805_v41 = vld [vmem:[%s9695_s3 + $0x270] ss:$8 sps:$4 sm:$0xff]  }
  0x70   : > { %1508 = vmatprep.subr.bf16.mxu0 %v6746_v42  ;;  %1559 = vmatprep.subr.bf16.mxu1 %v6749_v43  ;;  %v6808_v42 = vld [vmem:[%s9695_s3 + $0x370] ss:$8 sps:$4 sm:$0xff]   ;;  %v6813_v43 = vld [vmem:[%s9695_s3 + $0x284] ss:$8 sps:$4 sm:$0xff]  }
  0x71   : > { %1534 = vmatprep.mubr.bf16.mxu0 %v9722_v4 }
  0x73   : > { %1509 = vmatpush1.bf16.msra.mxu0 %v6744_v44  ;;  %1560 = vmatpush1.bf16.msra.mxu1 %v6747_v45  ;;  %v6816_v44 = vld [vmem:[%s9695_s3 + $0x384] ss:$8 sps:$4 sm:$0xff]   ;;  %v6811_v45 = vld [vmem:[%s9695_s3 + $0x280] ss:$8 sps:$4 sm:$0xff]  }
  0x74   : > { %1510 = vmatprep.subr.bf16.mxu0 %v6752_v46  ;;  %1561 = vmatprep.subr.bf16.mxu1 %v6755_v47  ;;  %v6814_v46 = vld [vmem:[%s9695_s3 + $0x380] ss:$8 sps:$4 sm:$0xff]   ;;  %v6819_v47 = vld [vmem:[%s9695_s3 + $0x294] ss:$8 sps:$4 sm:$0xff]  }
  0x77   : > { %1511 = vmatpush1.bf16.msra.mxu0 %v6750_v48  ;;  %1562 = vmatpush1.bf16.msra.mxu1 %v6753_v49  ;;  %v6822_v48 = vld [vmem:[%s9695_s3 + $0x394] ss:$8 sps:$4 sm:$0xff]   ;;  %v6817_v49 = vld [vmem:[%s9695_s3 + $0x290] ss:$8 sps:$4 sm:$0xff]  }
  0x78   : > { %1512 = vmatprep.subr.bf16.mxu0 %v6758_v50  ;;  %1563 = vmatprep.subr.bf16.mxu1 %v6761_v51  ;;  %v6820_v50 = vld [vmem:[%s9695_s3 + $0x390] ss:$8 sps:$4 sm:$0xff]   ;;  %v6825_v51 = vld [vmem:[%s9695_s3 + $0x2a4] ss:$8 sps:$4 sm:$0xff]  }
  0x7b   : > { %1513 = vmatpush1.bf16.msra.mxu0 %v6756_v55  ;;  %1564 = vmatpush1.bf16.msra.mxu1 %v6759_v56  ;;  %v6831_v55 = vld [vmem:[%s9695_s3 + $0x2b4] ss:$8 sps:$4 sm:$0xff]   ;;  %v6829_v56 = vld [vmem:[%s9695_s3 + $0x2b0] ss:$8 sps:$4 sm:$0xff]  }
  0x7c   : > { %1514 = vmatprep.subr.bf16.mxu0 %v1491_v62  ;;  %1565 = vmatprep.subr.bf16.mxu1 %v1497_v63  ;;  %v6840_v62 = vld [vmem:[%s9695_s3 + $0x3c4] ss:$8 sps:$4 sm:$0xff]   ;;  %v6843_v63 = vld [vmem:[%s9695_s3 + $0x2d4] ss:$8 sps:$4 sm:$0xff]  }
  0x7f   : > { %1515 = vmatpush1.bf16.msra.mxu0 %v1488_v2  ;;  %1566 = vmatpush1.bf16.msra.mxu1 %v1494_v3  ;;  %v6846_v2 = vld [vmem:[%s9695_s3 + $0x3d4] ss:$8 sps:$4 sm:$0xff]   ;;  %v6844_v3 = vld [vmem:[%s9695_s3 + $0x3d0] ss:$8 sps:$4 sm:$0xff]  }
  0x80   : > { %6497 = vmatprep.subr.bf16.mxu0 %v6768_v1  ;;  %2611 = vmatprep.subr.bf16.mxu1 %v6777_v16  ;;  %v7264_v16 = vld [vmem:[%s9699_s7 + $0x8] sm:$0xff]  }
  0x82   : > { %5739 = vmatmul.mubr.msk.bf16.vlgmr.msra.gmra.mrb[0].mxu0 %vm716_vm2, %v1301_v7  ;;  %5741 = vmatmul.mubr.msk.bf16.vlgmr.msra.gmra.mrb[0].mxu1 %vm716_vm2, %v1301_v7 }
  0x83   : > { %6498 = vmatpush3.bf16.msra.mxu0 %v6768_v1  ;;  %1544 = vmatprep.mubr.bf16.mxu0 %v9722_v4  ;;  %v6841_v1 = vld [vmem:[%s9695_s3 + $0x2d0] ss:$8 sps:$4 sm:$0xff]  }
  0x84   : > { %6499 = vmatprep.subr.bf16.mxu0 %v6769_v6  ;;  %1595 = vmatprep.mubr.bf16.mxu1 %v9722_v4  ;;  %v1790_v4 = vld [vmem:[#allocation2 + $0x30] sm:$0x11] }
  0x85   : > { %2612 = vmatpush1.bf16.msra.mxu1 %v6775_v15  ;;  %v6862_v15 = vld [vmem:[%s9695_s3 + $0x400] ss:$8 sps:$4 sm:$0xff]  }
  0x86   : > { %2613 = vmatprep.subr.bf16.mxu1 %v6783_v18  ;;  %v6865_v18 = vld [vmem:[%s9695_s3 + $0x310] ss:$8 sps:$4 sm:$0xff]  }
  0x87   : > { %6500 = vmatpush3.bf16.msra.mxu0 %v6769_v6  ;;  %v6850_v6 = vld [vmem:[%s9695_s3 + $0x3e0] ss:$8 sps:$4 sm:$0xff]  }
  0x88   : > { %6501 = vmatprep.subr.bf16.mxu0 %v6770_v9 }
  0x89   : > { %2614 = vmatpush1.bf16.msra.mxu1 %v6781_v19  ;;  %v6870_v19 = vld [vmem:[%s9695_s3 + $0x414] ss:$8 sps:$4 sm:$0xff]  }
  0x8a   : > { %5740 = vmatmul.mubr.msk.bf16.gmra.mrb[16].mxu0 %vm716_vm2, %v1302_v10  ;;  %5742 = vmatmul.mubr.msk.bf16.gmra.mrb[16].mxu1 %vm716_vm2, %v1302_v10 }
  0x8b   : > { %6502 = vmatpush3.bf16.msra.mxu0 %v6770_v9  ;;  %6511 = vmatprep.mubr.msk.bf16.mxu0 %vm716_vm2, %v1301_v7  ;;  %v6852_v7 = vld [vmem:[%s9695_s3 + $0x3e4] ss:$8 sps:$4 sm:$0xff]   ;;  %v6853_v9 = vld [vmem:[%s9695_s3 + $0x2f0] ss:$8 sps:$4 sm:$0xff]  }
  0x8c   : > { %6503 = vmatprep.subr.bf16.mxu0 %v6771_v11  ;;  %2615 = vmatprep.subr.bf16.mxu1 %v6789_v23 }
  0x8d   : > { %2616 = vmatpush1.bf16.msra.mxu1 %v6787_v22 }
  0x8e   : > { %2617 = vmatprep.subr.bf16.mxu1 %v6795_v26 }
  0x8f   : > { %6504 = vmatpush3.bf16.msra.mxu0 %v6771_v11  ;;  %v6858_v11 = vld [vmem:[%s9695_s3 + $0x3f4] ss:$8 sps:$4 sm:$0xff]  }
  0x90   : > { %6505 = vmatprep.subr.bf16.mxu0 %v6772_v12 }
  0x91   : > { %2618 = vmatpush1.bf16.msra.mxu1 %v6793_v27 }
  0x92   : > { %2619 = vmatprep.subr.bf16.mxu1 %v6801_v32  ;;  %v6897_v32 = vld [vmem:[%s9695_s3 + $0x424] ss:$8 sps:$4 sm:$0xff]  }
  0x93   : > { %6506 = vmatpush3.bf16.msra.mxu0 %v6772_v12  ;;  %v6861_v12 = vld [vmem:[%s9695_s3 + $0x304] ss:$8 sps:$4 sm:$0xff]  }
  0x94   : > { %6507 = vmatprep.subr.bf16.mxu0 %v6773_v8 }
  0x95   : > { %2620 = vmatpush1.bf16.msra.mxu1 %v6799_v34 }
  0x96   : > { %2621 = vmatprep.subr.bf16.mxu1 %v6807_v38 }
  0x97   : > { %6508 = vmatpush3.bf16.msra.mxu0 %v6773_v8  ;;  %v6856_v8 = vld [vmem:[%s9695_s3 + $0x3f0] ss:$8 sps:$4 sm:$0xff]  }
  0x98   : > { %6509 = vmatprep.subr.bf16.mxu0 %v1500_v14 }
  0x99   : > { %2622 = vmatpush1.bf16.msra.mxu1 %v6805_v41 }
  0x9a   : > { %2623 = vmatprep.subr.bf16.mxu1 %v6813_v43 }
  0x9b   : > { %6510 = vmatpush3.bf16.msra.mxu0 %v1500_v14  ;;  %v6859_v14 = vld [vmem:[%s9695_s3 + $0x300] ss:$8 sps:$4 sm:$0xff]  }
  0x9c   : > { %2652 = vmatprep.subr.bf16.mxu0 %v6780_v28  ;;  %v9744_v28 = vmov 0 }
  0x9d   : > { %2624 = vmatpush1.bf16.msra.mxu1 %v6811_v45  ;;  %v9745_v28 = vsel %vm8078_vm14, 4294967295, %v9744_v28  ;;  %vm8170_vm14 = vmand %vm9750_vm7, %vm1291_vm15  ;;  %vm1940_vm7 = vsmask.f32 6400 }
  0x9e   : > { %6512 = vmatmul.mubr.msk.bf16.vlgmr.msra.gmra.mrb[20].mxu0 %vm716_vm2, %v1302_v10  ;;  %2625 = vmatprep.subr.bf16.mxu1 %v6819_v47  ;;  %v6855_v10 = vld [vmem:[%s9695_s3 + $0x2f4] ss:$8 sps:$4 sm:$0xff]   ;;  %vm9717_vm2 = vcmask 1040384  }
  0x9f   : > { %2653 = vmatpush1.bf16.msra.mxu0 %v6778_v17  ;;  %vm8069_vm4 = vmand %vm9717_vm2, %vm9713_vm0  ;;  %v6867_v17 = vld [vmem:[%s9695_s3 + $0x314] ss:$8 sps:$4 sm:$0xff]  }
  0xa0   : > { %2654 = vmatprep.subr.bf16.mxu0 %v6786_v20  ;;  %v6868_v20 = vld [vmem:[%s9695_s3 + $0x410] ss:$8 sps:$4 sm:$0xff]   ;;  %vm8154_vm0 = vmand %vm1847_vm13, %vm1848_vm9  ;;  %vm1754_vm9 = vsmask.f32 4352 }
  0xa1   : > { %2626 = vmatpush1.bf16.msra.mxu1 %v6817_v49  ;;  %vm8164_vm2 = vmand %vm1847_vm13, %vm1891_vm1 }
  0xa2   : > { %2627 = vmatprep.subr.bf16.mxu1 %v6825_v51  ;;  %vm8180_vm13 = vmor %vm8154_vm0, %vm7734_vm8 }
  0xa3   : > { %2655 = vmatpush1.bf16.msra.mxu0 %v6784_v21  ;;  %v6877_v21 = vld [vmem:[%s9695_s3 + $0x4] ss:$8 sps:$4 sm:$0xff]   ;;  %vm8194_vm15 = vmor %vm8164_vm2, %vm7749_vm10 }
  0xa4   : > { %2656 = vmatprep.subr.bf16.mxu0 %v6792_v25  ;;  %vm8207_vm1 = vmor %vm8170_vm14, %vm7761_vm11  ;;  %vm9759_vm14 = vcmask 1040384  }
  0xa5   : > { %2628 = vmatpush1.bf16.msra.mxu1 %v6823_v52  ;;  %vm8228_vm0 = vmand %vm9759_vm14, %vm9720_vm3 }
  0xa6   : > { %2629 = vmatprep.subr.bf16.mxu1 %v6831_v55  ;;  %vm8241_vm14 = vmand %vm1753_vm6, %vm1754_vm9  ;;  %vm9767_vm9 = vcmask 1046534  }
  0xa7   : > { %2657 = vmatpush1.bf16.msra.mxu0 %v6790_v24  ;;  %vm8263_vm2 = vmand %vm9767_vm9, %vm1940_vm7  ;;  %vm9772_vm7 = vsmask.f32 7966  ;;  %vm9773_vm9 = vcmask 1047559  }
  0xa8   : > { %2658 = vmatprep.subr.bf16.mxu0 %v6798_v30 }
  0xa9   : > { %2630 = vmatpush1.bf16.msra.mxu1 %v6829_v56 }
  0xaa   : > { %2631 = vmatprep.subr.bf16.mxu1 %v6837_v59  ;;  %v1669_v59 = vlaneseq }
  0xab   : > { %2659 = vmatpush1.bf16.msra.mxu0 %v6796_v31 }
  0xac   : > { %2660 = vmatprep.subr.bf16.mxu0 %v6804_v35 }
  0xad   : > { %2632 = vmatpush1.bf16.msra.mxu1 %v6835_v60  ;;  %v8115_v60 = vshrl.u32 %v1669_v59, 7 }
  0xae   : > { %2633 = vmatprep.subr.bf16.mxu1 %v6843_v63  ;;  %v8124_v63 = vld [vmem:[%s9694_s2] sm:$0x1f] }
  0xaf   : > { %2661 = vmatpush1.bf16.msra.mxu0 %v6802_v37 }
  0xb0   : > { %2662 = vmatprep.subr.bf16.mxu0 %v6810_v40 }
  0xb1   : > { %2634 = vmatpush1.bf16.msra.mxu1 %v6841_v1  ;;  %v8127_v1 = vsub.s32 1, %v8115_v60 }
  0xb2   : > { %2635 = vmatprep.subr.bf16.mxu1 %v6849_v0 }
  0xb3   : > { %2663 = vmatpush1.bf16.msra.mxu0 %v6808_v42 }
  0xb4   : > { %2664 = vmatprep.subr.bf16.mxu0 %v6816_v44 }
  0xb5   : > { %2636 = vmatpush1.bf16.msra.mxu1 %v6847_v5  ;;  %v8139_v5 = vrot.slane %v8124_v63, %v8127_v1 }
  0xb6   : > { %2637 = vmatprep.subr.bf16.mxu1 %v6855_v10 }
  0xb7   : > { %2665 = vmatpush1.bf16.msra.mxu0 %v6814_v46 }
  0xb8   : > { %2666 = vmatprep.subr.bf16.mxu0 %v6822_v48 }
  0xb9   : > { %2638 = vmatpush1.bf16.msra.mxu1 %v6853_v9 }
  0xba   : > { %2639 = vmatprep.subr.bf16.mxu1 %v6861_v12 }
  0xbb   : > { %2667 = vmatpush1.bf16.msra.mxu0 %v6820_v50 }
  0xbc   : > { %2668 = vmatprep.subr.bf16.mxu0 %v6828_v53 }
  0xbd   : > { %2640 = vmatpush1.bf16.msra.mxu1 %v6859_v14 }
  0xbe   : > { %2641 = vmatprep.subr.bf16.mxu1 %v6867_v17 }
  0xbf   : > { %2669 = vmatpush1.bf16.msra.mxu0 %v6826_v54 }
  0xc0   : > { %2670 = vmatprep.subr.bf16.mxu0 %v6834_v57 }
  0xc1   : > { %2642 = vmatpush1.bf16.msra.mxu1 %v6865_v18 }
  0xc2   : > { %3094 = vmatprep.subr.bf16.mxu1 %v6877_v21 }
  0xc3   : > { %2671 = vmatpush1.bf16.msra.mxu0 %v6832_v58 }
  0xc4   : > { %2672 = vmatprep.subr.bf16.mxu0 %v6840_v62  ;;  %v1679_v62 = vsub.s32 2, %v8115_v60 }
  0xc6   : > { %v8135_v0 = vrot.slane %v8124_v63, %v1679_v62 }
  0xc7   : > { %2673 = vmatpush1.bf16.msra.mxu0 %v6838_v61  ;;  %v8118_v61 = vsub.s32 0, %v8115_v60 }
  0xc8   : > { %2674 = vmatprep.subr.bf16.mxu0 %v6846_v2  ;;  %v1683_v2 = vsub.s32 3, %v8115_v60 }
  0xcb   : > { %2675 = vmatpush1.bf16.msra.mxu0 %v6844_v3  ;;  %v8132_v3 = vrot.slane %v8124_v63, %v8118_v61 }
  0xcc   : > { %2676 = vmatprep.subr.bf16.mxu0 %v6852_v7 }
  0xcf   : > { %2677 = vmatpush1.bf16.msra.mxu0 %v6850_v6  ;;  %v8142_v6 = vrot.slane %v8124_v63, %v1683_v2 }
  0xd0   : > { %2678 = vmatprep.subr.bf16.mxu0 %v6858_v11 }
  0xd3   : > { %2679 = vmatpush1.bf16.msra.mxu0 %v6856_v8 }
  0xd4   : > { %2680 = vmatprep.subr.bf16.mxu0 %v6864_v13 }
  0xd7   : > { %2681 = vmatpush1.bf16.msra.mxu0 %v6862_v15 }
  0xd8   : > { %2682 = vmatprep.subr.bf16.mxu0 %v6870_v19 }
  0xdb   : > { %2683 = vmatpush1.bf16.msra.mxu0 %v6868_v20 }
  0xdc   : > { %2693 = vmatprep.subr.bf16.mxu0 %v6897_v32 }
 0x109   : > { %v786_v22 = vpop.f32.mrb[4].mxu0  ;;  %v837_v23 = vpop.f32.mrb[4].mxu1 }
 0x10a   : > { %v788_v24 = vpop.f32.mrb[5].mxu0  ;;  %v839_v25 = vpop.f32.mrb[5].mxu1 }
 0x10b   : > { %v790_v26 = vpop.f32.mrb[6].mxu0  ;;  %v841_v27 = vpop.f32.mrb[6].mxu1 }
 0x10c   : > { %v791_v30 = vpop.f32.mrb[7].mxu0  ;;  %v842_v31 = vpop.f32.mrb[7].mxu1 }
 0x11d   : > { %v6477_v34 = vpop.f32.mrb[8].mxu0 }
 0x11e   : > { %v878_v35 = vpop.f32.mrb[9].mxu0 }
 0x11f   : > { %v6478_v37 = vpop.f32.mrb[10].mxu0 }
 0x120   : > { %v881_v38 = vpop.f32.mrb[11].mxu0  ;;  %v1871_v37 = vld [vmem:[#allocation2 + $0x28] sm:$0x22] }
 0x125   : > { %v1193_v40 = vpop.f32.mrb[8].mxu1 }
 0x126   : > { %v8101_v41 = vadd.f32 %v1193_v40, %v837_v23  ;;  %v1195_v42 = vpop.f32.mrb[9].mxu1 }
 0x127   : > { %v8103_v43 = vadd.f32 %v1195_v42, %v839_v25  ;;  %v1197_v44 = vpop.f32.mrb[10].mxu1 }
 0x128   : > { %v1198_v45 = vpop.f32.mrb[11].mxu1 }
 0x139   : > { %v6495_v46 = vpop.f32.mrb[12].mxu1 }
 0x13a   : > { %v8105_v47 = vadd.f32 %v6495_v46, %v6477_v34  ;;  %v1234_v48 = vpop.f32.mrb[13].mxu1  ;;  %v1854_v46 = vld [vmem:[#allocation2 + $0x8] sm:$0x22]  ;;  %v2043_v34 = vld [vmem:[#allocation2 + $0x28] sm:$0x88] }
 0x13b   : > { %v8107_v49 = vadd.f32 %v1234_v48, %v878_v35  ;;  %v6496_v50 = vpop.f32.mrb[14].mxu1  ;;  %v1851_v35 = vld [vmem:[#allocation2] sm:$0x22]  ;;  %v1874_v48 = vld [vmem:[#allocation2 + $0x30] sm:$0x22] }
 0x13c   : > { %v1237_v51 = vpop.f32.mrb[15].mxu1 }
 0x13d   : > { %v8109_v52 = vadd.f32 %v1237_v51, %v881_v38 }
 0x141   : > { %v1142_v53 = vpop.f32.mrb[12].mxu0 }
 0x142   : > { %v8111_v54 = vadd.f32 %v1142_v53, %v786_v22  ;;  %v1144_v55 = vpop.f32.mrb[13].mxu0 }
 0x143   : > { %v8113_v56 = vadd.f32 %v1144_v55, %v788_v24  ;;  %v1146_v57 = vpop.f32.mrb[14].mxu0 }
 0x144   : > { %v1147_v58 = vpop.f32.mrb[15].mxu0 }
 0x155   : > { %v1536_v7 = vpop.f32.mrb[0].mxu0  ;;  %v1587_v9 = vpop.f32.mrb[0].mxu1 }
 0x156   : > { %v1694_v10 = vadd.f32 %v8132_v3, %v1536_v7  ;;  %v1696_v11 = vadd.f32 %v8135_v0, %v1587_v9  ;;  %v1538_v12 = vpop.f32.mrb[1].mxu0  ;;  %v1589_v8 = vpop.f32.mrb[1].mxu1 }
 0x157   : > { %v1695_v13 = vadd.f32 %v8139_v5, %v1538_v12  ;;  %v1697_v14 = vadd.f32 %v8142_v6, %v1589_v8  ;;  %v1540_v15 = vpop.f32.mrb[2].mxu0  ;;  %v1591_v17 = vpop.f32.mrb[2].mxu1 }
 0x158   : > { %v1709_v18 = vmax.f32 %v1694_v10, 0.0  ;;  %v1711_v19 = vmax.f32 %v1696_v11, 0.0  ;;  %v1699_v20 = vadd.f32 %v8132_v3, %v1540_v15  ;;  %v1701_v21 = vadd.f32 %v8135_v0, %v1591_v17  ;;  %v1542_v22 = vpop.f32.mrb[3].mxu0  ;;  %v1593_v23 = vpop.f32.mrb[3].mxu1 }
 0x159   : > { %v1710_v24 = vmax.f32 %v1695_v13, 0.0  ;;  %v1712_v25 = vmax.f32 %v1697_v14, 0.0  ;;  %v1700_v26 = vadd.f32 %v8139_v5, %v1542_v22  ;;  %v1702_v27 = vadd.f32 %v8142_v6, %v1593_v23 }
 0x15a   : > { %v1714_v38 = vmax.f32 %v1699_v20, 0.0  ;;  %v1716_v40 = vmax.f32 %v1701_v21, 0.0 }
 0x15b   : > { %v8158_v31 = vpack.c.bf16 %v1710_v24, %v1709_v18  ;;  %v8160_v32 = vpack.c.bf16 %v1712_v25, %v1711_v19  ;;  %v1715_v50 = vmax.f32 %v1700_v26, 0.0  ;;  %v1717_v51 = vmax.f32 %v1702_v27, 0.0  ;;  %v2026_v24 = vld [vmem:[#allocation2] sm:$0x88] }
 0x15d   : > { %v1769_v44 = vshrl.u32 %v8158_v31, 16  ;;  %v1826_v45 = vrot.slane %v8158_v31, 5  ;;  %v1546_v53 = vpop.f32.mrb[16].mxu0  ;;  %v1597_v55 = vpop.f32.mrb[16].mxu1  ;;  %v1774_v58 = vshrl.u32 %v8160_v32, 16  ;;  %v1828_v59 = vrot.slane %v8160_v32, 5 }
 0x15e   : > { %v8186_v62 = vpop.f32.mrb[17].mxu0  ;;  %v8188_v2 = vpop.f32.mrb[17].mxu1  ;;  %v1796_v14 = vshll.u32 %v8158_v31, 16  ;;  %v9725_v15 = vshll.u32 %v8160_v32, 16  ;;  %v8222_v23 = vpack.c.bf16 %v1715_v50, %v1714_v38  ;;  %v8224_v25 = vpack.c.bf16 %v1717_v51, %v1716_v40  ;;  %v2046_v50 = vld [vmem:[#allocation2 + $0x30] sm:$0x88] }
 0x15f   : > { %v8198_v9 = vrot.slane %v1826_v45, 4  ;;  %v5754_v10 = vrot.slane %v1769_v44, 9  ;;  %v1550_v11 = vpop.f32.mrb[18].mxu0  ;;  %v1601_v8 = vpop.f32.mrb[18].mxu1  ;;  %v8213_v17 = vrot.slane %v1828_v59, 4  ;;  %v5755_v18 = vrot.slane %v1774_v58, 9 }
 0x160   : > { %v1551_v19 = vpop.f32.mrb[19].mxu0  ;;  %v1602_v20 = vpop.f32.mrb[19].mxu1  ;;  %v1664_v38 = vadd.f32 %v1597_v55, %v8101_v41  ;;  %v5760_v42 = vrot.slane %v8158_v31, 10  ;;  %v5761_v45 = vrot.slane %v8160_v32, 10  ;;  %v5757_v51 = vrot.slane %v1796_v14, 10 }
 0x161   : > { %v1852_v21 = vsel %vm8180_vm13, %v8198_v9, %v1851_v35  ;;  %v1872_v22 = vsel %vm8180_vm13, %v5754_v10, %v1871_v37  ;;  %v1855_v27 = vsel %vm8180_vm13, %v8213_v17, %v1854_v46  ;;  %v1875_v30 = vsel %vm8180_vm13, %v5755_v18, %v1874_v48  ;;  %v2029_v35 = vld [vmem:[#allocation2 + $0x8] sm:$0x88]  ;;  %v1760_v59 = vld [vmem:[#allocation2 + $0x8] sm:$0x11] }
 0x162   : > { %1853 = vst [vmem:[#allocation2] sm:$0x22] %v1852_v21  ;;  %1873 = vst [vmem:[#allocation2 + $0x28] sm:$0x22] %v1872_v22  ;;  %v1662_v37 = vadd.f32 %v1546_v53, %v8111_v54  ;;  %v1955_v46 = vshrl.u32 %v8222_v23, 16  ;;  %v9724_v48 = vrot.slane %v8222_v23, 7 }
 0x163   : > { %1856 = vst [vmem:[#allocation2 + $0x8] sm:$0x22] %v1855_v27  ;;  %1876 = vst [vmem:[#allocation2 + $0x30] sm:$0x22] %v1875_v30  ;;  %v1757_v54 = vld [vmem:[#allocation2] sm:$0x11] }
 0x164   : > { %vm9764_vm13 = vcmask 1042434   ;;  %v5758_v53 = vrot.slane %v9725_v15, 10  ;;  %v1959_v55 = vshrl.u32 %v8224_v25, 16  ;;  %v2006_v57 = vrot.slane %v8224_v25, 7  ;;  %v1787_v21 = vld [vmem:[#allocation2 + $0x28] sm:$0x11] }
 0x165   : > { %vm8251_vm3 = vmand %vm9764_vm13, %vm9721_vm5  ;;  %v1930_v11 = vrot.slane %v8222_v23, 6  ;;  %v2027_v8 = vsel %vm8207_vm1, %v9724_v48, %v2026_v24  ;;  %v2037_v18 = vrot.slane %v1955_v46, 7  ;;  %v1931_v19 = vrot.slane %v8224_v25, 6 }
 0x166   : > { %vm8277_vm13 = vmor %vm8241_vm14, %vm8228_vm0  ;;  %v1957_v27 = vrot.slane %v1955_v46, 6  ;;  %2028 = vst [vmem:[#allocation2] sm:$0x88] %v2027_v8  ;;  %v1961_v24 = vrot.slane %v1959_v55, 6  ;;  %v2030_v30 = vsel %vm8207_vm1, %v2006_v57, %v2029_v35  ;;  %v2038_v40 = vrot.slane %v1959_v55, 7 }
 0x167   : > { %vm8283_vm5 = vmand %vm9773_vm9, %vm9772_vm7  ;;  %v2044_v48 = vsel %vm8207_vm1, %v2037_v18, %v2043_v34  ;;  %2031 = vst [vmem:[#allocation2 + $0x8] sm:$0x88] %v2030_v30  ;;  %v1704_v12 = vadd.f32 %v8132_v3, %v1662_v37  ;;  %v8295_v15 = vadd.f32 %v8135_v0, %v1664_v38  ;;  %v1663_v46 = vadd.f32 %v8186_v62, %v8113_v56  ;;  %v1943_v55 = vld [vmem:[#allocation2] sm:$0x44]  ;;  %v1946_v62 = vld [vmem:[#allocation2 + $0x8] sm:$0x44] }
 0x168   : > { %vm8303_vm14 = vmor %vm8263_vm2, %vm8251_vm3  ;;  %2045 = vst [vmem:[#allocation2 + $0x28] sm:$0x88] %v2044_v48  ;;  %v2047_v34 = vsel %vm8207_vm1, %v2038_v40, %v2046_v50  ;;  %v1758_v3 = vsel %vm8277_vm13, %v8158_v31, %v1757_v54  ;;  %v1761_v56 = vsel %vm8277_vm13, %v8160_v32, %v1760_v59  ;;  %v1788_v0 = vsel %vm8277_vm13, %v1769_v44, %v1787_v21  ;;  %v1969_v37 = vld [vmem:[#allocation2 + $0x28] sm:$0x44]  ;;  %v1972_v38 = vld [vmem:[#allocation2 + $0x30] sm:$0x44] }
 0x169   : > { %v1894_v48 = vld [vmem:[#allocation2] sm:$0x22]  ;;  %v1913_v10 = vld [vmem:[#allocation2 + $0x28] sm:$0x22]  ;;  %v1978_v13 = vshll.u32 %v8222_v23, 16  ;;  %v1719_v50 = vmax.f32 %v1704_v12, 0.0  ;;  %v1705_v54 = vadd.f32 %v8139_v5, %v1663_v46  ;;  %v1791_v59 = vsel %vm8277_vm13, %v1774_v58, %v1790_v4  ;;  %vm8329_vm1 = vmor %vm8283_vm5, %vm7777_vm12 }
 0x16a   : > { %2048 = vst [vmem:[#allocation2 + $0x30] sm:$0x88] %v2047_v34  ;;  %1759 = vst [vmem:[#allocation2] sm:$0x11] %v1758_v3  ;;  %v1895_v12 = vsel %vm8194_vm15, %v5757_v51, %v1894_v48  ;;  %v1914_v5 = vsel %vm8194_vm15, %v5760_v42, %v1913_v10  ;;  %v1897_v8 = vld [vmem:[#allocation2 + $0x8] sm:$0x22]  ;;  %v1665_v4 = vadd.f32 %v8188_v2, %v8103_v43 }
 0x16b   : > { %1762 = vst [vmem:[#allocation2 + $0x8] sm:$0x11] %v1761_v56  ;;  %1789 = vst [vmem:[#allocation2 + $0x28] sm:$0x11] %v1788_v0  ;;  %v1916_v18 = vld [vmem:[#allocation2 + $0x30] sm:$0x22]  ;;  %v1944_v58 = vsel %vm8303_vm14, %v1930_v11, %v1943_v55  ;;  %v1898_v21 = vsel %vm8194_vm15, %v5758_v53, %v1897_v8  ;;  %v1947_v43 = vsel %vm8303_vm14, %v1931_v19, %v1946_v62 }
 0x16c   : > { %1792 = vst [vmem:[#allocation2 + $0x30] sm:$0x11] %v1791_v59  ;;  %1896 = vst [vmem:[#allocation2] sm:$0x22] %v1895_v12  ;;  %v1917_v51 = vsel %vm8194_vm15, %v5761_v45, %v1916_v18  ;;  %v1720_v22 = vmax.f32 %v1705_v54, 0.0  ;;  %v1721_v2 = vmax.f32 %v8295_v15, 0.0  ;;  %v1707_v53 = vadd.f32 %v8142_v6, %v1665_v4 }
 0x16d   : > { %1915 = vst [vmem:[#allocation2 + $0x28] sm:$0x22] %v1914_v5  ;;  %vm9780_vm5 = vsmask.f32 7954  ;;  %1945 = vst [vmem:[#allocation2] sm:$0x44] %v1944_v58  ;;  %v1970_v7 = vsel %vm8303_vm14, %v1957_v27, %v1969_v37  ;;  %v1973_v45 = vsel %vm8303_vm14, %v1961_v24, %v1972_v38  ;;  %vm9790_vm14 = vnez %v9745_v28 }
 0x16e   : > { %vm8347_vm2 = vmand %vm1753_vm6, %vm9780_vm5  ;;  %1899 = vst [vmem:[#allocation2 + $0x8] sm:$0x22] %v1898_v21  ;;  %v2098_v11 = vld [vmem:[#allocation2 + $0x14] sm:$0x11]  ;;  %vm9783_vm6 = vsmask.f32 7962  ;;  %v6396_v15 = vpack.c.bf16 %v1720_v22, %v1719_v50 }
 0x16f   : > { %1918 = vst [vmem:[#allocation2 + $0x30] sm:$0x22] %v1917_v51  ;;  %1948 = vst [vmem:[#allocation2 + $0x8] sm:$0x44] %v1947_v43  ;;  %vm9784_vm15 = vcmask 1046534   ;;  %v1981_v40 = vshll.u32 %v8224_v25, 16 }
 0x170   : > { %vm8361_vm7 = vmand %vm9784_vm15, %vm9783_vm6  ;;  %v2060_v19 = vld [vmem:[#allocation2] sm:$0x88]  ;;  %1971 = vst [vmem:[#allocation2 + $0x28] sm:$0x44] %v1970_v7  ;;  %v5751_v6 = vrot.slane %v1796_v14, 9  ;;  %v1722_v24 = vmax.f32 %v1707_v53, 0.0  ;;  %v2099_v56 = vsel %vm8277_vm13, %v6396_v15, %v2098_v11 }
 0x171   : > { %1974 = vst [vmem:[#allocation2 + $0x30] sm:$0x44] %v1973_v45  ;;  %v2061_v27 = vsel %vm8329_vm1, %v1978_v13, %v2060_v19  ;;  %v2063_v46 = vld [vmem:[#allocation2 + $0x8] sm:$0x88]  ;;  %vm8374_vm9 = vmor %vm8347_vm2, %vm8069_vm4  ;;  %v9789_v55 = vshll.u32 %v8160_v32, 16  ;;  %v1980_v3 = vrot.slane %v1978_v13, 7 }
 0x172   : > { %2062 = vst [vmem:[#allocation2] sm:$0x88] %v2061_v27  ;;  %v2073_v31 = vld [vmem:[#allocation2 + $0x28] sm:$0x88]  ;;  %v2064_v14 = vsel %vm8329_vm1, %v1981_v40, %v2063_v46  ;;  %v2101_v0 = vld [vmem:[#allocation2 + $0x1c] sm:$0x11]  ;;  %vm8388_vm5 = vmor %vm8361_vm7, %vm9790_vm14  ;;  %v6397_v38 = vpack.c.bf16 %v1722_v24, %v1721_v2 }
 0x173   : > { %v5752_v34 = vrot.slane %v9789_v55, 9  ;;  %v2074_v32 = vsel %vm8329_vm1, %v8222_v23, %v2073_v31  ;;  %2065 = vst [vmem:[#allocation2 + $0x8] sm:$0x88] %v2064_v14  ;;  %v2076_v37 = vld [vmem:[#allocation2 + $0x30] sm:$0x88]  ;;  %v9793_v48 = vsub.s32 4, %v8115_v60 }
 0x174   : > { %2100 = vst [vmem:[#allocation2 + $0x14] sm:$0x11] %v2099_v56  ;;  %v1816_v13 = vld [vmem:[#allocation2] sm:$0x11]  ;;  %v1819_v50 = vld [vmem:[#allocation2 + $0x8] sm:$0x11]  ;;  %v2077_v59 = vsel %vm8329_vm1, %v8224_v25, %v2076_v37 }
 0x175   : > { %v1688_v10 = vrot.slane %v8124_v63, %v9793_v48  ;;  %2075 = vst [vmem:[#allocation2 + $0x28] sm:$0x88] %v2074_v32  ;;  %v1983_v54 = vrot.slane %v1981_v40, 7  ;;  %v6513_v12 = vpop.f32.mrb[20].mxu0  ;;  %v1817_v5 = vsel %vm8374_vm9, %v5751_v6, %v1816_v13  ;;  %v1820_v8 = vsel %vm8374_vm9, %v5752_v34, %v1819_v50  ;;  %v1835_v18 = vld [vmem:[#allocation2 + $0x28] sm:$0x11] }
 0x176   : > { %v1838_v4 = vld [vmem:[#allocation2 + $0x30] sm:$0x11]  ;;  %2078 = vst [vmem:[#allocation2 + $0x30] sm:$0x88] %v2077_v59  ;;  %v2102_v63 = vsel %vm8277_vm13, %v6397_v38, %v2101_v0  ;;  %v1666_v58 = vadd.f32 %v6513_v12, %v8105_v47  ;;  %1818 = vst [vmem:[#allocation2] sm:$0x11] %v1817_v5  ;;  %v1836_v44 = vsel %vm8374_vm9, %v8198_v9, %v1835_v18 }
 0x177   : > { %1821 = vst [vmem:[#allocation2 + $0x8] sm:$0x11] %v1820_v8  ;;  %v1839_v21 = vsel %vm8374_vm9, %v8213_v17, %v1838_v4  ;;  %v1995_v51 = vld [vmem:[#allocation2] sm:$0x44]  ;;  %v1638_v22 = vpop.f32.mrb[21].mxu0  ;;  %vm9726_vm13 = vcmask 253952  }
 0x178   : > { %2103 = vst [vmem:[#allocation2 + $0x1c] sm:$0x11] %v2102_v63  ;;  %1837 = vst [vmem:[#allocation2 + $0x28] sm:$0x11] %v1836_v44  ;;  %v1996_v20 = vsel %vm8388_vm5, %v1980_v3, %v1995_v51  ;;  %v1998_v42 = vld [vmem:[#allocation2 + $0x8] sm:$0x44]  ;;  %v1656_v47 = vadd.f32 %v1638_v22, %v8107_v49  ;;  %v1708_v2 = vadd.f32 %v1688_v10, %v1666_v58 }
 0x179   : > { %1840 = vst [vmem:[#allocation2 + $0x30] sm:$0x11] %v1839_v21  ;;  %v6514_v43 = vpop.f32.mrb[22].mxu0  ;;  %1997 = vst [vmem:[#allocation2] sm:$0x44] %v1996_v20  ;;  %v1999_v9 = vsel %vm8388_vm5, %v1983_v54, %v1998_v42  ;;  %v9794_v7 = vrot.slane %v8222_v23, 7 }
 0x17a   : > { %v2011_v11 = vld [vmem:[#allocation2 + $0x28] sm:$0x44]  ;;  %v2014_v17 = vld [vmem:[#allocation2 + $0x30] sm:$0x44]  ;;  %v1641_v53 = vpop.f32.mrb[23].mxu0  ;;  %v1698_v30 = vadd.f32 %v1688_v10, %v1656_v47  ;;  %v1723_v40 = vmax.f32 %v1708_v2, 0.0 }
 0x17b   : > { %2000 = vst [vmem:[#allocation2 + $0x8] sm:$0x44] %v1999_v9  ;;  %v2012_v45 = vsel %vm8388_vm5, %v9794_v7, %v2011_v11  ;;  %v2015_v49 = vsel %vm8388_vm5, %v2006_v57, %v2014_v17  ;;  %v1661_v19 = vadd.f32 %v1641_v53, %v8109_v52  ;;  %vm9795_vm1 = vsmask.f32 256  ;;  %v2104_v23 = vld [vmem:[#allocation2 + $0x24] sm:$0x1] }
 0x17c   : > { %2013 = vst [vmem:[#allocation2 + $0x28] sm:$0x44] %v2012_v45  ;;  %2016 = vst [vmem:[#allocation2 + $0x30] sm:$0x44] %v2015_v49  ;;  %v1713_v6 = vmax.f32 %v1698_v30, 0.0  ;;  %v6398_v46 = vpack.c.bf16 %v1723_v40, %v1723_v40  ;;  %vm9727_vm6 = vcmask 254977  }
 0x17d   : > { %vm8430_vm2 = vmand %vm9726_vm13, %vm9795_vm1  ;;  %v1703_v27 = vadd.f32 %v1688_v10, %v1661_v19  ;;  %v1765_v25 = vld [vmem:[#allocation2 + $0x10] sm:$0x1]  ;;  %vm1949_vm15 = vcmask 256002   ;;  %v1793_v35 = vld [vmem:[#allocation2 + $0x38] sm:$0x1]  ;;  %vm2032_vm7 = vcmask 257027  }
 0x17e   : > { %v8434_v24 = vpack.c.bf16 %v1713_v6, %v1713_v6  ;;  %v2105_v52 = vsel %vm8430_vm2, %v6398_v46, %v2104_v23  ;;  %vm9798_vm9 = vsmask.f32 1280  ;;  %v1859_v14 = vld [vmem:[#allocation2 + $0x10] sm:$0x2]  ;;  %v1877_v56 = vld [vmem:[#allocation2 + $0x38] sm:$0x2] }
 0x17f   : > { %v1718_v57 = vmax.f32 %v1703_v27, 0.0  ;;  %2106 = vst [vmem:[#allocation2 + $0x24] sm:$0x1] %v2105_v52  ;;  %vm8445_vm5 = vmand %vm9727_vm6, %vm9798_vm9  ;;  %vm9801_vm1 = vsmask.f32 2304  ;;  %v9821_v62 = vmov 0  }
 0x180   : > { %v1766_v55 = vsel %vm8430_vm2, %v8434_v24, %v1765_v25  ;;  %v1779_v34 = vshrl.u32 %v8434_v24, 16  ;;  %v1830_v3 = vrot.slane %v8434_v24, 5  ;;  %vm8453_vm13 = vmand %vm1949_vm15, %vm9801_vm1  ;;  %v1951_v48 = vld [vmem:[#allocation2 + $0x10] sm:$0x4]  ;;  %vm9804_vm9 = vsmask.f32 3328 }
 0x181   : > { %1767 = vst [vmem:[#allocation2 + $0x10] sm:$0x1] %v1766_v55  ;;  %v8449_v0 = vpack.c.bf16 %v1718_v57, %v1718_v57  ;;  %vm8463_vm6 = vmand %vm2032_vm7, %vm9804_vm9  ;;  %v1804_v50 = vshll.u32 %v8434_v24, 16  ;;  %v2034_v12 = vld [vmem:[#allocation2 + $0x10] sm:$0x8]  ;;  %v8478_v20 = vld [vmem:[#allocation2] sm:$0xff] }
 0x182   : > { %v1794_v32 = vsel %vm8430_vm2, %v1779_v34, %v1793_v35  ;;  %v8459_v37 = vrot.slane %v1830_v3, 4  ;;  %v5756_v38 = vrot.slane %v1779_v34, 9  ;;  %v1975_v4 = vld [vmem:[#allocation2 + $0x38] sm:$0x4]  ;;  %v2049_v58 = vld [vmem:[#allocation2 + $0x38] sm:$0x8]  ;;  %v5912_v40 = vcombine.high %v8478_v20, %v8478_v20 }
 0x183   : > { %v2178_v10 = vld [vmem:[#allocation2 + $0x28] sm:$0xff]  ;;  %1795 = vst [vmem:[#allocation2 + $0x38] sm:$0x1] %v1794_v32  ;;  %v1932_v54 = vrot.slane %v8449_v0, 6  ;;  %v1963_v59 = vshrl.u32 %v8449_v0, 16  ;;  %v2179_v5 = vld [vmem:[#allocation2 + $0x30] sm:$0xff] }
 0x184   : > { %v1860_v8 = vsel %vm8445_vm5, %v8459_v37, %v1859_v14  ;;  %v1878_v18 = vsel %vm8445_vm5, %v5756_v38, %v1877_v56  ;;  %v2007_v63 = vrot.slane %v8449_v0, 7  ;;  %v5837_v22 = vcombine.low %v2178_v10, %v2178_v10  ;;  %v6875_v11 = vld [vmem:[%s9695_s3] ss:$8 sps:$4 sm:$0xff]   ;;  %v6882_v17 = vld [vmem:[%s9695_s3 + $0x14] ss:$8 sps:$4 sm:$0xff]  }
 0x185   : > { %1861 = vst [vmem:[#allocation2 + $0x10] sm:$0x2] %v1860_v8  ;;  %1879 = vst [vmem:[#allocation2 + $0x38] sm:$0x2] %v1878_v18  ;;  %v1952_v44 = vsel %vm8453_vm13, %v1932_v54, %v1951_v48  ;;  %v1965_v21 = vrot.slane %v1963_v59, 6  ;;  %v2039_v51 = vrot.slane %v1963_v59, 7  ;;  %v5838_v43 = vcombine.high %v2178_v10, %v2178_v10 }
 0x186   : > { %vm9807_vm2 = vsmask.f32 7938  ;;  %vm9808_vm1 = vcmask 253952   ;;  %1953 = vst [vmem:[#allocation2 + $0x10] sm:$0x4] %v1952_v44  ;;  %v2035_v47 = vsel %vm8463_vm6, %v2007_v63, %v2034_v12  ;;  %v5839_v2 = vcombine.low %v2179_v5, %v2179_v5  ;;  %v8582_v44 = vld [vmem:[#allocation2 + $0x8] sm:$0xff] }
 0x187   : > { %vm8482_vm9 = vmand %vm9808_vm1, %vm9807_vm2  ;;  %v5840_v9 = vcombine.high %v2179_v5, %v2179_v5  ;;  %v5753_v53 = vrot.slane %v1804_v50, 9  ;;  %v1976_v7 = vsel %vm8453_vm13, %v1965_v21, %v1975_v4  ;;  %2036 = vst [vmem:[#allocation2 + $0x10] sm:$0x8] %v2035_v47  ;;  %v2050_v45 = vsel %vm8463_vm6, %v2039_v51, %v2049_v58  ;;  %v6895_v49 = vld [vmem:[%s9695_s3 + $0x420] ss:$8 sps:$4 sm:$0xff]   ;;  %2643 = vmatprep.mubr.bf16.mxu1 %v5838_v43 }
 0x188   : > { %v1823_v30 = vld [vmem:[#allocation2 + $0x10] sm:$0x1]  ;;  %1977 = vst [vmem:[#allocation2 + $0x38] sm:$0x4] %v1976_v7  ;;  %v1984_v19 = vshll.u32 %v8449_v0, 16  ;;  %vm9812_vm6 = vcmask 254977   ;;  %2644 = vmatmul.mubr.bf16.vlgmr.msra.gmra.mrb[20].mxu1 %v5837_v22  ;;  %v5914_v42 = vcombine.high %v8582_v44, %v8582_v44 }
 0x189   : > { %2051 = vst [vmem:[#allocation2 + $0x38] sm:$0x8] %v2050_v45  ;;  %2684 = vmatprep.mubr.bf16.mxu0 %v5840_v9  ;;  %v6903_v15 = vld [vmem:[%s9695_s3 + $0x434] ss:$8 sps:$4 sm:$0xff]   ;;  %vm9811_vm13 = vsmask.f32 7942  ;;  %v1824_v6 = vsel %vm8482_vm9, %v5753_v53, %v1823_v30  ;;  %3095 = vmatpush1.bf16.msra.mxu1 %v6875_v11 }
 0x18a   : > { %vm8511_vm5 = vmand %vm9812_vm6, %vm9811_vm13  ;;  %2685 = vmatmul.mubr.bf16.vlgmr.msra.gmra.mrb[24].mxu0 %v5839_v2  ;;  %1825 = vst [vmem:[#allocation2 + $0x10] sm:$0x1] %v1824_v6  ;;  %v1841_v27 = vld [vmem:[#allocation2 + $0x38] sm:$0x1]  ;;  %3126 = vmatprep.mubr.bf16.mxu1 %v5912_v40  ;;  %v6885_v25 = vld [vmem:[%s9695_s3 + $0x24] ss:$8 sps:$4 sm:$0xff]  }
 0x18b   : > { %v6880_v46 = vld [vmem:[%s9695_s3 + $0x10] ss:$8 sps:$4 sm:$0xff]   ;;  %vm9815_vm2 = vsmask.f32 7946  ;;  %v1842_v52 = vsel %vm8482_vm9, %v8459_v37, %v1841_v27  ;;  %v5759_v35 = vrot.slane %v1804_v50, 10  ;;  %v5762_v55 = vrot.slane %v8434_v24, 10  ;;  %3096 = vmatprep.subr.bf16.mxu1 %v6882_v17  ;;  %2694 = vmatpush1.bf16.msra.mxu0 %v6895_v49  ;;  %vm3849_vm9 = vmor %vm8251_vm3, %vm8228_vm0 }
 0x18c   : > { %vm8525_vm1 = vmand %vm1949_vm15, %vm9815_vm2  ;;  %v6901_v34 = vld [vmem:[%s9695_s3 + $0x430] ss:$8 sps:$4 sm:$0xff]   ;;  %v6909_v3 = vld [vmem:[%s9695_s3 + $0x104] ss:$8 sps:$4 sm:$0xff]   ;;  %vm9818_vm15 = vsmask.f32 7950  ;;  %2695 = vmatprep.subr.bf16.mxu0 %v6903_v15  ;;  %2725 = vmatprep.mubr.bf16.mxu0 %v9821_v62 }
 0x18d   : > { %vm8541_vm13 = vmand %vm2032_vm7, %vm9818_vm15  ;;  %1843 = vst [vmem:[#allocation2 + $0x38] sm:$0x1] %v1842_v52  ;;  %v1901_v14 = vld [vmem:[#allocation2 + $0x10] sm:$0x2]  ;;  %v1919_v56 = vld [vmem:[#allocation2 + $0x38] sm:$0x2]  ;;  %3097 = vmatpush1.bf16.msra.mxu1 %v6880_v46 }
 0x18e   : > { %v1986_v24 = vrot.slane %v1984_v19, 7  ;;  %v1902_v32 = vsel %vm8511_vm5, %v5759_v35, %v1901_v14  ;;  %v1920_v37 = vsel %vm8511_vm5, %v5762_v55, %v1919_v56  ;;  %v2002_v38 = vld [vmem:[#allocation2 + $0x10] sm:$0x4]  ;;  %v2067_v10 = vld [vmem:[#allocation2 + $0x10] sm:$0x8]  ;;  %3098 = vmatprep.subr.bf16.mxu1 %v6885_v25  ;;  %vm2607_vm7 = vcmask 261120   ;;  %vm9822_vm6 = vmor %vm7761_vm11, %vm7734_vm8 }
 0x18f   : > { %1903 = vst [vmem:[#allocation2 + $0x10] sm:$0x2] %v1902_v32  ;;  %1921 = vst [vmem:[#allocation2 + $0x38] sm:$0x2] %v1920_v37  ;;  %v6883_v13 = vld [vmem:[%s9695_s3 + $0x20] ss:$8 sps:$4 sm:$0xff]   ;;  %v2068_v54 = vsel %vm8541_vm13, %v1984_v19, %v2067_v10  ;;  %2696 = vmatpush1.bf16.msra.mxu0 %v6901_v34 }
 0x190   : > { %v2003_v48 = vsel %vm8525_vm1, %v1986_v24, %v2002_v38  ;;  %v2017_v50 = vld [vmem:[#allocation2 + $0x38] sm:$0x4]  ;;  %v2079_v59 = vld [vmem:[#allocation2 + $0x38] sm:$0x8]  ;;  %v6888_v12 = vld [vmem:[%s9695_s3 + $0x34] ss:$8 sps:$4 sm:$0xff]   ;;  %3135 = vmatprep.subr.bf16.mxu0 %v6909_v3 }
 0x191   : > { %2004 = vst [vmem:[#allocation2 + $0x10] sm:$0x4] %v2003_v48  ;;  %v2018_v5 = vsel %vm8525_vm1, %v2007_v63, %v2017_v50  ;;  %2069 = vst [vmem:[#allocation2 + $0x10] sm:$0x8] %v2068_v54  ;;  %v2080_v8 = vsel %vm8541_vm13, %v8449_v0, %v2079_v59  ;;  %3099 = vmatpush1.bf16.msra.mxu1 %v6883_v13  ;;  %v6886_v18 = vld [vmem:[%s9695_s3 + $0x30] ss:$8 sps:$4 sm:$0xff]  }
 0x192   : > { %2019 = vst [vmem:[#allocation2 + $0x38] sm:$0x4] %v2018_v5  ;;  %2081 = vst [vmem:[#allocation2 + $0x38] sm:$0x8] %v2080_v8  ;;  %3100 = vmatprep.subr.bf16.mxu1 %v6888_v12  ;;  %v6891_v4 = vld [vmem:[%s9695_s3 + $0x44] ss:$8 sps:$4 sm:$0xff]  }
 0x193   : > { %v6889_v63 = vld [vmem:[%s9695_s3 + $0x40] ss:$8 sps:$4 sm:$0xff]   ;;  %v6894_v0 = vld [vmem:[%s9695_s3 + $0x54] ss:$8 sps:$4 sm:$0xff]   ;;  %v6892_v22 = vld [vmem:[%s9695_s3 + $0x50] ss:$8 sps:$4 sm:$0xff]  }
 0x194   : > { %v6907_v58 = vld [vmem:[%s9695_s3 + $0x100] ss:$8 sps:$4 sm:$0xff]   ;;  %v6910_v21 = vld [vmem:[#allocation2 + $0x38] ss:$0 sps:$4 sm:$0xff]   ;;  %v6918_v51 = vld [vmem:[%s9695_s3 + $0x114] ss:$8 sps:$4 sm:$0xff]  }
 0x195   : > { %3101 = vmatpush1.bf16.msra.mxu1 %v6886_v18  ;;  %5910 = vmatmul.mubr.msk.bf16.vlgmr.msra.gmra.mrb[28].mxu0 %vm2607_vm7, %v6910_v21  ;;  %v6900_v47 = vld [vmem:[%s9695_s3 + $0x64] ss:$8 sps:$4 sm:$0xff]   ;;  %v6916_v43 = vld [vmem:[%s9695_s3 + $0x110] ss:$8 sps:$4 sm:$0xff]   ;;  %v6898_v9 = vld [vmem:[%s9695_s3 + $0x60] ss:$8 sps:$4 sm:$0xff]  }
 0x196   : > { %3102 = vmatprep.subr.bf16.mxu1 %v6891_v4  ;;  %3136 = vmatpush1.bf16.msra.mxu0 %v6907_v58  ;;  %v6924_v2 = vld [vmem:[%s9695_s3 + $0x124] ss:$8 sps:$4 sm:$0xff]   ;;  %v6906_v11 = vld [vmem:[%s9695_s3 + $0x74] ss:$8 sps:$4 sm:$0xff]   ;;  %v6922_v17 = vld [vmem:[%s9695_s3 + $0x120] ss:$8 sps:$4 sm:$0xff]  }
 0x197   : > { %3167 = vmatprep.mubr.bf16.mxu0 %v5914_v42  ;;  %3137 = vmatprep.subr.bf16.mxu0 %v6918_v51  ;;  %v6930_v53 = vld [vmem:[%s9695_s3 + $0x134] ss:$8 sps:$4 sm:$0xff]   ;;  %v6904_v7 = vld [vmem:[%s9695_s3 + $0x70] ss:$8 sps:$4 sm:$0xff]   ;;  %v6915_v45 = vld [vmem:[%s9695_s3 + $0x84] ss:$8 sps:$4 sm:$0xff]   ;;  %v5911_v42 = vcombine.low %v8478_v20, %v8478_v20 }
 0x198   : > { %v6928_v49 = vld [vmem:[%s9695_s3 + $0x130] ss:$8 sps:$4 sm:$0xff]   ;;  %v6936_v30 = vld [vmem:[%s9695_s3 + $0x144] ss:$8 sps:$4 sm:$0xff]   ;;  %v6913_v19 = vld [vmem:[%s9695_s3 + $0x80] ss:$8 sps:$4 sm:$0xff]  }
 0x199   : > { %3103 = vmatpush1.bf16.msra.mxu1 %v6889_v63  ;;  %v6921_v40 = vld [vmem:[%s9695_s3 + $0x94] ss:$8 sps:$4 sm:$0xff]   ;;  %v6934_v15 = vld [vmem:[%s9695_s3 + $0x140] ss:$8 sps:$4 sm:$0xff]   ;;  %v6919_v6 = vld [vmem:[%s9695_s3 + $0x90] ss:$8 sps:$4 sm:$0xff]  }
 0x19a   : > { %3104 = vmatprep.subr.bf16.mxu1 %v6894_v0  ;;  %3138 = vmatpush1.bf16.msra.mxu0 %v6916_v43  ;;  %v6942_v23 = vld [vmem:[%s9695_s3 + $0x154] ss:$8 sps:$4 sm:$0xff]   ;;  %v6927_v27 = vld [vmem:[%s9695_s3 + $0xa4] ss:$8 sps:$4 sm:$0xff]   ;;  %v6940_v46 = vld [vmem:[%s9695_s3 + $0x150] ss:$8 sps:$4 sm:$0xff]  }
 0x19b   : > { %3139 = vmatprep.subr.bf16.mxu0 %v6924_v2  ;;  %v6948_v25 = vld [vmem:[%s9695_s3 + $0x164] ss:$8 sps:$4 sm:$0xff]   ;;  %v6925_v57 = vld [vmem:[%s9695_s3 + $0xa0] ss:$8 sps:$4 sm:$0xff]   ;;  %v6933_v52 = vld [vmem:[%s9695_s3 + $0xb4] ss:$8 sps:$4 sm:$0xff]  }
 0x19c   : > { %v6946_v35 = vld [vmem:[%s9695_s3 + $0x160] ss:$8 sps:$4 sm:$0xff]   ;;  %v6954_v55 = vld [vmem:[%s9695_s3 + $0x174] ss:$8 sps:$4 sm:$0xff]   ;;  %v6931_v34 = vld [vmem:[%s9695_s3 + $0xb0] ss:$8 sps:$4 sm:$0xff]  }
 0x19d   : > { %3105 = vmatpush1.bf16.msra.mxu1 %v6892_v22  ;;  %v6939_v3 = vld [vmem:[%s9695_s3 + $0xc4] ss:$8 sps:$4 sm:$0xff]   ;;  %v6952_v31 = vld [vmem:[%s9695_s3 + $0x170] ss:$8 sps:$4 sm:$0xff]   ;;  %v6937_v56 = vld [vmem:[%s9695_s3 + $0xc0] ss:$8 sps:$4 sm:$0xff]  }
 0x19e   : > { %3106 = vmatprep.subr.bf16.mxu1 %v6900_v47  ;;  %3140 = vmatpush1.bf16.msra.mxu0 %v6922_v17  ;;  %v6960_v14 = vld [vmem:[%s9695_s3 + $0x184] ss:$8 sps:$4 sm:$0xff]   ;;  %v6945_v24 = vld [vmem:[%s9695_s3 + $0xd4] ss:$8 sps:$4 sm:$0xff]   ;;  %v6958_v32 = vld [vmem:[%s9695_s3 + $0x180] ss:$8 sps:$4 sm:$0xff]  }
 0x19f   : > { %3141 = vmatprep.subr.bf16.mxu0 %v6930_v53  ;;  %v6966_v37 = vld [vmem:[%s9695_s3 + $0x194] ss:$8 sps:$4 sm:$0xff]   ;;  %v6943_v38 = vld [vmem:[%s9695_s3 + $0xd0] ss:$8 sps:$4 sm:$0xff]   ;;  %v6951_v48 = vld [vmem:[%s9695_s3 + $0xe4] ss:$8 sps:$4 sm:$0xff]  }
 0x1a0   : > { %v6964_v10 = vld [vmem:[%s9695_s3 + $0x190] ss:$8 sps:$4 sm:$0xff]   ;;  %v6974_v54 = vld [vmem:[%s9695_s3 + $0x1a4] ss:$8 sps:$4 sm:$0xff]   ;;  %v6949_v59 = vld [vmem:[%s9695_s3 + $0xe0] ss:$8 sps:$4 sm:$0xff]  }
 0x1a1   : > { %3107 = vmatpush1.bf16.msra.mxu1 %v6898_v9  ;;  %v8695_v13 = vld [vmem:[#allocation2 + $0x14] sm:$0x11]  ;;  %v6972_v5 = vld [vmem:[%s9695_s3 + $0x1a0] ss:$8 sps:$4 sm:$0xff]   ;;  %v6963_v63 = vld [vmem:[%s9695_s3 + $0x444] ss:$8 sps:$4 sm:$0xff]  }
 0x1a2   : > { %3108 = vmatprep.subr.bf16.mxu1 %v6906_v11  ;;  %3142 = vmatpush1.bf16.msra.mxu0 %v6928_v49  ;;  %v6054_v50 = vcombine.high %v8478_v20, %v8695_v13  ;;  %v6957_v12 = vld [vmem:[%s9695_s3 + $0xf4] ss:$8 sps:$4 sm:$0xff]   ;;  %v6955_v4 = vld [vmem:[%s9695_s3 + $0xf0] ss:$8 sps:$4 sm:$0xff]   ;;  %v6986_v21 = vld [vmem:[%s9695_s3 + $0x1c4] ss:$8 sps:$4 sm:$0xff]  }
 0x1a3   : > { %3143 = vmatprep.subr.bf16.mxu0 %v6936_v30  ;;  %v6980_v18 = vld [vmem:[%s9695_s3 + $0x1b4] ss:$8 sps:$4 sm:$0xff]   ;;  %v6978_v0 = vld [vmem:[%s9695_s3 + $0x1b0] ss:$8 sps:$4 sm:$0xff]   ;;  %v6961_v51 = vld [vmem:[%s9695_s3 + $0x440] ss:$8 sps:$4 sm:$0xff]  }
 0x1a4   : > { %v3323_v8 = vshll.u32 %v6054_v50, 16  ;;  %v3321_v22 = vshrl.u32 %v6054_v50, 16  ;;  %v6971_v47 = vld [vmem:[%s9695_s3 + $0x454] ss:$8 sps:$4 sm:$0xff]   ;;  %v6984_v43 = vld [vmem:[%s9695_s3 + $0x1c0] ss:$8 sps:$4 sm:$0xff]   ;;  %vm9823_vm3 = vmmov %vm9822_vm6 }
 0x1a5   : > { %3109 = vmatpush1.bf16.msra.mxu1 %v6904_v7  ;;  %v6992_v9 = vld [vmem:[%s9695_s3 + $0x1d4] ss:$8 sps:$4 sm:$0xff]   ;;  %v6969_v11 = vld [vmem:[%s9695_s3 + $0x450] ss:$8 sps:$4 sm:$0xff]   ;;  %v6977_v17 = vld [vmem:[%s9695_s3 + $0x464] ss:$8 sps:$4 sm:$0xff]  }
 0x1a6   : > { %3110 = vmatprep.subr.bf16.mxu1 %v6915_v45  ;;  %3144 = vmatpush1.bf16.msra.mxu0 %v6934_v15  ;;  %v3325_v58 = vrot.slane %v3323_v8, 1  ;;  %v6990_v53 = vld [vmem:[%s9695_s3 + $0x1d0] ss:$8 sps:$4 sm:$0xff]   ;;  %v6998_v7 = vld [vmem:[%s9695_s3 + $0x1e4] ss:$8 sps:$4 sm:$0xff]   ;;  %vm9824_vm5 = vmor %vm9790_vm14, %vm8069_vm4 }
 0x1a7   : > { %3145 = vmatprep.subr.bf16.mxu0 %v6942_v23  ;;  %v6975_v45 = vld [vmem:[%s9695_s3 + $0x460] ss:$8 sps:$4 sm:$0xff]   ;;  %v6983_v49 = vld [vmem:[%s9695_s3 + $0x474] ss:$8 sps:$4 sm:$0xff]   ;;  %v6989_v15 = vld [vmem:[%s9695_s3 + $0x484] ss:$8 sps:$4 sm:$0xff]  }
 0x1a8   : > { %v3326_v2 = vor.u32 %v3325_v58, %v3321_v22  ;;  %v6996_v30 = vld [vmem:[%s9695_s3 + $0x1e0] ss:$8 sps:$4 sm:$0xff]   ;;  %v7002_v23 = vld [vmem:[%s9695_s3 + $0x1f0] ss:$8 sps:$4 sm:$0xff]   ;;  %v7031_v50 = vld [vmem:[%s9695_s3 + $0x554] ss:$8 sps:$4 sm:$0xff]  }
 0x1a9   : > { %3111 = vmatpush1.bf16.msra.mxu1 %v6913_v19  ;;  %v7004_v19 = vld [vmem:[%s9695_s3 + $0x1f4] ss:$8 sps:$4 sm:$0xff]   ;;  %v7037_v8 = vld [vmem:[%s9695_s3 + $0x564] ss:$8 sps:$4 sm:$0xff]   ;;  %v7017_v58 = vld [vmem:[%s9695_s3 + $0x4d0] ss:$8 sps:$4 sm:$0xff]  }
 0x1aa   : > { %3112 = vmatprep.subr.bf16.mxu1 %v6921_v40  ;;  %3146 = vmatpush1.bf16.msra.mxu0 %v6940_v46  ;;  %v6981_v40 = vld [vmem:[%s9695_s3 + $0x470] ss:$8 sps:$4 sm:$0xff]   ;;  %v6987_v46 = vld [vmem:[%s9695_s3 + $0x480] ss:$8 sps:$4 sm:$0xff]   ;;  %v7049_v22 = vld [vmem:[%s9695_s3 + $0x584] ss:$8 sps:$4 sm:$0xff]  }
 0x1ab   : > { %3147 = vmatprep.subr.bf16.mxu0 %v6948_v25  ;;  %vm9825_vm2 = vmmov %vm9824_vm5  ;;  %vm9829_vm15 = vsmask.f32 7942 }
 0x1ac   : > { %vm9826_vm8 = vmor %vm7777_vm12, %vm7749_vm10  ;;  %vm4693_vm10 = vcmask 517121   ;;  %vm9828_vm12 = vsmask.f32 1280 }
 0x1ad   : > { %3113 = vmatpush1.bf16.msra.mxu1 %v6919_v6  ;;  %v7010_v6 = vld [vmem:[%s9695_s3 + $0x204] ss:$8 sps:$4 sm:$0xff]   ;;  %vm9827_vm11 = vmmov %vm9826_vm8 }
 0x1ae   : > { %3114 = vmatprep.subr.bf16.mxu1 %v6927_v27  ;;  %3148 = vmatpush1.bf16.msra.mxu0 %v6946_v35  ;;  %v8776_v27 = vld [vmem:[#allocation2 + $0x1c] sm:$0x11]  ;;  %v5913_v35 = vcombine.low %v8582_v44, %v8582_v44  ;;  %vm4694_vm14 = vmand %vm4693_vm10, %vm9828_vm12 }
 0x1af   : > { %3149 = vmatprep.subr.bf16.mxu0 %v6954_v55  ;;  %v6056_v25 = vcombine.high %v8582_v44, %v8776_v27  ;;  %v7016_v55 = vld [vmem:[%s9695_s3 + $0x214] ss:$8 sps:$4 sm:$0xff]   ;;  %vm4695_vm1 = vmor %vm4694_vm14, %vm8228_vm0  ;;  %vm4873_vm0 = vcmask 523264  }
 0x1b0   : > { %vm4721_vm13 = vmand %vm4693_vm10, %vm9829_vm15 }
 0x1b1   : > { %3115 = vmatpush1.bf16.msra.mxu1 %v6925_v57  ;;  %v6995_v57 = vld [vmem:[%s9695_s3 + $0x494] ss:$8 sps:$4 sm:$0xff]  }
 0x1b2   : > { %3116 = vmatprep.subr.bf16.mxu1 %v6933_v52  ;;  %3150 = vmatpush1.bf16.msra.mxu0 %v6952_v31  ;;  %v7008_v52 = vld [vmem:[%s9695_s3 + $0x200] ss:$8 sps:$4 sm:$0xff]   ;;  %v7001_v31 = vld [vmem:[%s9695_s3 + $0x4a4] ss:$8 sps:$4 sm:$0xff]  }
 0x1b3   : > { %3151 = vmatprep.subr.bf16.mxu0 %v6960_v14  ;;  %v7014_v14 = vld [vmem:[%s9695_s3 + $0x210] ss:$8 sps:$4 sm:$0xff]  }
 0x1b5   : > { %3117 = vmatpush1.bf16.msra.mxu1 %v6931_v34  ;;  %v6993_v34 = vld [vmem:[%s9695_s3 + $0x490] ss:$8 sps:$4 sm:$0xff]  }
 0x1b6   : > { %3118 = vmatprep.subr.bf16.mxu1 %v6939_v3  ;;  %3152 = vmatpush1.bf16.msra.mxu0 %v6958_v32  ;;  %v3337_v3 = vshll.u32 %v6056_v25, 16 }
 0x1b7   : > { %3153 = vmatprep.subr.bf16.mxu0 %v6966_v37  ;;  %v7007_v37 = vld [vmem:[%s9695_s3 + $0x4b4] ss:$8 sps:$4 sm:$0xff]  }
 0x1b8   : > { %v3339_v32 = vrot.slane %v3337_v3, 1  ;;  %v7075_v3 = vld [vmem:[%s9695_s3 + $0x5d0] ss:$8 sps:$4 sm:$0xff]  }
 0x1b9   : > { %3119 = vmatpush1.bf16.msra.mxu1 %v6937_v56  ;;  %v7023_v56 = vld [vmem:[%s9695_s3 + $0x544] ss:$8 sps:$4 sm:$0xff]  }
 0x1ba   : > { %3120 = vmatprep.subr.bf16.mxu1 %v6945_v24  ;;  %3154 = vmatpush1.bf16.msra.mxu0 %v6964_v10  ;;  %v6999_v24 = vld [vmem:[%s9695_s3 + $0x4a0] ss:$8 sps:$4 sm:$0xff]   ;;  %v3335_v10 = vshrl.u32 %v6056_v25, 16 }
 0x1bb   : > { %3155 = vmatprep.subr.bf16.mxu0 %v6974_v54  ;;  %v7005_v54 = vld [vmem:[%s9695_s3 + $0x4b0] ss:$8 sps:$4 sm:$0xff]   ;;  %v7071_v25 = vld [vmem:[%s9695_s3 + $0x5c0] ss:$8 sps:$4 sm:$0xff]  }
 0x1bd   : > { %3121 = vmatpush1.bf16.msra.mxu1 %v6943_v38  ;;  %v7021_v38 = vld [vmem:[%s9695_s3 + $0x540] ss:$8 sps:$4 sm:$0xff]  }
 0x1be   : > { %3122 = vmatprep.subr.bf16.mxu1 %v6951_v48  ;;  %3156 = vmatpush1.bf16.msra.mxu0 %v6972_v5  ;;  %v7020_v48 = vld [vmem:[#allocation2 + $0x10] ss:$0 sps:$4 sm:$0xff]  }
 0x1bf   : > { %3157 = vmatprep.subr.bf16.mxu0 %v6980_v18  ;;  %v7029_v5 = vld [vmem:[%s9695_s3 + $0x550] ss:$8 sps:$4 sm:$0xff]   ;;  %v7011_v18 = vld [vmem:[%s9695_s3 + $0x4c0] ss:$8 sps:$4 sm:$0xff]  }
 0x1c1   : > { %3123 = vmatpush1.bf16.msra.mxu1 %v6949_v59  ;;  %v3340_v59 = vor.u32 %v3339_v32, %v3335_v10  ;;  %v7070_v32 = vld [vmem:[%s9695_s3 + $0x654] ss:$8 sps:$4 sm:$0xff]   ;;  %v7068_v10 = vld [vmem:[%s9695_s3 + $0x650] ss:$8 sps:$4 sm:$0xff]  }
 0x1c2   : > { %3124 = vmatprep.subr.bf16.mxu1 %v6957_v12  ;;  %3158 = vmatpush1.bf16.msra.mxu0 %v6978_v0  ;;  %v7013_v12 = vld [vmem:[%s9695_s3 + $0x4c4] ss:$8 sps:$4 sm:$0xff]   ;;  %v7043_v0 = vld [vmem:[%s9695_s3 + $0x574] ss:$8 sps:$4 sm:$0xff]  }
 0x1c3   : > { %3159 = vmatprep.subr.bf16.mxu0 %v6986_v21  ;;  %v7028_v21 = vld [vmem:[%s9695_s3 + $0x4e4] ss:$8 sps:$4 sm:$0xff]  }
 0x1c5   : > { %3125 = vmatpush1.bf16.msra.mxu1 %v6955_v4  ;;  %v7019_v4 = vld [vmem:[%s9695_s3 + $0x4d4] ss:$8 sps:$4 sm:$0xff]  }
 0x1c6   : > { %3695 = vmatprep.subr.bf16.mxu1 %v6963_v63  ;;  %3160 = vmatpush1.bf16.msra.mxu0 %v6984_v43  ;;  %v7035_v63 = vld [vmem:[%s9695_s3 + $0x560] ss:$8 sps:$4 sm:$0xff]  }
 0x1c7   : > { %3161 = vmatprep.subr.bf16.mxu0 %v6992_v9  ;;  %v7047_v43 = vld [vmem:[%s9695_s3 + $0x580] ss:$8 sps:$4 sm:$0xff]   ;;  %v7032_v9 = vld [vmem:[%s9695_s3 + $0x4f0] ss:$8 sps:$4 sm:$0xff]  }
 0x1c8   : > { %3127 = vmatmul.mubr.bf16.vlgmr.msra.gmra.mrb[24].mxu1 %v5911_v42  ;;  %v7026_v42 = vld [vmem:[%s9695_s3 + $0x4e0] ss:$8 sps:$4 sm:$0xff]  }
 0x1c9   : > { %3696 = vmatpush1.bf16.msra.mxu1 %v6961_v51  ;;  %3727 = vmatprep.mubr.bf16.mxu1 %v3326_v2  ;;  %v7041_v51 = vld [vmem:[%s9695_s3 + $0x570] ss:$8 sps:$4 sm:$0xff]   ;;  %v7055_v2 = vld [vmem:[%s9695_s3 + $0x594] ss:$8 sps:$4 sm:$0xff]  }
 0x1ca   : > { %3697 = vmatprep.subr.bf16.mxu1 %v6971_v47  ;;  %3162 = vmatpush1.bf16.msra.mxu0 %v6990_v53  ;;  %v7034_v47 = vld [vmem:[%s9695_s3 + $0x4f4] ss:$8 sps:$4 sm:$0xff]   ;;  %v7061_v53 = vld [vmem:[%s9695_s3 + $0x5a4] ss:$8 sps:$4 sm:$0xff]  }
 0x1cb   : > { %3163 = vmatprep.subr.bf16.mxu0 %v6998_v7  ;;  %v7038_v7 = vld [vmem:[%s9695_s3 + $0x500] ss:$8 sps:$4 sm:$0xff]  }
 0x1cd   : > { %3698 = vmatpush1.bf16.msra.mxu1 %v6969_v11  ;;  %v7040_v11 = vld [vmem:[%s9695_s3 + $0x504] ss:$8 sps:$4 sm:$0xff]  }
 0x1ce   : > { %3699 = vmatprep.subr.bf16.mxu1 %v6977_v17  ;;  %3164 = vmatpush1.bf16.msra.mxu0 %v6996_v30  ;;  %v7053_v17 = vld [vmem:[%s9695_s3 + $0x590] ss:$8 sps:$4 sm:$0xff]   ;;  %v7067_v30 = vld [vmem:[%s9695_s3 + $0x5b4] ss:$8 sps:$4 sm:$0xff]  }
 0x1cf   : > { %3165 = vmatprep.subr.bf16.mxu0 %v7004_v19  ;;  %v7044_v19 = vld [vmem:[%s9695_s3 + $0x510] ss:$8 sps:$4 sm:$0xff]  }
 0x1d1   : > { %3700 = vmatpush1.bf16.msra.mxu1 %v6975_v45  ;;  %v7046_v45 = vld [vmem:[%s9695_s3 + $0x514] ss:$8 sps:$4 sm:$0xff]  }
 0x1d2   : > { %3701 = vmatprep.subr.bf16.mxu1 %v6983_v49  ;;  %3166 = vmatpush1.bf16.msra.mxu0 %v7002_v23  ;;  %v7059_v49 = vld [vmem:[%s9695_s3 + $0x5a0] ss:$8 sps:$4 sm:$0xff]   ;;  %v7065_v23 = vld [vmem:[%s9695_s3 + $0x5b0] ss:$8 sps:$4 sm:$0xff]  }
 0x1d3   : > { %3176 = vmatprep.subr.bf16.mxu0 %v7010_v6  ;;  %v7073_v6 = vld [vmem:[%s9695_s3 + $0x5c4] ss:$8 sps:$4 sm:$0xff]  }
 0x1d5   : > { %3702 = vmatpush1.bf16.msra.mxu1 %v6981_v40  ;;  %3168 = vmatmul.mubr.bf16.vlgmr.msra.gmra.mrb[32].mxu0 %v5913_v35  ;;  %v6053_v40 = vcombine.low %v8478_v20, %v8695_v13  ;;  %v7050_v20 = vld [vmem:[%s9695_s3 + $0x520] ss:$8 sps:$4 sm:$0xff]   ;;  %v7058_v13 = vld [vmem:[%s9695_s3 + $0x534] ss:$8 sps:$4 sm:$0xff]   ;;  %v7064_v35 = vld [vmem:[%s9695_s3 + $0x644] ss:$8 sps:$4 sm:$0xff]  }
 0x1d6   : > { %3703 = vmatprep.subr.bf16.mxu1 %v6989_v15  ;;  %3177 = vmatpush1.bf16.msra.mxu0 %v7008_v52  ;;  %v7052_v15 = vld [vmem:[%s9695_s3 + $0x524] ss:$8 sps:$4 sm:$0xff]   ;;  %v7056_v52 = vld [vmem:[%s9695_s3 + $0x530] ss:$8 sps:$4 sm:$0xff]  }
 0x1d7   : > { %3178 = vmatprep.subr.bf16.mxu0 %v7016_v55  ;;  %3208 = vmatprep.mubr.bf16.mxu0 %v9821_v62 }
 0x1d9   : > { %3704 = vmatpush1.bf16.msra.mxu1 %v6987_v46  ;;  %v3316_v46 = vshll.u32 %v6053_v40, 16 }
 0x1da   : > { %3705 = vmatprep.subr.bf16.mxu1 %v6995_v57  ;;  %3179 = vmatpush1.bf16.msra.mxu0 %v7014_v14  ;;  %v7077_v57 = vld [vmem:[%s9695_s3 + $0x5d4] ss:$8 sps:$4 sm:$0xff]   ;;  %v3314_v14 = vshrl.u32 %v6053_v40, 16  ;;  %v7099_v40 = vld [vmem:[%s9697_s5 + $0x100] ss:$8 sps:$4 sm:$0xff]  }
 0x1db   : > { %3736 = vmatprep.subr.bf16.mxu0 %v7023_v56  ;;  %v3318_v55 = vrot.slane %v3316_v46, 1  ;;  %v7062_v56 = vld [vmem:[%s9695_s3 + $0x640] ss:$8 sps:$4 sm:$0xff]   ;;  %v7110_v46 = vld [vmem:[%s9697_s5 + $0x24] ss:$8 sps:$4 sm:$0xff]  }
 0x1dd   : > { %3706 = vmatpush1.bf16.msra.mxu1 %v6993_v34  ;;  %5984 = vmatmul.mubr.msk.bf16.vlgmr.msra.gmra.mrb[36].mxu0 %vm2607_vm7, %v7020_v48  ;;  %v7074_v34 = vld [vmem:[#allocation2 + $0x10] ss:$20 sps:$4 sm:$0x1f]   ;;  %v7083_v48 = vld [vmem:[%s9695_s3 + $0x5f4] ss:$8 sps:$4 sm:$0xff]  }
 0x1de   : > { %3707 = vmatprep.subr.bf16.mxu1 %v7001_v31  ;;  %3737 = vmatpush1.bf16.msra.mxu0 %v7021_v38  ;;  %v7080_v31 = vld [vmem:[%s9695_s3 + $0x5e4] ss:$8 sps:$4 sm:$0xff]   ;;  %v7078_v38 = vld [vmem:[%s9695_s3 + $0x5e0] ss:$8 sps:$4 sm:$0xff]  }
 0x1df   : > { %3768 = vmatprep.mubr.bf16.mxu0 %v3340_v59  ;;  %3738 = vmatprep.subr.bf16.mxu0 %v7031_v50  ;;  %v7086_v59 = vld [vmem:[%s9695_s3 + $0x604] ss:$8 sps:$4 sm:$0xff]  }
 0x1e1   : > { %3708 = vmatpush1.bf16.msra.mxu1 %v6999_v24  ;;  %v3319_v24 = vor.u32 %v3318_v55, %v3314_v14  ;;  %v7108_v55 = vld [vmem:[%s9697_s5 + $0x20] ss:$8 sps:$4 sm:$0xff]   ;;  %v7116_v14 = vld [vmem:[%s9697_s5 + $0x34] ss:$8 sps:$4 sm:$0xff]  }
 0x1e2   : > { %3709 = vmatprep.subr.bf16.mxu1 %v7007_v37  ;;  %3739 = vmatpush1.bf16.msra.mxu0 %v7029_v5  ;;  %v3344_v37 = vshll.u32 %v7074_v34, 16 }
 0x1e3   : > { %3740 = vmatprep.subr.bf16.mxu0 %v7037_v8  ;;  %v7084_v8 = vld [vmem:[%s9695_s3 + $0x600] ss:$8 sps:$4 sm:$0xff]  }
 0x1e4   : > { %v3346_v50 = vrot.slane %v3344_v37, 1  ;;  %v7117_v37 = vld [vmem:[%s9697_s5 + $0x130] ss:$8 sps:$4 sm:$0xff]  }
 0x1e5   : > { %3710 = vmatpush1.bf16.msra.mxu1 %v7005_v54  ;;  %v7081_v54 = vld [vmem:[%s9695_s3 + $0x5f0] ss:$8 sps:$4 sm:$0xff]  }
 0x1e6   : > { %3711 = vmatprep.subr.bf16.mxu1 %v7013_v12  ;;  %3741 = vmatpush1.bf16.msra.mxu0 %v7035_v63  ;;  %v3342_v12 = vshrl.u32 %v7074_v34, 16  ;;  %v6055_v63 = vcombine.low %v8582_v44, %v8776_v27  ;;  %v7093_v44 = vld [vmem:[%s9695_s3 + $0x630] ss:$8 sps:$4 sm:$0xff]  }
 0x1e7   : > { %3742 = vmatprep.subr.bf16.mxu0 %v7043_v0  ;;  %v7092_v0 = vld [vmem:[%s9695_s3 + $0x624] ss:$8 sps:$4 sm:$0xff]  }
 0x1e8   : > { %v3347_v5 = vor.u32 %v3346_v50, %v3342_v12  ;;  %v7123_v50 = vld [vmem:[%s9697_s5 + $0x140] ss:$8 sps:$4 sm:$0xff]   ;;  %v7126_v12 = vld [vmem:[%s9697_s5 + $0x50] ss:$8 sps:$4 sm:$0xff]  }
 0x1e9   : > { %3712 = vmatpush1.bf16.msra.mxu1 %v7011_v18  ;;  %v7089_v18 = vld [vmem:[%s9695_s3 + $0x614] ss:$8 sps:$4 sm:$0xff]  }
 0x1ea   : > { %3713 = vmatprep.subr.bf16.mxu1 %v7019_v4  ;;  %3743 = vmatpush1.bf16.msra.mxu0 %v7041_v51  ;;  %v7087_v4 = vld [vmem:[%s9695_s3 + $0x610] ss:$8 sps:$4 sm:$0xff]   ;;  %v3330_v51 = vshll.u32 %v6055_v63, 16 }
 0x1eb   : > { %3744 = vmatprep.subr.bf16.mxu0 %v7049_v22  ;;  %v3328_v22 = vshrl.u32 %v6055_v63, 16  ;;  %v7135_v63 = vld [vmem:[%s9697_s5 + $0x160] ss:$8 sps:$4 sm:$0xff]  }
 0x1ec   : > { %v3332_v27 = vrot.slane %v3330_v51, 1  ;;  %v7141_v51 = vld [vmem:[%s9697_s5 + $0x170] ss:$8 sps:$4 sm:$0xff]  }
 0x1ed   : > { %3714 = vmatpush1.bf16.msra.mxu1 %v7017_v58  ;;  %v7090_v58 = vld [vmem:[%s9695_s3 + $0x620] ss:$8 sps:$4 sm:$0xff]  }
 0x1ee   : > { %3715 = vmatprep.subr.bf16.mxu1 %v7028_v21  ;;  %3745 = vmatpush1.bf16.msra.mxu0 %v7047_v43  ;;  %v7095_v21 = vld [vmem:[%s9695_s3 + $0x634] ss:$8 sps:$4 sm:$0xff]  }
 0x1ef   : > { %3746 = vmatprep.subr.bf16.mxu0 %v7055_v2 }
 0x1f1   : > { %3716 = vmatpush1.bf16.msra.mxu1 %v7026_v42  ;;  %v3333_v42 = vor.u32 %v3332_v27, %v3328_v22  ;;  %v7144_v27 = vld [vmem:[%s9697_s5 + $0x80] ss:$8 sps:$4 sm:$0xff]   ;;  %v7149_v22 = vld [vmem:[%s9697_s5 + $0x184] ss:$8 sps:$4 sm:$0xff]  }
 0x1f2   : > { %3717 = vmatprep.subr.bf16.mxu1 %v7034_v47  ;;  %3747 = vmatpush1.bf16.msra.mxu0 %v7053_v17 }
 0x1f3   : > { %3748 = vmatprep.subr.bf16.mxu0 %v7061_v53 }
 0x1f5   : > { %3718 = vmatpush1.bf16.msra.mxu1 %v7032_v9 }
 0x1f6   : > { %3719 = vmatprep.subr.bf16.mxu1 %v7040_v11  ;;  %3749 = vmatpush1.bf16.msra.mxu0 %v7059_v49 }
 0x1f7   : > { %3750 = vmatprep.subr.bf16.mxu0 %v7067_v30  ;;  %v7096_v30 = vld [vmem:[%s9697_s5] ss:$8 sps:$4 sm:$0xff]  }
 0x1f9   : > { %3720 = vmatpush1.bf16.msra.mxu1 %v7038_v7 }
 0x1fa   : > { %3721 = vmatprep.subr.bf16.mxu1 %v7046_v45  ;;  %3751 = vmatpush1.bf16.msra.mxu0 %v7065_v23  ;;  %v7104_v23 = vld [vmem:[%s9697_s5 + $0x14] ss:$8 sps:$4 sm:$0xff]  }
 0x1fb   : > { %3752 = vmatprep.subr.bf16.mxu0 %v7073_v6  ;;  %v7107_v6 = vld [vmem:[%s9697_s5 + $0x114] ss:$8 sps:$4 sm:$0xff]  }
 0x1fd   : > { %3722 = vmatpush1.bf16.msra.mxu1 %v7044_v19  ;;  %v7098_v19 = vld [vmem:[%s9697_s5 + $0x4] ss:$8 sps:$4 sm:$0xff]  }
 0x1fe   : > { %3723 = vmatprep.subr.bf16.mxu1 %v7052_v15  ;;  %3753 = vmatpush1.bf16.msra.mxu0 %v7071_v25  ;;  %v7101_v15 = vld [vmem:[%s9697_s5 + $0x104] ss:$8 sps:$4 sm:$0xff]  }
 0x1ff   : > { %3754 = vmatprep.subr.bf16.mxu0 %v7077_v57  ;;  %v7113_v25 = vld [vmem:[%s9697_s5 + $0x124] ss:$8 sps:$4 sm:$0xff]  }
 0x201   : > { %3724 = vmatpush1.bf16.msra.mxu1 %v7050_v20  ;;  %v7102_v20 = vld [vmem:[%s9697_s5 + $0x10] ss:$8 sps:$4 sm:$0xff]  }
 0x202   : > { %3725 = vmatprep.subr.bf16.mxu1 %v7058_v13  ;;  %3755 = vmatpush1.bf16.msra.mxu0 %v7075_v3  ;;  %v7105_v13 = vld [vmem:[%s9697_s5 + $0x110] ss:$8 sps:$4 sm:$0xff]  }
 0x203   : > { %3756 = vmatprep.subr.bf16.mxu0 %v7080_v31  ;;  %v7111_v31 = vld [vmem:[%s9697_s5 + $0x120] ss:$8 sps:$4 sm:$0xff]  }
 0x205   : > { %3726 = vmatpush1.bf16.msra.mxu1 %v7056_v52 }
 0x206   : > { %3777 = vmatprep.subr.bf16.mxu1 %v7064_v35  ;;  %3757 = vmatpush1.bf16.msra.mxu0 %v7078_v38  ;;  %v7122_v38 = vld [vmem:[%s9697_s5 + $0x44] ss:$8 sps:$4 sm:$0xff]  }
 0x207   : > { %3758 = vmatprep.subr.bf16.mxu0 %v7083_v48  ;;  %v7125_v48 = vld [vmem:[%s9697_s5 + $0x144] ss:$8 sps:$4 sm:$0xff]  }
 0x208   : > { %3728 = vmatmul.mubr.bf16.vlgmr.msra.gmra.mrb[28].mxu1 %v3319_v24  ;;  %v7119_v24 = vld [vmem:[%s9697_s5 + $0x134] ss:$8 sps:$4 sm:$0xff]  }
 0x209   : > { %3778 = vmatpush1.bf16.msra.mxu1 %v7062_v56  ;;  %3809 = vmatprep.mubr.bf16.mxu1 %v9821_v62 }
 0x20a   : > { %3779 = vmatprep.subr.bf16.mxu1 %v7070_v32  ;;  %3759 = vmatpush1.bf16.msra.mxu0 %v7081_v54  ;;  %v7114_v32 = vld [vmem:[%s9697_s5 + $0x30] ss:$8 sps:$4 sm:$0xff]   ;;  %v7128_v54 = vld [vmem:[%s9697_s5 + $0x54] ss:$8 sps:$4 sm:$0xff]  }
 0x20b   : > { %3760 = vmatprep.subr.bf16.mxu0 %v7086_v59  ;;  %v7131_v59 = vld [vmem:[%s9697_s5 + $0x154] ss:$8 sps:$4 sm:$0xff]  }
 0x20d   : > { %3780 = vmatpush1.bf16.msra.mxu1 %v7068_v10  ;;  %v7120_v10 = vld [vmem:[%s9697_s5 + $0x40] ss:$8 sps:$4 sm:$0xff]  }
 0x20e   : > { %3761 = vmatpush1.bf16.msra.mxu0 %v7084_v8  ;;  %4142 = vmatprep.subr.bf16.mxu1 %v7101_v15  ;;  %v7134_v8 = vld [vmem:[%s9697_s5 + $0x64] ss:$8 sps:$4 sm:$0xff]   ;;  %v7162_v15 = vld [vmem:[%s9697_s5 + $0xb0] ss:$8 sps:$4 sm:$0xff]  }
 0x20f   : > { %3762 = vmatprep.subr.bf16.mxu0 %v7089_v18  ;;  %v7132_v18 = vld [vmem:[%s9697_s5 + $0x60] ss:$8 sps:$4 sm:$0xff]  }
 0x210   : > { %6126 = vmatmul.mubr.msk.bf16.vlgmr.msra.gmra.mrb[32].mxu1 %vm2607_vm7, %v3347_v5  ;;  %v7129_v5 = vld [vmem:[%s9697_s5 + $0x150] ss:$8 sps:$4 sm:$0xff]   ;;  %vm4722_vm7 = vmor %vm4721_vm13, %vm8069_vm4  ;;  %vm5456_vm4 = vcmask 122880  }
 0x211   : > { %4143 = vmatpush1.bf16.msra.mxu1 %v7099_v40 }
 0x212   : > { %3763 = vmatpush1.bf16.msra.mxu0 %v7087_v4  ;;  %4144 = vmatprep.subr.bf16.mxu1 %v7107_v6  ;;  %v7137_v4 = vld [vmem:[%s9697_s5 + $0x164] ss:$8 sps:$4 sm:$0xff]  }
 0x213   : > { %3764 = vmatprep.subr.bf16.mxu0 %v7092_v0  ;;  %v7140_v0 = vld [vmem:[%s9697_s5 + $0x74] ss:$8 sps:$4 sm:$0xff]  }
 0x215   : > { %4145 = vmatpush1.bf16.msra.mxu1 %v7105_v13  ;;  %v7170_v13 = vld [vmem:[%s9697_s5 + $0xc4] ss:$8 sps:$4 sm:$0xff]  }
 0x216   : > { %3765 = vmatpush1.bf16.msra.mxu0 %v7090_v58  ;;  %4146 = vmatprep.subr.bf16.mxu1 %v7113_v25  ;;  %v7138_v58 = vld [vmem:[%s9697_s5 + $0x70] ss:$8 sps:$4 sm:$0xff]   ;;  %v7173_v25 = vld [vmem:[%s9697_s5 + $0x1c4] ss:$8 sps:$4 sm:$0xff]  }
 0x217   : > { %3766 = vmatprep.subr.bf16.mxu0 %v7095_v21  ;;  %v7143_v21 = vld [vmem:[%s9697_s5 + $0x174] ss:$8 sps:$4 sm:$0xff]  }
 0x219   : > { %4147 = vmatpush1.bf16.msra.mxu1 %v7111_v31  ;;  %v7182_v31 = vld [vmem:[%s9697_s5 + $0xe4] ss:$8 sps:$4 sm:$0xff]  }
 0x21a   : > { %3767 = vmatpush1.bf16.msra.mxu0 %v7093_v44  ;;  %4148 = vmatprep.subr.bf16.mxu1 %v7119_v24  ;;  %v7146_v44 = vld [vmem:[%s9697_s5 + $0x84] ss:$8 sps:$4 sm:$0xff]   ;;  %v7183_v24 = vld [vmem:[%s9697_s5 + $0x1e0] ss:$8 sps:$4 sm:$0xff]  }
 0x21b   : > { %4354 = vmatprep.subr.bf16.mxu0 %v7098_v19 }
 0x21d   : > { %3769 = vmatmul.mubr.bf16.vlgmr.msra.gmra.mrb[40].mxu0 %v3333_v42  ;;  %4149 = vmatpush1.bf16.msra.mxu1 %v7117_v37  ;;  %v7147_v42 = vld [vmem:[%s9697_s5 + $0x180] ss:$8 sps:$4 sm:$0xff]   ;;  %v7191_v37 = vld [vmem:[%s9697_s5 + $0x1f4] ss:$8 sps:$4 sm:$0xff]  }
 0x21e   : > { %4355 = vmatpush1.bf16.msra.mxu0 %v7096_v30  ;;  %4150 = vmatprep.subr.bf16.mxu1 %v7125_v48  ;;  %v7186_v48 = vld [vmem:[%s9697_s5 + $0xf0] ss:$8 sps:$4 sm:$0xff]  }
 0x21f   : > { %4356 = vmatprep.subr.bf16.mxu0 %v7104_v23 }
 0x221   : > { %4151 = vmatpush1.bf16.msra.mxu1 %v7123_v50 }
 0x222   : > { %4357 = vmatpush1.bf16.msra.mxu0 %v7102_v20  ;;  %4152 = vmatprep.subr.bf16.mxu1 %v7131_v59  ;;  %v7165_v20 = vld [vmem:[%s9697_s5 + $0x1b0] ss:$8 sps:$4 sm:$0xff]  }
 0x223   : > { %4358 = vmatprep.subr.bf16.mxu0 %v7110_v46 }
 0x225   : > { %4153 = vmatpush1.bf16.msra.mxu1 %v7129_v5  ;;  %v7194_v5 = vld [vmem:[%s9697_s5 + $0x204] ss:$8 sps:$4 sm:$0xff]  }
 0x226   : > { %4359 = vmatpush1.bf16.msra.mxu0 %v7108_v55  ;;  %4154 = vmatprep.subr.bf16.mxu1 %v7137_v4  ;;  %v7179_v55 = vld [vmem:[%s9697_s5 + $0x1d4] ss:$8 sps:$4 sm:$0xff]  }
 0x227   : > { %4360 = vmatprep.subr.bf16.mxu0 %v7116_v14  ;;  %v7185_v14 = vld [vmem:[%s9697_s5 + $0x1e4] ss:$8 sps:$4 sm:$0xff]  }
 0x229   : > { %4155 = vmatpush1.bf16.msra.mxu1 %v7135_v63 }
 0x22a   : > { %4361 = vmatpush1.bf16.msra.mxu0 %v7114_v32  ;;  %4156 = vmatprep.subr.bf16.mxu1 %v7143_v21  ;;  %v7188_v32 = vld [vmem:[%s9697_s5 + $0xf4] ss:$8 sps:$4 sm:$0xff]  }
 0x22b   : > { %4362 = vmatprep.subr.bf16.mxu0 %v7122_v38 }
 0x22d   : > { %4157 = vmatpush1.bf16.msra.mxu1 %v7141_v51 }
 0x22e   : > { %4363 = vmatpush1.bf16.msra.mxu0 %v7120_v10  ;;  %4158 = vmatprep.subr.bf16.mxu1 %v7149_v22 }
 0x22f   : > { %4364 = vmatprep.subr.bf16.mxu0 %v7128_v54  ;;  %v7189_v54 = vld [vmem:[%s9697_s5 + $0x1f0] ss:$8 sps:$4 sm:$0xff]  }
 0x231   : > { %4159 = vmatpush1.bf16.msra.mxu1 %v7147_v42 }
 0x232   : > { %4365 = vmatpush1.bf16.msra.mxu0 %v7126_v12 }
 0x233   : > { %4366 = vmatprep.subr.bf16.mxu0 %v7134_v8 }
 0x236   : > { %4367 = vmatpush1.bf16.msra.mxu0 %v7132_v18 }
 0x237   : > { %4368 = vmatprep.subr.bf16.mxu0 %v7140_v0 }
 0x23a   : > { %4369 = vmatpush1.bf16.msra.mxu0 %v7138_v58 }
 0x23b   : > { %4370 = vmatprep.subr.bf16.mxu0 %v7146_v44 }
 0x23e   : > { %4371 = vmatpush1.bf16.msra.mxu0 %v7144_v27 }
 0x25b   : > { %v2645_v47 = vpop.f32.mrb[20].mxu1 }
 0x25c   : > { %v2647_v9 = vpop.f32.mrb[21].mxu1 }
 0x25d   : > { %v2686_v43 = vpop.f32.mrb[24].mxu0  ;;  %v2649_v53 = vpop.f32.mrb[22].mxu1 }
 0x25e   : > { %v2687_v2 = vadd.f32 %v2686_v43, %v2645_v47  ;;  %v2688_v11 = vpop.f32.mrb[25].mxu0  ;;  %v2650_v45 = vpop.f32.mrb[23].mxu1  ;;  %v7150_v47 = vld [vmem:[%s9697_s5 + $0x90] ss:$8 sps:$4 sm:$0xff]   ;;  %v7152_v43 = vld [vmem:[%s9697_s5 + $0x94] ss:$8 sps:$4 sm:$0xff]  }
 0x25f   : > { %v2689_v17 = vadd.f32 %v2688_v11, %v2647_v9  ;;  %v2690_v7 = vpop.f32.mrb[26].mxu0  ;;  %v7155_v9 = vld [vmem:[%s9697_s5 + $0x194] ss:$8 sps:$4 sm:$0xff]   ;;  %v7158_v11 = vld [vmem:[%s9697_s5 + $0xa4] ss:$8 sps:$4 sm:$0xff]   ;;  %4372 = vmatprep.subr.bf16.mxu0 %v7152_v43 }
 0x260   : > { %v2691_v49 = vpop.f32.mrb[27].mxu0  ;;  %4160 = vmatprep.subr.bf16.mxu1 %v7155_v9  ;;  %4373 = vmatpush1.bf16.msra.mxu0 %v7150_v47  ;;  %v7156_v53 = vld [vmem:[%s9697_s5 + $0xa0] ss:$8 sps:$4 sm:$0xff]   ;;  %v7164_v45 = vld [vmem:[%s9697_s5 + $0xb4] ss:$8 sps:$4 sm:$0xff]  }
 0x261   : > { %4374 = vmatprep.subr.bf16.mxu0 %v7158_v11  ;;  %v7159_v7 = vld [vmem:[%s9697_s5 + $0x1a0] ss:$8 sps:$4 sm:$0xff]   ;;  %v7167_v49 = vld [vmem:[%s9697_s5 + $0x1b4] ss:$8 sps:$4 sm:$0xff]  }
 0x262   : > { %v3820_v11 = vld [vmem:[%s9696_s4] sm:$0x3] }
 0x264   : > { %4375 = vmatpush1.bf16.msra.mxu0 %v7156_v53 }
 0x265   : > { %4376 = vmatprep.subr.bf16.mxu0 %v7164_v45  ;;  %v7342_v45 = vmov 1983009808  }
 0x268   : > { %v2727_v57 = vpop.f32.mrb[28].mxu0  ;;  %4377 = vmatpush1.bf16.msra.mxu0 %v7162_v15 }
 0x269   : > { %v9006_v52 = vadd.f32 %v2727_v57, %v2687_v2  ;;  %v2729_v35 = vpop.f32.mrb[29].mxu0  ;;  %v7153_v2 = vld [vmem:[%s9697_s5 + $0x190] ss:$8 sps:$4 sm:$0xff]   ;;  %v7168_v57 = vld [vmem:[%s9697_s5 + $0xc0] ss:$8 sps:$4 sm:$0xff]   ;;  %4378 = vmatprep.subr.bf16.mxu0 %v7170_v13 }
 0x26a   : > { %v9011_v34 = vadd.f32 %v2729_v35, %v2689_v17  ;;  %v2731_v3 = vpop.f32.mrb[30].mxu0  ;;  %v7161_v17 = vld [vmem:[%s9697_s5 + $0x1a4] ss:$8 sps:$4 sm:$0xff]   ;;  %4161 = vmatpush1.bf16.msra.mxu1 %v7153_v2  ;;  %v7176_v35 = vld [vmem:[%s9697_s5 + $0xd4] ss:$8 sps:$4 sm:$0xff]  }
 0x26b   : > { %v2732_v56 = vpop.f32.mrb[31].mxu0  ;;  %4162 = vmatprep.subr.bf16.mxu1 %v7161_v17  ;;  %v7177_v3 = vld [vmem:[%s9697_s5 + $0x1d0] ss:$8 sps:$4 sm:$0xff]  }
 0x26c   : > { %4379 = vmatpush1.bf16.msra.mxu0 %v7168_v57  ;;  %v7180_v56 = vld [vmem:[%s9697_s5 + $0xe0] ss:$8 sps:$4 sm:$0xff]  }
 0x26d   : > { %4380 = vmatprep.subr.bf16.mxu0 %v7176_v35 }
 0x26e   : > { %4163 = vmatpush1.bf16.msra.mxu1 %v7159_v7 }
 0x26f   : > { %4164 = vmatprep.subr.bf16.mxu1 %v7167_v49  ;;  %v3842_v49 = vunpack.c.l.s4 %v7342_v45  ;;  %v7206_v45 = vld [vmem:[%s9697_s5 + $0x244] ss:$8 sps:$4 sm:$0xff]  }
 0x272   : > { %4165 = vmatpush1.bf16.msra.mxu1 %v7165_v20 }
 0x273   : > { %4166 = vmatprep.subr.bf16.mxu1 %v7173_v25 }
 0x29b   : > { %v3128_v30 = vpop.f32.mrb[24].mxu1 }
 0x29c   : > { %v3129_v19 = vadd.f32 %v3128_v30, %v9006_v52  ;;  %v3130_v40 = vpop.f32.mrb[25].mxu1  ;;  %v7171_v52 = vld [vmem:[%s9697_s5 + $0x1c0] ss:$8 sps:$4 sm:$0xff]  }
 0x29d   : > { %v3131_v23 = vadd.f32 %v3130_v40, %v9011_v34  ;;  %v3132_v6 = vpop.f32.mrb[26].mxu1  ;;  %v7174_v34 = vld [vmem:[%s9697_s5 + $0xd0] ss:$8 sps:$4 sm:$0xff]   ;;  %4167 = vmatpush1.bf16.msra.mxu1 %v7171_v52  ;;  %v3825_v40 = vrot.slane %v3820_v11, %v8118_v61 }
 0x29e   : > { %v3133_v46 = vpop.f32.mrb[27].mxu1  ;;  %4168 = vmatprep.subr.bf16.mxu1 %v7179_v55  ;;  %4381 = vmatpush1.bf16.msra.mxu0 %v7174_v34  ;;  %v3829_v6 = vrot.slane %v3820_v11, %v8127_v1  ;;  %v7200_v11 = vld [vmem:[%s9697_s5 + $0x224] ss:$8 sps:$4 sm:$0xff]  }
 0x29f   : > { %4382 = vmatprep.subr.bf16.mxu0 %v7182_v31  ;;  %v3843_v46 = vunpack.c.0.s8 %v3842_v49  ;;  %v7204_v49 = vld [vmem:[%s9697_s5 + $0x240] ss:$8 sps:$4 sm:$0xff]  }
 0x2a1   : > { %4169 = vmatpush1.bf16.msra.mxu1 %v7177_v3  ;;  %v3846_v55 = vsub.s32 %v3843_v46, %v8115_v60  ;;  %v3850_v3 = vld [vmem:[#allocation3] sm:$0x5]  ;;  %v7221_v46 = vld [vmem:[%s9697_s5 + $0x294] ss:$8 sps:$4 sm:$0xff]  }
 0x2a2   : > { %4170 = vmatprep.subr.bf16.mxu1 %v7185_v14  ;;  %4383 = vmatpush1.bf16.msra.mxu0 %v7180_v56  ;;  %v3860_v14 = vld [vmem:[#allocation3 + $0x4] sm:$0x5] }
 0x2a3   : > { %4384 = vmatprep.subr.bf16.mxu0 %v7188_v32 }
 0x2a5   : > { %4171 = vmatpush1.bf16.msra.mxu1 %v7183_v24 }
 0x2a6   : > { %4172 = vmatprep.subr.bf16.mxu1 %v7191_v37  ;;  %4385 = vmatpush1.bf16.msra.mxu0 %v7186_v48 }
 0x2a7   : > { %4877 = vmatprep.subr.bf16.mxu0 %v9821_v62 }
 0x2a8   : > { %v3169_v38 = vpop.f32.mrb[32].mxu0 }
 0x2a9   : > { %v3170_v10 = vadd.f32 %v3169_v38, %v3129_v19  ;;  %v3171_v50 = vpop.f32.mrb[33].mxu0  ;;  %4173 = vmatpush1.bf16.msra.mxu1 %v7189_v54  ;;  %v3882_v38 = vld [vmem:[#allocation3] sm:$0xa]  ;;  %v3890_v54 = vld [vmem:[#allocation3 + $0x4] sm:$0xa] }
 0x2aa   : > { %v3172_v59 = vadd.f32 %v3171_v50, %v3131_v23  ;;  %v3173_v12 = vpop.f32.mrb[34].mxu0  ;;  %4614 = vmatprep.subr.bf16.mxu1 %v7194_v5 }
 0x2ab   : > { %v3174_v8 = vpop.f32.mrb[35].mxu0 }
 0x2b0   : > { %v3210_v18 = vpop.f32.mrb[36].mxu0 }
 0x2b1   : > { %v3211_v4 = vadd.f32 %v3210_v18, %v3170_v10  ;;  %v3212_v63 = vpop.f32.mrb[37].mxu0 }
 0x2b2   : > { %v3213_v0 = vadd.f32 %v3212_v63, %v3172_v59  ;;  %v3214_v58 = vpop.f32.mrb[38].mxu0 }
 0x2b3   : > { %v3215_v21 = vpop.f32.mrb[39].mxu0 }
 0x2db   : > { %v3729_v51 = vpop.f32.mrb[28].mxu1 }
 0x2dc   : > { %v3731_v44 = vpop.f32.mrb[29].mxu1 }
 0x2dd   : > { %v3733_v27 = vpop.f32.mrb[30].mxu1 }
 0x2de   : > { %v3734_v22 = vpop.f32.mrb[31].mxu1 }
 0x2e3   : > { %v3811_v42 = vpop.f32.mrb[32].mxu1 }
 0x2e4   : > { %v3813_v47 = vpop.f32.mrb[33].mxu1 }
 0x2e5   : > { %v3815_v43 = vpop.f32.mrb[34].mxu1 }
 0x2e6   : > { %v3816_v2 = vpop.f32.mrb[35].mxu1 }
 0x2e7   : > { %v7195_v2 = vld [vmem:[%s9697_s5 + $0x210] ss:$8 sps:$4 sm:$0xff]  }
 0x2f0   : > { %v3770_v9 = vpop.f32.mrb[40].mxu0 }
 0x2f1   : > { %v3771_v17 = vadd.f32 %v3770_v9, %v3729_v51  ;;  %v3772_v53 = vpop.f32.mrb[41].mxu0 }
 0x2f2   : > { %v3773_v7 = vadd.f32 %v3772_v53, %v3731_v44  ;;  %v3774_v30 = vpop.f32.mrb[42].mxu0  ;;  %v7203_v53 = vld [vmem:[%s9697_s5 + $0x234] ss:$8 sps:$4 sm:$0xff]  }
 0x2f3   : > { %v3812_v19 = vadd.f32 %v3811_v42, %v3771_v17  ;;  %v3775_v15 = vpop.f32.mrb[43].mxu0  ;;  %v7192_v42 = vld [vmem:[%s9697_s5 + $0x200] ss:$8 sps:$4 sm:$0xff]   ;;  %v7209_v30 = vld [vmem:[%s9697_s5 + $0x254] ss:$8 sps:$4 sm:$0xff]  }
 0x2f4   : > { %v3814_v23 = vadd.f32 %v3813_v47, %v3773_v7  ;;  %v7198_v17 = vld [vmem:[%s9697_s5 + $0x220] ss:$8 sps:$4 sm:$0xff]   ;;  %v7201_v7 = vld [vmem:[%s9697_s5 + $0x230] ss:$8 sps:$4 sm:$0xff]  }
 0x2f5   : > { %v3818_v20 = vadd.f32 %v3812_v19, %v3211_v4  ;;  %v7207_v19 = vld [vmem:[%s9697_s5 + $0x250] ss:$8 sps:$4 sm:$0xff]   ;;  %v7210_v15 = vld [vmem:[%s9697_s5 + $0x260] ss:$8 sps:$4 sm:$0xff]  }
 0x2f6   : > { %v3819_v13 = vadd.f32 %v3814_v23, %v3213_v0  ;;  %v7215_v23 = vld [vmem:[%s9697_s5 + $0x274] ss:$8 sps:$4 sm:$0xff]  }
 0x2f7   : > { %v3832_v25 = vadd.f32 %v3825_v40, %v3818_v20  ;;  %v7212_v40 = vld [vmem:[%s9697_s5 + $0x264] ss:$8 sps:$4 sm:$0xff]  }
 0x2f8   : > { %v3833_v57 = vadd.f32 %v3829_v6, %v3819_v13  ;;  %v7213_v6 = vld [vmem:[%s9697_s5 + $0x270] ss:$8 sps:$4 sm:$0xff]   ;;  %v7218_v20 = vld [vmem:[%s9697_s5 + $0x284] ss:$8 sps:$4 sm:$0xff]   ;;  %v7216_v13 = vld [vmem:[%s9697_s5 + $0x280] ss:$8 sps:$4 sm:$0xff]  }
 0x2f9   : > { %v3834_v52 = vmax.f32 %v3832_v25, 0.0  ;;  %v7219_v25 = vld [vmem:[%s9697_s5 + $0x290] ss:$8 sps:$4 sm:$0xff]  }
 0x2fa   : > { %v3835_v35 = vmax.f32 %v3833_v57, 0.0  ;;  %v7224_v57 = vld [vmem:[%s9697_s5 + $0x2a4] ss:$8 sps:$4 sm:$0xff]  }
 0x2fc   : > { %v6127_v34 = vpack.c.bf16 %v3835_v35, %v3834_v52  ;;  %v7222_v52 = vld [vmem:[%s9697_s5 + $0x2a0] ss:$8 sps:$4 sm:$0xff]   ;;  %v7227_v35 = vld [vmem:[%s9697_s5 + $0x2b4] ss:$8 sps:$4 sm:$0xff]  }
 0x2fe   : > { %v3847_v31 = vrot.slane %v6127_v34, %v3846_v55  ;;  %v7225_v55 = vld [vmem:[%s9697_s5 + $0x2b0] ss:$8 sps:$4 sm:$0xff]   ;;  %v7230_v34 = vld [vmem:[%s9697_s5 + $0x2c4] ss:$8 sps:$4 sm:$0xff]  }
 0x300   : > { %v3851_v56 = vsel %vm3849_vm9, %v3847_v31, %v3850_v3  ;;  %v3854_v24 = vshrl.u32 %v3847_v31, 16  ;;  %v3878_v32 = vcombine.high %v3847_v31, %v3847_v31  ;;  %v3863_v48 = vshll.u32 %v3847_v31, 16  ;;  %v7228_v3 = vld [vmem:[%s9697_s5 + $0x2c0] ss:$8 sps:$4 sm:$0xff]  }
 0x301   : > { %3852 = vst [vmem:[#allocation3] sm:$0x5] %v3851_v56  ;;  %v6130_v4 = vrot.slane %v3847_v31, 9  ;;  %v7233_v31 = vld [vmem:[%s9697_s5 + $0x2d4] ss:$8 sps:$4 sm:$0xff]  }
 0x302   : > { %v3861_v37 = vsel %vm3849_vm9, %v3854_v24, %v3860_v14  ;;  %v3879_v10 = vrot.slane %v3878_v32, 7  ;;  %v3886_v50 = vshrl.u32 %v3878_v32, 16  ;;  %v6129_v12 = vrot.slane %v3863_v48, 9  ;;  %v7231_v14 = vld [vmem:[%s9697_s5 + $0x2d0] ss:$8 sps:$4 sm:$0xff]  }
 0x303   : > { %3862 = vst [vmem:[#allocation3 + $0x4] sm:$0x5] %v3861_v37  ;;  %v3893_v29 = vshll.u32 %v3878_v32, 16  ;;  %v7236_v56 = vld [vmem:[%s9697_s5 + $0x2e4] ss:$8 sps:$4 sm:$0xff]  }
 0x304   : > { %v3883_v41 = vsel %vm9822_vm6, %v3879_v10, %v3882_v38  ;;  %v3888_v59 = vrot.slane %v3886_v50, 7  ;;  %v7234_v24 = vld [vmem:[%s9697_s5 + $0x2e0] ss:$8 sps:$4 sm:$0xff]   ;;  %v7237_v38 = vld [vmem:[%s9697_s5 + $0x2f0] ss:$8 sps:$4 sm:$0xff]  }
 0x305   : > { %3884 = vst [vmem:[#allocation3] sm:$0xa] %v3883_v41  ;;  %v7243_v41 = vld [vmem:[%s9699_s7 + $0xc0] sm:$0xff]  }
 0x306   : > { %v3891_v5 = vsel %vm9823_vm3, %v3888_v59, %v3890_v54  ;;  %v7240_v54 = vld [vmem:[%s9699_s7 + $0x60] sm:$0xff]   ;;  %v7241_v59 = vld [vmem:[%s9699_s7 + $0x68] sm:$0xff]  }
 0x307   : > { %3892 = vst [vmem:[#allocation3 + $0x4] sm:$0xa] %v3891_v5  ;;  %v7242_v5 = vld [vmem:[%s9699_s7 + $0x70] sm:$0xff]  }
 0x308   : > { %v3869_v8 = vld [vmem:[#allocation3] sm:$0x5] }
 0x309   : > { %v3870_v18 = vsel %vm9824_vm5, %v6129_v12, %v3869_v8  ;;  %v7245_v12 = vld [vmem:[%s9699_s7 + $0xc8] sm:$0xff]   ;;  %v7244_v8 = vld [vmem:[%s9699_s7 + $0x78] sm:$0xff]  }
 0x30a   : > { %3871 = vst [vmem:[#allocation3] sm:$0x5] %v3870_v18  ;;  %v3875_v63 = vld [vmem:[#allocation3 + $0x4] sm:$0x5]  ;;  %v7246_v18 = vld [vmem:[%s9699_s7 + $0x80] sm:$0xff]  }
 0x30b   : > { %v3876_v36 = vsel %vm9825_vm2, %v6130_v4, %v3875_v63  ;;  %v7247_v4 = vld [vmem:[%s9699_s7 + $0xd0] sm:$0xff]   ;;  %v7248_v63 = vld [vmem:[%s9699_s7 + $0x88] sm:$0xff]  }
 0x30c   : > { %3877 = vst [vmem:[#allocation3 + $0x4] sm:$0x5] %v3876_v36  ;;  %v3897_v0 = vld [vmem:[#allocation3] sm:$0xa]  ;;  %v7249_v36 = vld [vmem:[%s9699_s7 + $0xd8] sm:$0xff]  }
 0x30d   : > { %v3898_v58 = vsel %vm9826_vm8, %v3893_v29, %v3897_v0  ;;  %v7250_v29 = vld [vmem:[%s9699_s7 + $0x90] sm:$0xff]   ;;  %v7251_v0 = vld [vmem:[%s9699_s7 + $0xe0] sm:$0xff]  }
 0x30e   : > { %v3901_v21 = vld [vmem:[#allocation3 + $0x4] sm:$0xa]  ;;  %3899 = vst [vmem:[#allocation3] sm:$0xa] %v3898_v58  ;;  %v7252_v58 = vld [vmem:[%s9699_s7 + $0x98] sm:$0xff]  }
 0x30f   : > { %v3902_v28 = vsel %vm9827_vm11, %v3878_v32, %v3901_v21  ;;  %v7239_v32 = vld [vmem:[%s9697_s5 + $0x2f4] ss:$8 sps:$4 sm:$0xff]   ;;  %v7253_v21 = vld [vmem:[%s9699_s7 + $0xe8] sm:$0xff]  }
 0x310   : > { %3903 = vst [vmem:[#allocation3 + $0x4] sm:$0xa] %v3902_v28  ;;  %v7254_v28 = vld [vmem:[%s9699_s7 + $0xa0] sm:$0xff]  }
 0x315   : > { %v9218_v51 = vld.sshfl [vmem:[#allocation3] sm:$0x33 pattern:$0x76325410] }
 0x316   : > { %v4191_v44 = vcombine.high %v9218_v51, %v9218_v51  ;;  %v4441_v37 = vshll.u32 %v9218_v51, 16  ;;  %v4439_v10 = vshrl.u32 %v9218_v51, 16 }
 0x317   : > { %v6163_v27 = vld.sshfl [vmem:[#allocation3 + $0x4] sm:$0x33 pattern:$0x76325410] }
 0x318   : > { %4386 = vmatprep.mubr.bf16.mxu0 %v4191_v44  ;;  %v3979_v22 = vcombine.high %v6163_v27, %v6163_v27  ;;  %v4448_v47 = vshll.u32 %v4191_v44, 16  ;;  %v4446_v39 = vshrl.u32 %v4191_v44, 16  ;;  %v4443_v48 = vrot.slane %v4441_v37, 1  ;;  %v7256_v44 = vld [vmem:[%s9699_s7 + $0xa8] sm:$0xff]   ;;  %v4696_v37 = vld [vmem:[#allocation4] sm:$0x3] }
 0x319   : > { %4387 = vmatmul.mubr.bf16.vlgmr.msra.gmra.mrb[44].mxu0 %v9218_v51  ;;  %v7255_v51 = vld [vmem:[%s9699_s7 + $0xf0] sm:$0xff]  }
 0x31a   : > { %4174 = vmatprep.mubr.bf16.mxu1 %v3979_v22  ;;  %v4450_v43 = vrot.slane %v4448_v47, 1  ;;  %v4444_v50 = vor.u32 %v4443_v48, %v4439_v10  ;;  %4878 = vmatpush1.bf16.msra.mxu0 %v7240_v54  ;;  %v7258_v22 = vld [vmem:[%s9699_s7 + $0xb0] sm:$0xff]   ;;  %v7260_v47 = vld [vmem:[%s9699_s7 + $0xb8] sm:$0xff]  }
 0x31b   : > { %4175 = vmatmul.mubr.bf16.vlgmr.msra.gmra.mrb[36].mxu1 %v6163_v27  ;;  %4879 = vmatprep.subr.bf16.mxu0 %v9821_v62  ;;  %v7257_v27 = vld [vmem:[%s9699_s7 + $0xf8] sm:$0xff]  }
 0x31c   : > { %4615 = vmatpush1.bf16.msra.mxu1 %v7192_v42  ;;  %v4451_v9 = vor.u32 %v4450_v43, %v4446_v39  ;;  %v7259_v42 = vld [vmem:[%s9699_s7 + $0x100] sm:$0xff]   ;;  %v7263_v39 = vld [vmem:[%s9699_s7 + $0x110] sm:$0xff]   ;;  %v7265_v43 = vld [vmem:[%s9699_s7 + $0x118] sm:$0xff]  }
 0x31d   : > { %4616 = vmatprep.subr.bf16.mxu1 %v7197_v33  ;;  %v7261_v33 = vld [vmem:[%s9699_s7 + $0x108] sm:$0xff]   ;;  %v4706_v48 = vld [vmem:[#allocation4 + $0x2] sm:$0x3] }
 0x31e   : > { %4646 = vmatprep.mubr.bf16.mxu1 %v4451_v9  ;;  %4880 = vmatpush1.bf16.msra.mxu0 %v7241_v59 }
 0x31f   : > { %4881 = vmatprep.subr.bf16.mxu0 %v9821_v62 }
 0x320   : > { %4617 = vmatpush1.bf16.msra.mxu1 %v7195_v2 }
 0x321   : > { %4618 = vmatprep.subr.bf16.mxu1 %v7200_v11 }
 0x322   : > { %4882 = vmatpush1.bf16.msra.mxu0 %v7242_v5 }
 0x323   : > { %4883 = vmatprep.subr.bf16.mxu0 %v9821_v62 }
 0x324   : > { %4619 = vmatpush1.bf16.msra.mxu1 %v7198_v17 }
 0x325   : > { %4620 = vmatprep.subr.bf16.mxu1 %v7203_v53 }
 0x326   : > { %4884 = vmatpush1.bf16.msra.mxu0 %v7244_v8 }
 0x327   : > { %4885 = vmatprep.subr.bf16.mxu0 %v9821_v62 }
 0x328   : > { %4621 = vmatpush1.bf16.msra.mxu1 %v7201_v7 }
 0x329   : > { %4622 = vmatprep.subr.bf16.mxu1 %v7206_v45 }
 0x32a   : > { %4886 = vmatpush1.bf16.msra.mxu0 %v7246_v18 }
 0x32b   : > { %4887 = vmatprep.subr.bf16.mxu0 %v9821_v62 }
 0x32c   : > { %4623 = vmatpush1.bf16.msra.mxu1 %v7204_v49 }
 0x32d   : > { %4624 = vmatprep.subr.bf16.mxu1 %v7209_v30 }
 0x32e   : > { %4888 = vmatpush1.bf16.msra.mxu0 %v7248_v63 }
 0x32f   : > { %4889 = vmatprep.subr.bf16.mxu0 %v9821_v62 }
 0x330   : > { %4625 = vmatpush1.bf16.msra.mxu1 %v7207_v19 }
 0x331   : > { %4626 = vmatprep.subr.bf16.mxu1 %v7212_v40  ;;  %v4657_v40 = vld [vmem:[%s9698_s6] sm:$0x3] }
 0x332   : > { %4890 = vmatpush1.bf16.msra.mxu0 %v7250_v29 }
 0x333   : > { %4891 = vmatprep.subr.bf16.mxu0 %v9821_v62 }
 0x334   : > { %4627 = vmatpush1.bf16.msra.mxu1 %v7210_v15  ;;  %v7343_v15 = vmov 1966171168  }
 0x335   : > { %4628 = vmatprep.subr.bf16.mxu1 %v7215_v23  ;;  %v4679_v23 = vunpack.c.l.s4 %v7343_v15 }
 0x336   : > { %4892 = vmatpush1.bf16.msra.mxu0 %v7252_v58 }
 0x337   : > { %4893 = vmatprep.subr.bf16.mxu0 %v9821_v62 }
 0x338   : > { %4629 = vmatpush1.bf16.msra.mxu1 %v7213_v6  ;;  %v4662_v6 = vrot.slane %v4657_v40, %v8118_v61 }
 0x339   : > { %4630 = vmatprep.subr.bf16.mxu1 %v7218_v20 }
 0x33a   : > { %4894 = vmatpush1.bf16.msra.mxu0 %v7254_v28 }
 0x33b   : > { %4895 = vmatprep.subr.bf16.mxu0 %v9821_v62 }
 0x33c   : > { %4631 = vmatpush1.bf16.msra.mxu1 %v7216_v13  ;;  %v4666_v13 = vrot.slane %v4657_v40, %v8127_v1  ;;  %v5238_v40 = vld [vmem:[%s9701_s9 + $0x30] sm:$0xff] }
 0x33d   : > { %4632 = vmatprep.subr.bf16.mxu1 %v7221_v46 }
 0x33e   : > { %4896 = vmatpush1.bf16.msra.mxu0 %v7256_v44  ;;  %v7267_v44 = vld [vmem:[%s9699_s7 + $0x18] sm:$0xff]  }
 0x33f   : > { %4897 = vmatprep.subr.bf16.mxu0 %v9821_v62 }
 0x340   : > { %4633 = vmatpush1.bf16.msra.mxu1 %v7219_v25 }
 0x341   : > { %4634 = vmatprep.subr.bf16.mxu1 %v7224_v57  ;;  %v4680_v57 = vunpack.c.0.s8 %v4679_v23  ;;  %v5241_v23 = vld [vmem:[%s9701_s9 + $0x48] sm:$0xff] }
 0x342   : > { %4898 = vmatpush1.bf16.msra.mxu0 %v7258_v22  ;;  %v7269_v22 = vld [vmem:[%s9699_s7 + $0x28] sm:$0xff]  }
 0x343   : > { %4899 = vmatprep.subr.bf16.mxu0 %v9821_v62 }
 0x344   : > { %4635 = vmatpush1.bf16.msra.mxu1 %v7222_v52 }
 0x345   : > { %4636 = vmatprep.subr.bf16.mxu1 %v7227_v35 }
 0x346   : > { %4900 = vmatpush1.bf16.msra.mxu0 %v7260_v47  ;;  %v7271_v47 = vld [vmem:[%s9699_s7 + $0x38] sm:$0xff]  }
 0x347   : > { %5016 = vmatprep.subr.bf16.mxu0 %v9821_v62 }
 0x348   : > { %4637 = vmatpush1.bf16.msra.mxu1 %v7225_v55 }
 0x349   : > { %4638 = vmatprep.subr.bf16.mxu1 %v7230_v34 }
 0x34c   : > { %4639 = vmatpush1.bf16.msra.mxu1 %v7228_v3 }
 0x34d   : > { %4640 = vmatprep.subr.bf16.mxu1 %v7233_v31 }
 0x350   : > { %4641 = vmatpush1.bf16.msra.mxu1 %v7231_v14  ;;  %v9420_v14 = vsub.s32 %v4680_v57, %v8115_v60  ;;  %v5247_v57 = vld [vmem:[%s9701_s9 + $0x78] sm:$0xff] }
 0x351   : > { %4642 = vmatprep.subr.bf16.mxu1 %v7236_v56 }
 0x354   : > { %4643 = vmatpush1.bf16.msra.mxu1 %v7234_v24 }
 0x355   : > { %4644 = vmatprep.subr.bf16.mxu1 %v7239_v32 }
 0x358   : > { %4645 = vmatpush1.bf16.msra.mxu1 %v7237_v38 }
 0x359   : > { %5187 = vmatprep.subr.bf16.mxu1 %v9821_v62 }
 0x35b   : > { %4647 = vmatmul.mubr.bf16.vlgmr.msra.gmra.mrb[40].mxu1 %v4444_v50 }
 0x35c   : > { %5188 = vmatpush1.bf16.msra.mxu1 %v7243_v41 }
 0x35d   : > { %5189 = vmatprep.subr.bf16.mxu1 %v9821_v62 }
 0x360   : > { %5190 = vmatpush1.bf16.msra.mxu1 %v7245_v12 }
 0x361   : > { %5191 = vmatprep.subr.bf16.mxu1 %v9821_v62 }
 0x364   : > { %5192 = vmatpush1.bf16.msra.mxu1 %v7247_v4  ;;  %v7262_v4 = vld [vmem:[%s9699_s7] sm:$0xff]  }
 0x365   : > { %5193 = vmatprep.subr.bf16.mxu1 %v9821_v62 }
 0x368   : > { %5194 = vmatpush1.bf16.msra.mxu1 %v7249_v36 }
 0x369   : > { %5195 = vmatprep.subr.bf16.mxu1 %v9821_v62 }
 0x36c   : > { %5196 = vmatpush1.bf16.msra.mxu1 %v7251_v0 }
 0x36d   : > { %5197 = vmatprep.subr.bf16.mxu1 %v9821_v62 }
 0x370   : > { %5198 = vmatpush1.bf16.msra.mxu1 %v7253_v21  ;;  %v7266_v21 = vld [vmem:[%s9699_s7 + $0x10] sm:$0xff]  }
 0x371   : > { %5199 = vmatprep.subr.bf16.mxu1 %v9821_v62 }
 0x374   : > { %5200 = vmatpush1.bf16.msra.mxu1 %v7255_v51 }
 0x375   : > { %5201 = vmatprep.subr.bf16.mxu1 %v9821_v62 }
 0x378   : > { %5202 = vmatpush1.bf16.msra.mxu1 %v7257_v27  ;;  %v7268_v27 = vld [vmem:[%s9699_s7 + $0x20] sm:$0xff]  }
 0x379   : > { %5203 = vmatprep.subr.bf16.mxu1 %v9821_v62 }
 0x37c   : > { %5204 = vmatpush1.bf16.msra.mxu1 %v7259_v42  ;;  %v7270_v42 = vld [vmem:[%s9699_s7 + $0x30] sm:$0xff]  }
 0x37d   : > { %5205 = vmatprep.subr.bf16.mxu1 %v9821_v62 }
 0x380   : > { %5206 = vmatpush1.bf16.msra.mxu1 %v7261_v33  ;;  %v7272_v33 = vld [vmem:[%s9699_s7 + $0x40] sm:$0xff]  }
 0x381   : > { %5207 = vmatprep.subr.bf16.mxu1 %v9821_v62 }
 0x384   : > { %5208 = vmatpush1.bf16.msra.mxu1 %v7263_v39  ;;  %v7273_v39 = vld [vmem:[%s9699_s7 + $0x48] sm:$0xff]  }
 0x385   : > { %5209 = vmatprep.subr.bf16.mxu1 %v9821_v62 }
 0x388   : > { %5210 = vmatpush1.bf16.msra.mxu1 %v7265_v43  ;;  %v7274_v43 = vld [vmem:[%s9699_s7 + $0x50] sm:$0xff]  }
 0x3ec   : > { %v4388_v2 = vpop.f32.mrb[44].mxu0 }
 0x3ed   : > { %v4390_v9 = vpop.f32.mrb[45].mxu0 }
 0x3ee   : > { %v4176_v11 = vpop.f32.mrb[36].mxu1  ;;  %v4392_v17 = vpop.f32.mrb[46].mxu0 }
 0x3ef   : > { %v4389_v53 = vadd.f32 %v4388_v2, %v4176_v11  ;;  %v4178_v7 = vpop.f32.mrb[37].mxu1  ;;  %v4393_v45 = vpop.f32.mrb[47].mxu0  ;;  %v7275_v2 = vld [vmem:[%s9699_s7 + $0x58] sm:$0xff]   ;;  %v5232_v17 = vld [vmem:[%s9701_s9] sm:$0xff] }
 0x3f0   : > { %v4391_v49 = vadd.f32 %v4390_v9, %v4178_v7  ;;  %v4180_v30 = vpop.f32.mrb[38].mxu1  ;;  %v5233_v9 = vld [vmem:[%s9701_s9 + $0x8] sm:$0xff]  ;;  %v5235_v11 = vld [vmem:[%s9701_s9 + $0x18] sm:$0xff]  ;;  %v5234_v7 = vld [vmem:[%s9701_s9 + $0x10] sm:$0xff] }
 0x3f1   : > { %v4181_v19 = vpop.f32.mrb[39].mxu1  ;;  %v5239_v45 = vld [vmem:[%s9701_s9 + $0x38] sm:$0xff] }
 0x3f2   : > { %v5236_v19 = vld [vmem:[%s9701_s9 + $0x20] sm:$0xff] }
 0x3f3   : > { %v6521_v15 = vpack.c.bf16 %v5238_v40, %v5236_v19  ;;  %v5351_v19 = vld [vmem:[%s9703_s11 + $0x48] sm:$0xff] }
 0x42e   : > { %v4648_v20 = vpop.f32.mrb[40].mxu1 }
 0x42f   : > { %v4655_v46 = vadd.f32 %v4648_v20, %v4389_v53  ;;  %v4650_v25 = vpop.f32.mrb[41].mxu1  ;;  %v6515_v53 = vpack.c.bf16 %v5235_v11, %v5233_v9  ;;  %v5240_v20 = vld [vmem:[%s9701_s9 + $0x40] sm:$0xff] }
 0x430   : > { %v4656_v52 = vadd.f32 %v4650_v25, %v4391_v49  ;;  %v4652_v35 = vpop.f32.mrb[42].mxu1  ;;  %v6517_v49 = vpack.c.bf16 %v5234_v7, %v5232_v17  ;;  %v5245_v25 = vld [vmem:[%s9701_s9 + $0x68] sm:$0xff]  ;;  %v5228_v17 = vld [vmem:[%s9700_s8] sm:$0x1] }
 0x431   : > { %v4669_v55 = vadd.f32 %v4662_v6, %v4655_v46  ;;  %v4653_v34 = vpop.f32.mrb[43].mxu1  ;;  %v5243_v6 = vld [vmem:[%s9701_s9 + $0x58] sm:$0xff]  ;;  %v5242_v46 = vld [vmem:[%s9701_s9 + $0x50] sm:$0xff] }
 0x432   : > { %v4670_v3 = vadd.f32 %v4666_v13, %v4656_v52  ;;  %v6523_v13 = vpack.c.bf16 %v5243_v6, %v5241_v23  ;;  %v7344_v52 = vmov 0.0   ;;  %v6525_v35 = vpack.c.bf16 %v5242_v46, %v5240_v20  ;;  %v5244_v34 = vld [vmem:[%s9701_s9 + $0x60] sm:$0xff]  ;;  %v5369_v23 = vld [vmem:[%s9703_s11 + $0xd8] sm:$0xff]  ;;  %v5352_v6 = vld [vmem:[%s9703_s11 + $0x50] sm:$0xff] }
 0x433   : > { %v4671_v31 = vmax.f32 %v4669_v55, 0.0  ;;  %v6527_v55 = vpack.c.bf16 %v5247_v57, %v5245_v25  ;;  %v5370_v46 = vld [vmem:[%s9703_s11 + $0xe0] sm:$0xff]  ;;  %v5371_v25 = vld [vmem:[%s9703_s11 + $0xe8] sm:$0xff] }
 0x434   : > { %v4672_v56 = vmax.f32 %v4670_v3, 0.0  ;;  %v5246_v3 = vld [vmem:[%s9701_s9 + $0x70] sm:$0xff] }
 0x436   : > { %v6294_v24 = vpack.c.bf16 %v4672_v56, %v4671_v31  ;;  %v5358_v31 = vld [vmem:[%s9703_s11 + $0x80] sm:$0xff]  ;;  %v5359_v56 = vld [vmem:[%s9703_s11 + $0x88] sm:$0xff] }
 0x438   : > { %v4684_v32 = vrot.slane %v6294_v24, %v9420_v14  ;;  %v5342_v24 = vld [vmem:[%s9703_s11] sm:$0xff] }
 0x43a   : > { %v4691_v38 = vrot.slane %v4684_v32, %v9420_v14  ;;  %v4709_v10 = vcombine.high %v4684_v32, %v4684_v32  ;;  %v5343_v32 = vld [vmem:[%s9703_s11 + $0x8] sm:$0xff] }
 0x43c   : > { %v4697_v50 = vsel %vm4695_vm1, %v4691_v38, %v4696_v37  ;;  %v4700_v54 = vshrl.u32 %v4691_v38, 16  ;;  %v4716_v41 = vrot.slane %v4709_v10, %v9420_v14  ;;  %v6529_v37 = vpack.c.bf16 %v5246_v3, %v5244_v34  ;;  %v5360_v10 = vld [vmem:[%s9703_s11 + $0x90] sm:$0xff]  ;;  %v5373_v3 = vld [vmem:[%s9703_s11 + $0xf8] sm:$0xff] }
 0x43d   : > { %4698 = vst [vmem:[#allocation4] sm:$0x3] %v4697_v50  ;;  %v6531_v38 = vpack.c.bf16 %v5359_v56, %v5358_v31  ;;  %v5361_v50 = vld [vmem:[%s9703_s11 + $0x98] sm:$0xff]  ;;  %v5372_v34 = vld [vmem:[%s9703_s11 + $0xf0] sm:$0xff] }
 0x43e   : > { %v4707_v60 = vsel %vm4695_vm1, %v4700_v54, %v4706_v48  ;;  %v4718_v26 = vshll.u32 %v4716_v41, 16  ;;  %v6533_v48 = vpack.c.bf16 %v5343_v32, %v5342_v24  ;;  %v5344_v54 = vld [vmem:[%s9703_s11 + $0x10] sm:$0xff]  ;;  %v5345_v41 = vld [vmem:[%s9703_s11 + $0x18] sm:$0xff]  ;;  %v6559_v56 = vpack.c.bf16 %v5373_v3, %v5372_v34 }
 0x43f   : > { %4708 = vst [vmem:[#allocation4 + $0x2] sm:$0x3] %v4707_v60  ;;  %v6535_v60 = vpack.c.bf16 %v5361_v50, %v5360_v10  ;;  %6532 = vmatprep.subr.bf16.mxu1 %v6531_v38  ;;  %v5356_v24 = vld [vmem:[%s9703_s11 + $0x70] sm:$0xff]  ;;  %v5357_v32 = vld [vmem:[%s9703_s11 + $0x78] sm:$0xff] }
 0x444   : > { %v4723_v59 = vld [vmem:[#allocation4] sm:$0x3] }
 0x445   : > { %v4724_v12 = vsel %vm4722_vm7, %v4718_v26, %v4723_v59  ;;  %v5362_v26 = vld [vmem:[%s9703_s11 + $0xa0] sm:$0xff]  ;;  %v5363_v59 = vld [vmem:[%s9703_s11 + $0xa8] sm:$0xff] }
 0x446   : > { %4725 = vst [vmem:[#allocation4] sm:$0x3] %v4724_v12  ;;  %v6320_v5 = vld.sshfl [vmem:[#allocation4 + $0x2] sm:$0x11 pattern:$0x75316420]  ;;  %v6537_v12 = vpack.c.bf16 %v5345_v41, %v5344_v54 }
 0x447   : > { %v4785_v8 = vcombine.high %v6320_v5, %v6320_v5  ;;  %v4792_v63 = vrot.slane %v6320_v5, %v9420_v14  ;;  %v6539_v5 = vpack.c.bf16 %v5363_v59, %v5362_v26  ;;  %v5231_v54 = vld [vmem:[%s9702_s10] sm:$0x3] }
 0x449   : > { %v4799_v18 = vrot.slane %v4785_v8, %v9420_v14  ;;  %v5346_v8 = vld [vmem:[%s9703_s11 + $0x20] sm:$0xff] }
 0x44b   : > { %6333 = vmatprep.mubr.msk.bf16.mxu0 %vm4873_vm0, %v4799_v18  ;;  %v5347_v18 = vld [vmem:[%s9703_s11 + $0x28] sm:$0xff] }
 0x44c   : > { %4910 = vmatmul.mubr.bf16.vlgmr.msra.gmra.mrb[48].mxu0 %v4792_v63  ;;  %v5365_v63 = vld [vmem:[%s9703_s11 + $0xb8] sm:$0xff] }
 0x44d   : > { %5017 = vmatpush1.bf16.msra.mxu0 %v7262_v4  ;;  %v6334_v36 = vld.sshfl [vmem:[#allocation4] sm:$0x11 pattern:$0x75316420]  ;;  %v5364_v4 = vld [vmem:[%s9703_s11 + $0xb0] sm:$0xff] }
 0x44e   : > { %5018 = vmatprep.subr.bf16.mxu0 %v9821_v62  ;;  %v4925_v29 = vcombine.high %v6334_v36, %v6334_v36  ;;  %v5097_v0 = vrot.slane %v6334_v36, %v9420_v14  ;;  %v6543_v36 = vpack.c.bf16 %v5365_v63, %v5364_v4 }
 0x450   : > { %v4939_v58 = vrot.slane %v4925_v29, %v9420_v14  ;;  %v5106_v51 = vshrl.u32 %v5097_v0, 16  ;;  %v5348_v29 = vld [vmem:[%s9703_s11 + $0x30] sm:$0xff] }
 0x451   : > { %5019 = vmatpush1.bf16.msra.mxu0 %v7264_v16  ;;  %v6541_v16 = vpack.c.bf16 %v5347_v18, %v5346_v8  ;;  %v5374_v8 = vld [vmem:[%s9704_s12] sm:$0x1] }
 0x452   : > { %6347 = vmatprep.mubr.msk.bf16.mxu0 %vm4873_vm0, %v4939_v58  ;;  %5020 = vmatprep.subr.bf16.mxu0 %v9821_v62  ;;  %v5109_v28 = vshrl.u32 %v4939_v58, 16  ;;  %v5366_v58 = vld [vmem:[%s9703_s11 + $0xc0] sm:$0xff] }
 0x454   : > { %6385 = vmatprep.mubr.msk.bf16.mxu1 %vm4873_vm0, %v5109_v28 }
 0x455   : > { %5021 = vmatpush1.bf16.msra.mxu0 %v7266_v21  ;;  %5220 = vmatmul.mubr.bf16.vlgmr.msra.gmra.mrb[44].mxu1 %v5106_v51  ;;  %v5367_v21 = vld [vmem:[%s9703_s11 + $0xc8] sm:$0xff] }
 0x456   : > { %5022 = vmatprep.subr.bf16.mxu0 %v9821_v62  ;;  %6534 = vmatpush3.bf16.msra.mxu1 %v6533_v48  ;;  %v6547_v51 = vpack.c.bf16 %v5367_v21, %v5366_v58 }
 0x457   : > { %6536 = vmatprep.subr.bf16.mxu1 %v6535_v60 }
 0x459   : > { %5023 = vmatpush1.bf16.msra.mxu0 %v7267_v44 }
 0x45a   : > { %5024 = vmatprep.subr.bf16.mxu0 %v9821_v62  ;;  %6538 = vmatpush3.bf16.msra.mxu1 %v6537_v12 }
 0x45b   : > { %6540 = vmatprep.subr.bf16.mxu1 %v6539_v5 }
 0x45d   : > { %5025 = vmatpush1.bf16.msra.mxu0 %v7268_v27 }
 0x45e   : > { %5026 = vmatprep.subr.bf16.mxu0 %v9821_v62  ;;  %6542 = vmatpush3.bf16.msra.mxu1 %v6541_v16 }
 0x45f   : > { %6544 = vmatprep.subr.bf16.mxu1 %v6543_v36 }
 0x461   : > { %5027 = vmatpush1.bf16.msra.mxu0 %v7269_v22 }
 0x462   : > { %5028 = vmatprep.subr.bf16.mxu0 %v9821_v62 }
 0x465   : > { %5029 = vmatpush1.bf16.msra.mxu0 %v7270_v42 }
 0x466   : > { %5030 = vmatprep.subr.bf16.mxu0 %v9821_v62 }
 0x469   : > { %5031 = vmatpush1.bf16.msra.mxu0 %v7271_v47 }
 0x46a   : > { %5032 = vmatprep.subr.bf16.mxu0 %v9821_v62 }
 0x46d   : > { %5033 = vmatpush1.bf16.msra.mxu0 %v7272_v33 }
 0x46e   : > { %5034 = vmatprep.subr.bf16.mxu0 %v9821_v62 }
 0x471   : > { %5035 = vmatpush1.bf16.msra.mxu0 %v7273_v39 }
 0x472   : > { %5036 = vmatprep.subr.bf16.mxu0 %v9821_v62 }
 0x475   : > { %5037 = vmatpush1.bf16.msra.mxu0 %v7274_v43 }
 0x476   : > { %5038 = vmatprep.subr.bf16.mxu0 %v9821_v62  ;;  %v5237_v62 = vld [vmem:[%s9701_s9 + $0x28] sm:$0xff] }
 0x477   : > { %v6519_v30 = vpack.c.bf16 %v5239_v45, %v5237_v62 }
 0x479   : > { %5039 = vmatpush1.bf16.msra.mxu0 %v7275_v2 }
 0x47a   : > { %6516 = vmatprep.subr.bf16.mxu0 %v6515_v53 }
 0x47c   : > { %5049 = vmatmul.mubr.bf16.vlgmr.msra.gmra.mrb[52].mxu0 %v5097_v0  ;;  %v5349_v0 = vld [vmem:[%s9703_s11 + $0x38] sm:$0xff] }
 0x47d   : > { %6518 = vmatpush1.bf16.msra.mxu0 %v6517_v49  ;;  %5315 = vmatprep.mubr.f32.mxu0 %v7344_v52  ;;  %v6545_v28 = vpack.c.bf16 %v5349_v0, %v5348_v29  ;;  %v6555_v52 = vpack.c.bf16 %v5371_v25, %v5370_v46 }
 0x47e   : > { %6520 = vmatprep.subr.bf16.mxu0 %v6519_v30  ;;  %v5350_v30 = vld [vmem:[%s9703_s11 + $0x40] sm:$0xff] }
 0x47f   : > { %6546 = vmatpush3.bf16.msra.mxu1 %v6545_v28  ;;  %v6549_v40 = vpack.c.bf16 %v5351_v19, %v5350_v30 }
 0x480   : > { %6548 = vmatprep.subr.bf16.mxu1 %v6547_v51 }
 0x481   : > { %6522 = vmatpush1.bf16.msra.mxu0 %v6521_v15  ;;  %v5368_v15 = vld [vmem:[%s9703_s11 + $0xd0] sm:$0xff] }
 0x482   : > { %6524 = vmatprep.subr.bf16.mxu0 %v6523_v13  ;;  %v6551_v20 = vpack.c.bf16 %v5369_v23, %v5368_v15  ;;  %v5353_v13 = vld [vmem:[%s9703_s11 + $0x58] sm:$0xff] }
 0x483   : > { %6550 = vmatpush3.bf16.msra.mxu1 %v6549_v40  ;;  %v6553_v57 = vpack.c.bf16 %v5353_v13, %v5352_v6 }
 0x484   : > { %6552 = vmatprep.subr.bf16.mxu1 %v6551_v20 }
 0x485   : > { %6526 = vmatpush1.bf16.msra.mxu0 %v6525_v35  ;;  %v5354_v35 = vld [vmem:[%s9703_s11 + $0x60] sm:$0xff] }
 0x486   : > { %6528 = vmatprep.subr.bf16.mxu0 %v6527_v55  ;;  %v5355_v55 = vld [vmem:[%s9703_s11 + $0x68] sm:$0xff] }
 0x487   : > { %6554 = vmatpush3.bf16.msra.mxu1 %v6553_v57  ;;  %v6557_v31 = vpack.c.bf16 %v5355_v55, %v5354_v35 }
 0x488   : > { %6556 = vmatprep.subr.bf16.mxu1 %v6555_v52 }
 0x489   : > { %6530 = vmatpush1.bf16.msra.mxu0 %v6529_v37  ;;  %v6561_v37 = vpack.c.bf16 %v5357_v32, %v5356_v24 }
 0x48b   : > { %6558 = vmatpush3.bf16.msra.mxu1 %v6557_v31 }
 0x48c   : > { %6560 = vmatprep.subr.bf16.mxu1 %v6559_v56 }
 0x48f   : > { %6562 = vmatpush3.bf16.msra.mxu1 %v6561_v37 }
 0x51f   : > { %v4911_v44 = vpop.f32.mrb[48].mxu0 }
 0x520   : > { %v4913_v27 = vpop.f32.mrb[49].mxu0 }
 0x521   : > { %v4914_v22 = vpop.f32.mrb[50].mxu0 }
 0x522   : > { %v4915_v42 = vpop.f32.mrb[51].mxu0 }
 0x528   : > { %v5221_v47 = vpop.f32.mrb[44].mxu1 }
 0x529   : > { %v5223_v33 = vpop.f32.mrb[45].mxu1 }
 0x52a   : > { %v5224_v39 = vpop.f32.mrb[46].mxu1 }
 0x52b   : > { %v5225_v43 = vpop.f32.mrb[47].mxu1 }
 0x54f   : > { %v5050_v2 = vpop.f32.mrb[52].mxu0 }
 0x550   : > { %v5051_v9 = vadd.f32 %v5050_v2, %v4911_v44  ;;  %v5052_v11 = vpop.f32.mrb[53].mxu0 }
 0x551   : > { %v5053_v53 = vpop.f32.mrb[54].mxu0 }
 0x552   : > { %v5227_v7 = vadd.f32 %v5221_v47, %v5051_v9  ;;  %v5054_v62 = vpop.f32.mrb[55].mxu0 }
 0x554   : > { %v5229_v45 = vadd.f32 %v5228_v17, %v5227_v7 }
 0x556   : > { %v5230_v49 = vmax.f32 %v5229_v45, 0.0 }
 0x558   : > { %6386 = vmatmul.mubr.msk.f32.vlgmr.msra.gmra.mrb[56].mxu0 %vm4873_vm0, %v5230_v49 }
 0x62b   : > { %v5317_v38 = vpop.f32.mrb[56].mxu0 }
 0x62c   : > { %v5319_v48 = vpop.f32.mrb[57].mxu0 }
 0x62d   : > { %v5324_v10 = vcombine.low %v5317_v38, %v5319_v48 }
 0x62f   : > { %v5331_v50 = vrot.slane %v5324_v10, %v9420_v14 }
 0x631   : > { %v5338_v60 = vrot.slane %v5331_v50, %v9420_v14 }
 0x633   : > { %v5340_v41 = vadd.f32 %v5338_v60, %v5231_v54 }
 0x635   : > { %v5341_v26 = vmax.f32 %v5340_v41, 0.0 }
 0x637   : > { %v5383_v59 = vrot.slane %v5341_v26, %v8127_v1  ;;  %v5379_v12 = vrot.slane %v5341_v26, %v8118_v61 }
 0x639   : > { %5450 = vmatprep.mubr.f32.mxu1 %v5383_v59 }
 0x63a   : > { %5451 = vmatmul.mubr.f32.vlgmr.msra.gmra.mrb[48].mxu1 %v5379_v12 }
 0x70d   : > { %v6458_v5 = vpop.f32.mrb[48].mxu1 }
 0x70e   : > { %v6459_v18 = vpop.f32.mrb[49].mxu1 }
 0x70f   : > { %v6460_v14 = vadd.f32 %v6459_v18, %v6458_v5 }
 0x711   : > { %v5453_v4 = vadd.f32 %v6460_v14, %v5374_v8 }
 0x713   : > { %5457 = vst.msk [vmem:[%s432_s24] sm:$0x1] %vm5456_vm4, %v5453_v4 }
 0x714   : > { %7289 = shalt.err (!%p7286_p3)
}
 0x715   : > { %s7290_s23 = scalar_lea.hbm %s9650_s21, 16  ;;  %s7294_s24 = scalar_lea.hbm %s9705_s13, 32 }
 0x716   : > { %p7291_p4 = scmp.ne.s32.totalorder %s9650_s21, %s7290_s23  ;;  %p7295_p9 = scmp.lt.u32.totalorder %s9650_s21, %s9705_s13 }
 0x717   : > { %p7296_p10 = scmp.lt.u32.totalorder %s7294_s24, %s7290_s23  ;;  %p7298_p12 = scmp.lt.u32.totalorder %s7290_s23, %s9650_s21 }
 0x718   : > { %p7292_p7 = pnand %p7291_p4, %p7454_p5 }
 0x719   : > { %p7297_p11 = por %p7296_p10, %p7295_p9 }
 0x71a   : > { %p7293_p8 = pneg %p7292_p7 }
 0x71b   : > { %p7299_p13 = por %p7298_p12, %p7297_p11 }
 0x71d   : > { %p7300_p0 = pnand %p7299_p13, %p7293_p8 }
 0x71f   : > { %7303 = shalt.err (!%p7300_p0)
}
 0x720   : > { %6580 = dma.vmem_to_hbm [thread:$0]  (%p7454_p5), %s9652_s30, 16, %s9650_s21, %s5459_s20  }
 0x721 PF: > { %p6586_p1 = scmp.ge.s32.totalorder %s7338_s28, 2  ;;  %s5483_s29 = sand.u32 1, %s7326_s25  }
 0x722   : > { %s5484_s17 = scalar_lea.sflag [#allocation6], %s5483_s29 }
 0x723   : > { %p6583_p2 = pnand %p6586_p1, %p7458_p6 }
 0x725   : > { %7321 = dma.done.wait (!%p6583_p2), %s5484_s17, 16  }
 0x726   : > { %7323 = vsyncadd (!%p6583_p2), %s5484_s17, 4294967280  ;;  %s9831_s28 = sld [smem:[#allocation9_spill]]  ;;  %s9832_s22 = sld [smem:[#allocation8_spill]] }
 0x727   : > { %s9833_s27 = sld [smem:[#allocation10_spill]]  ;;  %s9834_s25 = smov %s7330_s26 }
 0x72c   : > { %p23_p3 = scmp.ge.s32.totalorder %s9831_s28, 4   ;;  %s9835_s26 = smov %s9832_s22 }
 0x72e   :  { %25 = sbr.rel (!%p23_p3) target bundleno = 3 (0x3), region = 119 }
 0x735   :  { %5488 = vsyncpa [#allocation6], 1 }
 0x736   :  { %5490 = vsyncpa [#allocation6 + $0x1], 1 }

</bundles_post_ra>
